<compile_context>
chip_gen: v5e
topology: v5e:2x2
jax: 0.10.0
libtpu: 0.0.40
codegen_flags: <defaults>
</compile_context>

<pallas_src>
import math
import numpy as np
import jax
import jax.numpy as jnp
from jax.experimental import pallas as pl
from jax.experimental.pallas import tpu as pltpu

# ---------------- model hyper-parameters (small synthetic config) ----------------
B = 2            # batch
N_SEQ = 16       # args.max_seq_len
EMB = 32         # args.embed_size
HID = 32         # args.hidden_size
N_LAYERS = 2     # args.n_layers
PROTOCOL = "chord"
N_W = math.ceil(math.log2(N_SEQ))   # W mixing steps per attention module (= 4)
N_LINKS = N_W + 1                   # chord links per position, incl. self    (= 5)

_HIGH = jax.lax.Precision.HIGHEST   # reference only


def _gelu_tanh(x):
    # matches torch.nn.GELU(approximate='tanh')
    c = math.sqrt(2.0 / math.pi)
    return 0.5 * x * (1.0 + jnp.tanh(c * (x + 0.044715 * x * x * x)))


def _tree_sum(terms):
    # balanced-tree accumulation to shorten the serial dependency chain
    terms = list(terms)
    while len(terms) > 1:
        nxt = [terms[i] + terms[i + 1] for i in range(0, len(terms) - 1, 2)]
        if len(terms) % 2:
            nxt.append(terms[-1])
        terms = nxt
    return terms[0]


# -------------------- chord protocol indices (for the JAX reference) --------------
def chord_cols(n_vec, n_link):
    # same formula as get_chord_indices_assym: cols[i] = [i] + [(i + 2**k) % n_vec ...]
    cols = np.zeros((n_vec, n_link), dtype=np.int32)
    for i in range(n_vec):
        cols[i, 0] = i
        for k in range(n_link - 1):
            cols[i, k + 1] = (i + 2 ** k) % n_vec
    return cols


# ----------------------------------- Pallas kernel --------------------------------
def paramixer_kernel(x_ref,
                     wg1_ref, bg1_ref, wg2_ref, bg2_ref,
                     wf1_ref, bf1_ref, wf2_ref, bf2_ref,
                     o_ref):
    x = x_ref[...]                                                  # (B*N, E)

    # --- every f-MLP (all layers, all m, all links) depends only on the original
    #     embedding -> hoisted above the layer loop into two lane-dense matmuls.
    hf = _gelu_tanh(jnp.dot(x, wf1_ref[...], preferred_element_type=jnp.float32)
                    + bf1_ref[...])                                 # (B*N, L*N_W*H)
    w_all = (jnp.dot(hf, wf2_ref[...], preferred_element_type=jnp.float32)
             + bf2_ref[...])        # (B*N, L*N_W*N_LINKS*E), lane-replicated, +1 on self link

    # per-batch static views of the mixing weights (sublane slices, multiples of N)
    w_b = [w_all[b * N_SEQ:(b + 1) * N_SEQ, :] for b in range(B)]

    v = x                                                           # V starts as the embedding
    for layer in range(N_LAYERS):                                   # both attention modules fused
        # --- V = g(V): Linear(E->H) -> GELU(tanh) -> Linear(H->E), whole batch at once
        h = _gelu_tanh(jnp.dot(v, wg1_ref[layer], preferred_element_type=jnp.float32)
                       + bg1_ref[layer])
        v = (jnp.dot(h, wg2_ref[layer], preferred_element_type=jnp.float32)
             + bg2_ref[layer])                                      # (B*N, E)

        # --- N_W chord mixing steps: spmm over the chord pattern == circulant shifts.
        v_parts = []
        for b in range(B):                                          # static; both chains unrolled
            vb = v[b * N_SEQ:(b + 1) * N_SEQ, :]                    # (N, E)
            wb = w_b[b]
            for m in range(N_W):
                base = (layer * N_W + m) * N_LINKS * EMB
                # link 0 = self; residual (mix + V) already folded into its bias (+1.0)
                terms = [wb[:, base:base + EMB] * vb]
                for l in range(1, N_LINKS):
                    shift = (N_SEQ - (1 << (l - 1))) % N_SEQ        # P_l @ v == roll(v, shift)
                    terms.append(wb[:, base + l * EMB: base + (l + 1) * EMB]
                                 * pltpu.roll(vb, shift=shift, axis=0))
                vb = _tree_sum(terms)
            v_parts.append(vb)
        v = jnp.concatenate(v_parts, axis=0)                        # back to (B*N, E)
        # TODO(synk): nn.Dropout(attn_drop_prob) is implemented as identity (eval-mode).

    o_ref[...] = v.astype(o_ref.dtype)


def paramixer_pallas(embed, packed):
    Bsz, N, E = embed.shape
    (wg1, bg1, wg2, bg2, wf1, bf1, wf2, bf2) = packed
    x2d = embed.reshape(Bsz * N, E)                                 # wrapper-side, free in XLA

    def full(a):
        shp = a.shape
        return pl.BlockSpec(shp, lambda i, _n=len(shp): (0,) * _n)

    out2d = pl.pallas_call(
        paramixer_kernel,
        out_shape=jax.ShapeDtypeStruct((Bsz * N, E), jnp.float32),
        grid_spec=pltpu.PrefetchScalarGridSpec(
            num_scalar_prefetch=0,
            grid=(1,),                                              # single step: batch folded into the body
            in_specs=[
                full(x2d),                                          # embedding / initial V
                full(wg1), full(bg1), full(wg2), full(bg2),         # g MLP, stacked per layer
                full(wf1), full(bf1), full(wf2), full(bf2),         # fused f MLPs (all layers)
            ],
            out_specs=pl.BlockSpec((Bsz * N, E), lambda i: (0, 0)),
        ),
        compiler_params=pltpu.CompilerParams(dimension_semantics=("arbitrary",)),
    )(x2d, wg1, bg1, wg2, bg2, wf1, bf1, wf2, bf2)
    return out2d.reshape(Bsz, N, E)


# ---------------------- pack per-layer params for the fused kernel -----------------
def pack_params(layers):
    wg1 = jnp.stack([p["wg1"] for p in layers])                     # (L, E, H)
    bg1 = jnp.stack([p["bg1"] for p in layers])                     # (L, 1, H)
    wg2 = jnp.stack([p["wg2"] for p in layers])                     # (L, H, E)
    bg2 = jnp.stack([p["bg2"] for p in layers])                     # (L, 1, E)

    # first fs linear: all layers & m concatenated -> (E, L*N_W*H) = (32, 256)
    wf1 = jnp.concatenate(
        [jnp.transpose(p["wf1"], (1, 0, 2)).reshape(EMB, N_W * HID) for p in layers],
        axis=1)
    bf1 = jnp.concatenate(
        [p["bf1"].reshape(1, N_W * HID) for p in layers], axis=1)   # (1, L*N_W*H)

    # second fs linear: block-diagonal over (layer, m); every output column replicated
    # EMB times so the per-link weights arrive already lane-broadcast; the residual
    # connection is folded into the self-link bias (+1.0).
    tot_h = N_LAYERS * N_W * HID
    tot_o = N_LAYERS * N_W * N_LINKS * EMB
    wf2 = np.zeros((tot_h, tot_o), np.float32)
    bf2 = np.zeros((1, tot_o), np.float32)
    for li, p in enumerate(layers):
        w2 = np.asarray(p["wf2"])                                   # (N_W, H, N_LINKS)
        b2 = np.asarray(p["bf2"]).reshape(N_W, N_LINKS)             # (N_W, N_LINKS)
        for m in range(N_W):
            g = li * N_W + m
            r0, c0 = g * HID, g * N_LINKS * EMB
            wf2[r0:r0 + HID, c0:c0 + N_LINKS * EMB] = np.repeat(w2[m], EMB, axis=1)
            bvec = np.repeat(b2[m], EMB)
            bvec[:EMB] += 1.0                                       # residual folded into self link
            bf2[0, c0:c0 + N_LINKS * EMB] = bvec
    return (wg1, bg1, wg2, bg2, wf1, bf1, jnp.asarray(wf2), jnp.asarray(bf2))


# -------------------------- deterministic parameter init ---------------------------
def init_linear(key, fan_in, fan_out):
    kw, kb = jax.random.split(key)
    bound = 1.0 / math.sqrt(fan_in)
    w = jax.random.uniform(kw, (fan_in, fan_out), jnp.float32, -bound, bound)
    b = jax.random.uniform(kb, (1, fan_out), jnp.float32, -bound, bound)
    return w, b


def init_params(key):
    layers = []
    for _ in range(N_LAYERS):
        key, kg1, kg2 = jax.random.split(key, 3)
        wg1, bg1 = init_linear(kg1, EMB, HID)
        wg2, bg2 = init_linear(kg2, HID, EMB)
        wf1s, bf1s, wf2s, bf2s = [], [], [], []
        for _ in range(N_W):
            key, k1, k2 = jax.random.split(key, 3)
            w1, b1 = init_linear(k1, EMB, HID)
            w2, b2 = init_linear(k2, HID, N_LINKS)
            wf1s.append(w1); bf1s.append(b1); wf2s.append(w2); bf2s.append(b2)
        layers.append(dict(
            wg1=wg1, bg1=bg1, wg2=wg2, bg2=bg2,
            wf1=jnp.stack(wf1s), bf1=jnp.stack(bf1s),
            wf2=jnp.stack(wf2s), bf2=jnp.stack(bf2s)))
    return layers


# ------------------------------ pure-JAX reference ---------------------------------
def _mlp_ref(x, w1, b1, w2, b2):
    h = _gelu_tanh(jnp.einsum('bne,eh->bnh', x, w1, precision=_HIGH) + b1)
    return jnp.einsum('bnh,ho->bno', h, w2, precision=_HIGH) + b2


def paramixer_ref(embed, layers, cols):
    V = embed
    for p in layers:
        Vg = _mlp_ref(V, p["wg1"], p["bg1"], p["wg2"], p["bg2"])
        for m in range(N_W):
            res = Vg
            W = _mlp_ref(embed, p["wf1"][m], p["bf1"][m], p["wf2"][m], p["bf2"][m])  # (B,N,L)
            gathered = Vg[:, cols, :]                                                # (B,N,L,E)
            Vg = jnp.einsum('bnl,bnle->bne', W, gathered, precision=_HIGH) + res
        V = Vg                                   # dropout = identity (eval)
    return V


if __name__ == "__main__":
    key = jax.random.PRNGKey(0)
    key, k_embed, k_params = jax.random.split(key, 3)
    embed = jax.random.normal(k_embed, (B, N_SEQ, EMB), jnp.float32)
    layers = init_params(k_params)
    packed = pack_params(layers)

    cols = jnp.asarray(chord_cols(N_SEQ, N_LINKS))

    out = jax.block_until_ready(paramixer_pallas(embed, packed))
    ref = jax.block_until_ready(paramixer_ref(embed, layers, cols))

    assert out.shape == (B, N_SEQ, EMB)
    if not np.allclose(np.asarray(out), np.asarray(ref), rtol=1e-2, atol=1e-2):
        raise AssertionError("Pallas Paramixer output mismatch vs. JAX reference")
    print("KERNEL_OK")
</pallas_src>

<mosaic_0001>
module attributes {stable_mosaic.version = 11 : i64} {
  func.func @paramixer_kernel(%arg0: i32, %arg1: memref<32x32xf32, #tpu.memory_space<vmem>>, %arg2: memref<2x32x32xf32, #tpu.memory_space<vmem>>, %arg3: memref<2x1x32xf32, #tpu.memory_space<vmem>>, %arg4: memref<2x32x32xf32, #tpu.memory_space<vmem>>, %arg5: memref<2x1x32xf32, #tpu.memory_space<vmem>>, %arg6: memref<32x256xf32, #tpu.memory_space<vmem>>, %arg7: memref<1x256xf32, #tpu.memory_space<vmem>>, %arg8: memref<256x1280xf32, #tpu.memory_space<vmem>>, %arg9: memref<1x1280xf32, #tpu.memory_space<vmem>>, %arg10: memref<32x32xf32, #tpu.memory_space<vmem>>) attributes {dimension_semantics = [#tpu.dimension_semantics<arbitrary>], iteration_bounds = array<i64: 1>, scalar_prefetch = 0 : i64, scratch_operands = 0 : i64, tpu.core_type = #tpu.core_type<tc>, window_params = [{pipeline_mode = #tpu.pipeline_mode<synchronous>, transform_indices = @transform_0, window_bounds = array<i64: 32, 32>}, {pipeline_mode = #tpu.pipeline_mode<synchronous>, transform_indices = @transform_1, window_bounds = array<i64: 2, 32, 32>}, {pipeline_mode = #tpu.pipeline_mode<synchronous>, transform_indices = @transform_2, window_bounds = array<i64: 2, 1, 32>}, {pipeline_mode = #tpu.pipeline_mode<synchronous>, transform_indices = @transform_3, window_bounds = array<i64: 2, 32, 32>}, {pipeline_mode = #tpu.pipeline_mode<synchronous>, transform_indices = @transform_4, window_bounds = array<i64: 2, 1, 32>}, {pipeline_mode = #tpu.pipeline_mode<synchronous>, transform_indices = @transform_5, window_bounds = array<i64: 32, 256>}, {pipeline_mode = #tpu.pipeline_mode<synchronous>, transform_indices = @transform_6, window_bounds = array<i64: 1, 256>}, {pipeline_mode = #tpu.pipeline_mode<synchronous>, transform_indices = @transform_7, window_bounds = array<i64: 256, 1280>}, {pipeline_mode = #tpu.pipeline_mode<synchronous>, transform_indices = @transform_8, window_bounds = array<i64: 1, 1280>}, {pipeline_mode = #tpu.pipeline_mode<synchronous>, transform_indices = @transform_9, window_bounds = array<i64: 32, 32>}]} {
    %c0 = arith.constant 0 : index
    %c0_0 = arith.constant 0 : index
    %0 = vector.load %arg1[%c0, %c0_0] : memref<32x32xf32, #tpu.memory_space<vmem>>, vector<32x32xf32>
    %c0_1 = arith.constant 0 : index
    %c0_2 = arith.constant 0 : index
    %1 = vector.load %arg6[%c0_1, %c0_2] : memref<32x256xf32, #tpu.memory_space<vmem>>, vector<32x256xf32>
    %cst = arith.constant dense<0.000000e+00> : vector<32x256xf32>
    %2 = tpu.matmul %0, %1, %cst {dimension_numbers = #tpu.dot_dimension_numbers<[1], [0], [0], [1], [0, 0, 1, 1], [], []>} : vector<32x32xf32>, vector<32x256xf32>, vector<32x256xf32> -> vector<32x256xf32>
    %c0_3 = arith.constant 0 : index
    %c0_4 = arith.constant 0 : index
    %3 = vector.load %arg7[%c0_3, %c0_4] : memref<1x256xf32, #tpu.memory_space<vmem>>, vector<1x256xf32>
    %4 = vector.broadcast %3 : vector<1x256xf32> to vector<32x256xf32>
    %5 = arith.addf %2, %4 : vector<32x256xf32>
    %cst_5 = arith.constant 5.000000e-01 : f32
    %6 = vector.broadcast %cst_5 : f32 to vector<32x256xf32>
    %7 = arith.mulf %6, %5 : vector<32x256xf32>
    %cst_6 = arith.constant 4.471500e-02 : f32
    %8 = vector.broadcast %cst_6 : f32 to vector<32x256xf32>
    %9 = arith.mulf %8, %5 : vector<32x256xf32>
    %10 = arith.mulf %9, %5 : vector<32x256xf32>
    %11 = arith.mulf %10, %5 : vector<32x256xf32>
    %12 = arith.addf %5, %11 : vector<32x256xf32>
    %cst_7 = arith.constant 0.797884583 : f32
    %13 = vector.broadcast %cst_7 : f32 to vector<32x256xf32>
    %14 = arith.mulf %13, %12 : vector<32x256xf32>
    %15 = math.tanh %14 : vector<32x256xf32>
    %cst_8 = arith.constant 1.000000e+00 : f32
    %16 = vector.broadcast %cst_8 : f32 to vector<32x256xf32>
    %17 = arith.addf %16, %15 : vector<32x256xf32>
    %18 = arith.mulf %7, %17 : vector<32x256xf32>
    %c0_9 = arith.constant 0 : index
    %c0_10 = arith.constant 0 : index
    %19 = vector.load %arg8[%c0_9, %c0_10] : memref<256x1280xf32, #tpu.memory_space<vmem>>, vector<256x1280xf32>
    %cst_11 = arith.constant dense<0.000000e+00> : vector<32x1280xf32>
    %20 = tpu.matmul %18, %19, %cst_11 {dimension_numbers = #tpu.dot_dimension_numbers<[1], [0], [0], [1], [0, 0, 1, 1], [], []>} : vector<32x256xf32>, vector<256x1280xf32>, vector<32x1280xf32> -> vector<32x1280xf32>
    %c0_12 = arith.constant 0 : index
    %c0_13 = arith.constant 0 : index
    %21 = vector.load %arg9[%c0_12, %c0_13] : memref<1x1280xf32, #tpu.memory_space<vmem>>, vector<1x1280xf32>
    %22 = vector.broadcast %21 : vector<1x1280xf32> to vector<32x1280xf32>
    %23 = arith.addf %20, %22 : vector<32x1280xf32>
    %24 = vector.extract_strided_slice %23 {offsets = [0, 0], sizes = [16, 1280], strides = [1, 1]} : vector<32x1280xf32> to vector<16x1280xf32>
    %25 = vector.extract_strided_slice %23 {offsets = [16, 0], sizes = [16, 1280], strides = [1, 1]} : vector<32x1280xf32> to vector<16x1280xf32>
    %c0_14 = arith.constant 0 : index
    %c0_15 = arith.constant 0 : index
    %c0_16 = arith.constant 0 : index
    %26 = vector.load %arg2[%c0_14, %c0_15, %c0_16] : memref<2x32x32xf32, #tpu.memory_space<vmem>>, vector<1x32x32xf32>
    %27 = vector.shape_cast %26 : vector<1x32x32xf32> to vector<32x32xf32>
    %cst_17 = arith.constant dense<0.000000e+00> : vector<32x32xf32>
    %28 = tpu.matmul %0, %27, %cst_17 {dimension_numbers = #tpu.dot_dimension_numbers<[1], [0], [0], [1], [0, 0, 1, 1], [], []>} : vector<32x32xf32>, vector<32x32xf32>, vector<32x32xf32> -> vector<32x32xf32>
    %c0_18 = arith.constant 0 : index
    %c0_19 = arith.constant 0 : index
    %c0_20 = arith.constant 0 : index
    %29 = vector.load %arg3[%c0_18, %c0_19, %c0_20] : memref<2x1x32xf32, #tpu.memory_space<vmem>>, vector<1x1x32xf32>
    %30 = vector.shape_cast %29 : vector<1x1x32xf32> to vector<1x32xf32>
    %31 = vector.broadcast %30 : vector<1x32xf32> to vector<32x32xf32>
    %32 = arith.addf %28, %31 : vector<32x32xf32>
    %cst_21 = arith.constant 5.000000e-01 : f32
    %33 = vector.broadcast %cst_21 : f32 to vector<32x32xf32>
    %34 = arith.mulf %33, %32 : vector<32x32xf32>
    %cst_22 = arith.constant 4.471500e-02 : f32
    %35 = vector.broadcast %cst_22 : f32 to vector<32x32xf32>
    %36 = arith.mulf %35, %32 : vector<32x32xf32>
    %37 = arith.mulf %36, %32 : vector<32x32xf32>
    %38 = arith.mulf %37, %32 : vector<32x32xf32>
    %39 = arith.addf %32, %38 : vector<32x32xf32>
    %cst_23 = arith.constant 0.797884583 : f32
    %40 = vector.broadcast %cst_23 : f32 to vector<32x32xf32>
    %41 = arith.mulf %40, %39 : vector<32x32xf32>
    %42 = math.tanh %41 : vector<32x32xf32>
    %cst_24 = arith.constant 1.000000e+00 : f32
    %43 = vector.broadcast %cst_24 : f32 to vector<32x32xf32>
    %44 = arith.addf %43, %42 : vector<32x32xf32>
    %45 = arith.mulf %34, %44 : vector<32x32xf32>
    %c0_25 = arith.constant 0 : index
    %c0_26 = arith.constant 0 : index
    %c0_27 = arith.constant 0 : index
    %46 = vector.load %arg4[%c0_25, %c0_26, %c0_27] : memref<2x32x32xf32, #tpu.memory_space<vmem>>, vector<1x32x32xf32>
    %47 = vector.shape_cast %46 : vector<1x32x32xf32> to vector<32x32xf32>
    %cst_28 = arith.constant dense<0.000000e+00> : vector<32x32xf32>
    %48 = tpu.matmul %45, %47, %cst_28 {dimension_numbers = #tpu.dot_dimension_numbers<[1], [0], [0], [1], [0, 0, 1, 1], [], []>} : vector<32x32xf32>, vector<32x32xf32>, vector<32x32xf32> -> vector<32x32xf32>
    %c0_29 = arith.constant 0 : index
    %c0_30 = arith.constant 0 : index
    %c0_31 = arith.constant 0 : index
    %49 = vector.load %arg5[%c0_29, %c0_30, %c0_31] : memref<2x1x32xf32, #tpu.memory_space<vmem>>, vector<1x1x32xf32>
    %50 = vector.shape_cast %49 : vector<1x1x32xf32> to vector<1x32xf32>
    %51 = vector.broadcast %50 : vector<1x32xf32> to vector<32x32xf32>
    %52 = arith.addf %48, %51 : vector<32x32xf32>
    %53 = vector.extract_strided_slice %52 {offsets = [0, 0], sizes = [16, 32], strides = [1, 1]} : vector<32x32xf32> to vector<16x32xf32>
    %54 = vector.extract_strided_slice %24 {offsets = [0, 0], sizes = [16, 32], strides = [1, 1]} : vector<16x1280xf32> to vector<16x32xf32>
    %55 = arith.mulf %54, %53 : vector<16x32xf32>
    %56 = vector.extract_strided_slice %24 {offsets = [0, 32], sizes = [16, 32], strides = [1, 1]} : vector<16x1280xf32> to vector<16x32xf32>
    %c15_i32 = arith.constant 15 : i32
    %57 = tpu.dynamic_rotate %53 by %c15_i32 dim 0 : vector<16x32xf32>, i32 -> vector<16x32xf32>
    %58 = arith.mulf %56, %57 : vector<16x32xf32>
    %59 = vector.extract_strided_slice %24 {offsets = [0, 64], sizes = [16, 32], strides = [1, 1]} : vector<16x1280xf32> to vector<16x32xf32>
    %c14_i32 = arith.constant 14 : i32
    %60 = tpu.dynamic_rotate %53 by %c14_i32 dim 0 : vector<16x32xf32>, i32 -> vector<16x32xf32>
    %61 = arith.mulf %59, %60 : vector<16x32xf32>
    %62 = vector.extract_strided_slice %24 {offsets = [0, 96], sizes = [16, 32], strides = [1, 1]} : vector<16x1280xf32> to vector<16x32xf32>
    %c12_i32 = arith.constant 12 : i32
    %63 = tpu.dynamic_rotate %53 by %c12_i32 dim 0 : vector<16x32xf32>, i32 -> vector<16x32xf32>
    %64 = arith.mulf %62, %63 : vector<16x32xf32>
    %65 = vector.extract_strided_slice %24 {offsets = [0, 128], sizes = [16, 32], strides = [1, 1]} : vector<16x1280xf32> to vector<16x32xf32>
    %c8_i32 = arith.constant 8 : i32
    %66 = tpu.dynamic_rotate %53 by %c8_i32 dim 0 : vector<16x32xf32>, i32 -> vector<16x32xf32>
    %67 = arith.mulf %65, %66 : vector<16x32xf32>
    %68 = arith.addf %55, %58 : vector<16x32xf32>
    %69 = arith.addf %61, %64 : vector<16x32xf32>
    %70 = arith.addf %68, %69 : vector<16x32xf32>
    %71 = arith.addf %70, %67 : vector<16x32xf32>
    %72 = vector.extract_strided_slice %24 {offsets = [0, 160], sizes = [16, 32], strides = [1, 1]} : vector<16x1280xf32> to vector<16x32xf32>
    %73 = arith.mulf %72, %71 : vector<16x32xf32>
    %74 = vector.extract_strided_slice %24 {offsets = [0, 192], sizes = [16, 32], strides = [1, 1]} : vector<16x1280xf32> to vector<16x32xf32>
    %c15_i32_32 = arith.constant 15 : i32
    %75 = tpu.dynamic_rotate %71 by %c15_i32_32 dim 0 : vector<16x32xf32>, i32 -> vector<16x32xf32>
    %76 = arith.mulf %74, %75 : vector<16x32xf32>
    %77 = vector.extract_strided_slice %24 {offsets = [0, 224], sizes = [16, 32], strides = [1, 1]} : vector<16x1280xf32> to vector<16x32xf32>
    %c14_i32_33 = arith.constant 14 : i32
    %78 = tpu.dynamic_rotate %71 by %c14_i32_33 dim 0 : vector<16x32xf32>, i32 -> vector<16x32xf32>
    %79 = arith.mulf %77, %78 : vector<16x32xf32>
    %80 = vector.extract_strided_slice %24 {offsets = [0, 256], sizes = [16, 32], strides = [1, 1]} : vector<16x1280xf32> to vector<16x32xf32>
    %c12_i32_34 = arith.constant 12 : i32
    %81 = tpu.dynamic_rotate %71 by %c12_i32_34 dim 0 : vector<16x32xf32>, i32 -> vector<16x32xf32>
    %82 = arith.mulf %80, %81 : vector<16x32xf32>
    %83 = vector.extract_strided_slice %24 {offsets = [0, 288], sizes = [16, 32], strides = [1, 1]} : vector<16x1280xf32> to vector<16x32xf32>
    %c8_i32_35 = arith.constant 8 : i32
    %84 = tpu.dynamic_rotate %71 by %c8_i32_35 dim 0 : vector<16x32xf32>, i32 -> vector<16x32xf32>
    %85 = arith.mulf %83, %84 : vector<16x32xf32>
    %86 = arith.addf %73, %76 : vector<16x32xf32>
    %87 = arith.addf %79, %82 : vector<16x32xf32>
    %88 = arith.addf %86, %87 : vector<16x32xf32>
    %89 = arith.addf %88, %85 : vector<16x32xf32>
    %90 = vector.extract_strided_slice %24 {offsets = [0, 320], sizes = [16, 32], strides = [1, 1]} : vector<16x1280xf32> to vector<16x32xf32>
    %91 = arith.mulf %90, %89 : vector<16x32xf32>
    %92 = vector.extract_strided_slice %24 {offsets = [0, 352], sizes = [16, 32], strides = [1, 1]} : vector<16x1280xf32> to vector<16x32xf32>
    %c15_i32_36 = arith.constant 15 : i32
    %93 = tpu.dynamic_rotate %89 by %c15_i32_36 dim 0 : vector<16x32xf32>, i32 -> vector<16x32xf32>
    %94 = arith.mulf %92, %93 : vector<16x32xf32>
    %95 = vector.extract_strided_slice %24 {offsets = [0, 384], sizes = [16, 32], strides = [1, 1]} : vector<16x1280xf32> to vector<16x32xf32>
    %c14_i32_37 = arith.constant 14 : i32
    %96 = tpu.dynamic_rotate %89 by %c14_i32_37 dim 0 : vector<16x32xf32>, i32 -> vector<16x32xf32>
    %97 = arith.mulf %95, %96 : vector<16x32xf32>
    %98 = vector.extract_strided_slice %24 {offsets = [0, 416], sizes = [16, 32], strides = [1, 1]} : vector<16x1280xf32> to vector<16x32xf32>
    %c12_i32_38 = arith.constant 12 : i32
    %99 = tpu.dynamic_rotate %89 by %c12_i32_38 dim 0 : vector<16x32xf32>, i32 -> vector<16x32xf32>
    %100 = arith.mulf %98, %99 : vector<16x32xf32>
    %101 = vector.extract_strided_slice %24 {offsets = [0, 448], sizes = [16, 32], strides = [1, 1]} : vector<16x1280xf32> to vector<16x32xf32>
    %c8_i32_39 = arith.constant 8 : i32
    %102 = tpu.dynamic_rotate %89 by %c8_i32_39 dim 0 : vector<16x32xf32>, i32 -> vector<16x32xf32>
    %103 = arith.mulf %101, %102 : vector<16x32xf32>
    %104 = arith.addf %91, %94 : vector<16x32xf32>
    %105 = arith.addf %97, %100 : vector<16x32xf32>
    %106 = arith.addf %104, %105 : vector<16x32xf32>
    %107 = arith.addf %106, %103 : vector<16x32xf32>
    %108 = vector.extract_strided_slice %24 {offsets = [0, 480], sizes = [16, 32], strides = [1, 1]} : vector<16x1280xf32> to vector<16x32xf32>
    %109 = arith.mulf %108, %107 : vector<16x32xf32>
    %110 = vector.extract_strided_slice %24 {offsets = [0, 512], sizes = [16, 32], strides = [1, 1]} : vector<16x1280xf32> to vector<16x32xf32>
    %c15_i32_40 = arith.constant 15 : i32
    %111 = tpu.dynamic_rotate %107 by %c15_i32_40 dim 0 : vector<16x32xf32>, i32 -> vector<16x32xf32>
    %112 = arith.mulf %110, %111 : vector<16x32xf32>
    %113 = vector.extract_strided_slice %24 {offsets = [0, 544], sizes = [16, 32], strides = [1, 1]} : vector<16x1280xf32> to vector<16x32xf32>
    %c14_i32_41 = arith.constant 14 : i32
    %114 = tpu.dynamic_rotate %107 by %c14_i32_41 dim 0 : vector<16x32xf32>, i32 -> vector<16x32xf32>
    %115 = arith.mulf %113, %114 : vector<16x32xf32>
    %116 = vector.extract_strided_slice %24 {offsets = [0, 576], sizes = [16, 32], strides = [1, 1]} : vector<16x1280xf32> to vector<16x32xf32>
    %c12_i32_42 = arith.constant 12 : i32
    %117 = tpu.dynamic_rotate %107 by %c12_i32_42 dim 0 : vector<16x32xf32>, i32 -> vector<16x32xf32>
    %118 = arith.mulf %116, %117 : vector<16x32xf32>
    %119 = vector.extract_strided_slice %24 {offsets = [0, 608], sizes = [16, 32], strides = [1, 1]} : vector<16x1280xf32> to vector<16x32xf32>
    %c8_i32_43 = arith.constant 8 : i32
    %120 = tpu.dynamic_rotate %107 by %c8_i32_43 dim 0 : vector<16x32xf32>, i32 -> vector<16x32xf32>
    %121 = arith.mulf %119, %120 : vector<16x32xf32>
    %122 = arith.addf %109, %112 : vector<16x32xf32>
    %123 = arith.addf %115, %118 : vector<16x32xf32>
    %124 = arith.addf %122, %123 : vector<16x32xf32>
    %125 = arith.addf %124, %121 : vector<16x32xf32>
    %126 = vector.extract_strided_slice %52 {offsets = [16, 0], sizes = [16, 32], strides = [1, 1]} : vector<32x32xf32> to vector<16x32xf32>
    %127 = vector.extract_strided_slice %25 {offsets = [0, 0], sizes = [16, 32], strides = [1, 1]} : vector<16x1280xf32> to vector<16x32xf32>
    %128 = arith.mulf %127, %126 : vector<16x32xf32>
    %129 = vector.extract_strided_slice %25 {offsets = [0, 32], sizes = [16, 32], strides = [1, 1]} : vector<16x1280xf32> to vector<16x32xf32>
    %c15_i32_44 = arith.constant 15 : i32
    %130 = tpu.dynamic_rotate %126 by %c15_i32_44 dim 0 : vector<16x32xf32>, i32 -> vector<16x32xf32>
    %131 = arith.mulf %129, %130 : vector<16x32xf32>
    %132 = vector.extract_strided_slice %25 {offsets = [0, 64], sizes = [16, 32], strides = [1, 1]} : vector<16x1280xf32> to vector<16x32xf32>
    %c14_i32_45 = arith.constant 14 : i32
    %133 = tpu.dynamic_rotate %126 by %c14_i32_45 dim 0 : vector<16x32xf32>, i32 -> vector<16x32xf32>
    %134 = arith.mulf %132, %133 : vector<16x32xf32>
    %135 = vector.extract_strided_slice %25 {offsets = [0, 96], sizes = [16, 32], strides = [1, 1]} : vector<16x1280xf32> to vector<16x32xf32>
    %c12_i32_46 = arith.constant 12 : i32
    %136 = tpu.dynamic_rotate %126 by %c12_i32_46 dim 0 : vector<16x32xf32>, i32 -> vector<16x32xf32>
    %137 = arith.mulf %135, %136 : vector<16x32xf32>
    %138 = vector.extract_strided_slice %25 {offsets = [0, 128], sizes = [16, 32], strides = [1, 1]} : vector<16x1280xf32> to vector<16x32xf32>
    %c8_i32_47 = arith.constant 8 : i32
    %139 = tpu.dynamic_rotate %126 by %c8_i32_47 dim 0 : vector<16x32xf32>, i32 -> vector<16x32xf32>
    %140 = arith.mulf %138, %139 : vector<16x32xf32>
    %141 = arith.addf %128, %131 : vector<16x32xf32>
    %142 = arith.addf %134, %137 : vector<16x32xf32>
    %143 = arith.addf %141, %142 : vector<16x32xf32>
    %144 = arith.addf %143, %140 : vector<16x32xf32>
    %145 = vector.extract_strided_slice %25 {offsets = [0, 160], sizes = [16, 32], strides = [1, 1]} : vector<16x1280xf32> to vector<16x32xf32>
    %146 = arith.mulf %145, %144 : vector<16x32xf32>
    %147 = vector.extract_strided_slice %25 {offsets = [0, 192], sizes = [16, 32], strides = [1, 1]} : vector<16x1280xf32> to vector<16x32xf32>
    %c15_i32_48 = arith.constant 15 : i32
    %148 = tpu.dynamic_rotate %144 by %c15_i32_48 dim 0 : vector<16x32xf32>, i32 -> vector<16x32xf32>
    %149 = arith.mulf %147, %148 : vector<16x32xf32>
    %150 = vector.extract_strided_slice %25 {offsets = [0, 224], sizes = [16, 32], strides = [1, 1]} : vector<16x1280xf32> to vector<16x32xf32>
    %c14_i32_49 = arith.constant 14 : i32
    %151 = tpu.dynamic_rotate %144 by %c14_i32_49 dim 0 : vector<16x32xf32>, i32 -> vector<16x32xf32>
    %152 = arith.mulf %150, %151 : vector<16x32xf32>
    %153 = vector.extract_strided_slice %25 {offsets = [0, 256], sizes = [16, 32], strides = [1, 1]} : vector<16x1280xf32> to vector<16x32xf32>
    %c12_i32_50 = arith.constant 12 : i32
    %154 = tpu.dynamic_rotate %144 by %c12_i32_50 dim 0 : vector<16x32xf32>, i32 -> vector<16x32xf32>
    %155 = arith.mulf %153, %154 : vector<16x32xf32>
    %156 = vector.extract_strided_slice %25 {offsets = [0, 288], sizes = [16, 32], strides = [1, 1]} : vector<16x1280xf32> to vector<16x32xf32>
    %c8_i32_51 = arith.constant 8 : i32
    %157 = tpu.dynamic_rotate %144 by %c8_i32_51 dim 0 : vector<16x32xf32>, i32 -> vector<16x32xf32>
    %158 = arith.mulf %156, %157 : vector<16x32xf32>
    %159 = arith.addf %146, %149 : vector<16x32xf32>
    %160 = arith.addf %152, %155 : vector<16x32xf32>
    %161 = arith.addf %159, %160 : vector<16x32xf32>
    %162 = arith.addf %161, %158 : vector<16x32xf32>
    %163 = vector.extract_strided_slice %25 {offsets = [0, 320], sizes = [16, 32], strides = [1, 1]} : vector<16x1280xf32> to vector<16x32xf32>
    %164 = arith.mulf %163, %162 : vector<16x32xf32>
    %165 = vector.extract_strided_slice %25 {offsets = [0, 352], sizes = [16, 32], strides = [1, 1]} : vector<16x1280xf32> to vector<16x32xf32>
    %c15_i32_52 = arith.constant 15 : i32
    %166 = tpu.dynamic_rotate %162 by %c15_i32_52 dim 0 : vector<16x32xf32>, i32 -> vector<16x32xf32>
    %167 = arith.mulf %165, %166 : vector<16x32xf32>
    %168 = vector.extract_strided_slice %25 {offsets = [0, 384], sizes = [16, 32], strides = [1, 1]} : vector<16x1280xf32> to vector<16x32xf32>
    %c14_i32_53 = arith.constant 14 : i32
    %169 = tpu.dynamic_rotate %162 by %c14_i32_53 dim 0 : vector<16x32xf32>, i32 -> vector<16x32xf32>
    %170 = arith.mulf %168, %169 : vector<16x32xf32>
    %171 = vector.extract_strided_slice %25 {offsets = [0, 416], sizes = [16, 32], strides = [1, 1]} : vector<16x1280xf32> to vector<16x32xf32>
    %c12_i32_54 = arith.constant 12 : i32
    %172 = tpu.dynamic_rotate %162 by %c12_i32_54 dim 0 : vector<16x32xf32>, i32 -> vector<16x32xf32>
    %173 = arith.mulf %171, %172 : vector<16x32xf32>
    %174 = vector.extract_strided_slice %25 {offsets = [0, 448], sizes = [16, 32], strides = [1, 1]} : vector<16x1280xf32> to vector<16x32xf32>
    %c8_i32_55 = arith.constant 8 : i32
    %175 = tpu.dynamic_rotate %162 by %c8_i32_55 dim 0 : vector<16x32xf32>, i32 -> vector<16x32xf32>
    %176 = arith.mulf %174, %175 : vector<16x32xf32>
    %177 = arith.addf %164, %167 : vector<16x32xf32>
    %178 = arith.addf %170, %173 : vector<16x32xf32>
    %179 = arith.addf %177, %178 : vector<16x32xf32>
    %180 = arith.addf %179, %176 : vector<16x32xf32>
    %181 = vector.extract_strided_slice %25 {offsets = [0, 480], sizes = [16, 32], strides = [1, 1]} : vector<16x1280xf32> to vector<16x32xf32>
    %182 = arith.mulf %181, %180 : vector<16x32xf32>
    %183 = vector.extract_strided_slice %25 {offsets = [0, 512], sizes = [16, 32], strides = [1, 1]} : vector<16x1280xf32> to vector<16x32xf32>
    %c15_i32_56 = arith.constant 15 : i32
    %184 = tpu.dynamic_rotate %180 by %c15_i32_56 dim 0 : vector<16x32xf32>, i32 -> vector<16x32xf32>
    %185 = arith.mulf %183, %184 : vector<16x32xf32>
    %186 = vector.extract_strided_slice %25 {offsets = [0, 544], sizes = [16, 32], strides = [1, 1]} : vector<16x1280xf32> to vector<16x32xf32>
    %c14_i32_57 = arith.constant 14 : i32
    %187 = tpu.dynamic_rotate %180 by %c14_i32_57 dim 0 : vector<16x32xf32>, i32 -> vector<16x32xf32>
    %188 = arith.mulf %186, %187 : vector<16x32xf32>
    %189 = vector.extract_strided_slice %25 {offsets = [0, 576], sizes = [16, 32], strides = [1, 1]} : vector<16x1280xf32> to vector<16x32xf32>
    %c12_i32_58 = arith.constant 12 : i32
    %190 = tpu.dynamic_rotate %180 by %c12_i32_58 dim 0 : vector<16x32xf32>, i32 -> vector<16x32xf32>
    %191 = arith.mulf %189, %190 : vector<16x32xf32>
    %192 = vector.extract_strided_slice %25 {offsets = [0, 608], sizes = [16, 32], strides = [1, 1]} : vector<16x1280xf32> to vector<16x32xf32>
    %c8_i32_59 = arith.constant 8 : i32
    %193 = tpu.dynamic_rotate %180 by %c8_i32_59 dim 0 : vector<16x32xf32>, i32 -> vector<16x32xf32>
    %194 = arith.mulf %192, %193 : vector<16x32xf32>
    %195 = arith.addf %182, %185 : vector<16x32xf32>
    %196 = arith.addf %188, %191 : vector<16x32xf32>
    %197 = arith.addf %195, %196 : vector<16x32xf32>
    %198 = arith.addf %197, %194 : vector<16x32xf32>
    %199 = tpu.concatenate %125, %198 in 0 : vector<16x32xf32>, vector<16x32xf32> -> vector<32x32xf32>
    %c1 = arith.constant 1 : index
    %c0_60 = arith.constant 0 : index
    %c0_61 = arith.constant 0 : index
    %200 = vector.load %arg2[%c1, %c0_60, %c0_61] : memref<2x32x32xf32, #tpu.memory_space<vmem>>, vector<1x32x32xf32>
    %201 = vector.shape_cast %200 : vector<1x32x32xf32> to vector<32x32xf32>
    %cst_62 = arith.constant dense<0.000000e+00> : vector<32x32xf32>
    %202 = tpu.matmul %199, %201, %cst_62 {dimension_numbers = #tpu.dot_dimension_numbers<[1], [0], [0], [1], [0, 0, 1, 1], [], []>} : vector<32x32xf32>, vector<32x32xf32>, vector<32x32xf32> -> vector<32x32xf32>
    %c1_63 = arith.constant 1 : index
    %c0_64 = arith.constant 0 : index
    %c0_65 = arith.constant 0 : index
    %203 = vector.load %arg3[%c1_63, %c0_64, %c0_65] : memref<2x1x32xf32, #tpu.memory_space<vmem>>, vector<1x1x32xf32>
    %204 = vector.shape_cast %203 : vector<1x1x32xf32> to vector<1x32xf32>
    %205 = vector.broadcast %204 : vector<1x32xf32> to vector<32x32xf32>
    %206 = arith.addf %202, %205 : vector<32x32xf32>
    %cst_66 = arith.constant 5.000000e-01 : f32
    %207 = vector.broadcast %cst_66 : f32 to vector<32x32xf32>
    %208 = arith.mulf %207, %206 : vector<32x32xf32>
    %cst_67 = arith.constant 4.471500e-02 : f32
    %209 = vector.broadcast %cst_67 : f32 to vector<32x32xf32>
    %210 = arith.mulf %209, %206 : vector<32x32xf32>
    %211 = arith.mulf %210, %206 : vector<32x32xf32>
    %212 = arith.mulf %211, %206 : vector<32x32xf32>
    %213 = arith.addf %206, %212 : vector<32x32xf32>
    %cst_68 = arith.constant 0.797884583 : f32
    %214 = vector.broadcast %cst_68 : f32 to vector<32x32xf32>
    %215 = arith.mulf %214, %213 : vector<32x32xf32>
    %216 = math.tanh %215 : vector<32x32xf32>
    %cst_69 = arith.constant 1.000000e+00 : f32
    %217 = vector.broadcast %cst_69 : f32 to vector<32x32xf32>
    %218 = arith.addf %217, %216 : vector<32x32xf32>
    %219 = arith.mulf %208, %218 : vector<32x32xf32>
    %c1_70 = arith.constant 1 : index
    %c0_71 = arith.constant 0 : index
    %c0_72 = arith.constant 0 : index
    %220 = vector.load %arg4[%c1_70, %c0_71, %c0_72] : memref<2x32x32xf32, #tpu.memory_space<vmem>>, vector<1x32x32xf32>
    %221 = vector.shape_cast %220 : vector<1x32x32xf32> to vector<32x32xf32>
    %cst_73 = arith.constant dense<0.000000e+00> : vector<32x32xf32>
    %222 = tpu.matmul %219, %221, %cst_73 {dimension_numbers = #tpu.dot_dimension_numbers<[1], [0], [0], [1], [0, 0, 1, 1], [], []>} : vector<32x32xf32>, vector<32x32xf32>, vector<32x32xf32> -> vector<32x32xf32>
    %c1_74 = arith.constant 1 : index
    %c0_75 = arith.constant 0 : index
    %c0_76 = arith.constant 0 : index
    %223 = vector.load %arg5[%c1_74, %c0_75, %c0_76] : memref<2x1x32xf32, #tpu.memory_space<vmem>>, vector<1x1x32xf32>
    %224 = vector.shape_cast %223 : vector<1x1x32xf32> to vector<1x32xf32>
    %225 = vector.broadcast %224 : vector<1x32xf32> to vector<32x32xf32>
    %226 = arith.addf %222, %225 : vector<32x32xf32>
    %227 = vector.extract_strided_slice %226 {offsets = [0, 0], sizes = [16, 32], strides = [1, 1]} : vector<32x32xf32> to vector<16x32xf32>
    %228 = vector.extract_strided_slice %24 {offsets = [0, 640], sizes = [16, 32], strides = [1, 1]} : vector<16x1280xf32> to vector<16x32xf32>
    %229 = arith.mulf %228, %227 : vector<16x32xf32>
    %230 = vector.extract_strided_slice %24 {offsets = [0, 672], sizes = [16, 32], strides = [1, 1]} : vector<16x1280xf32> to vector<16x32xf32>
    %c15_i32_77 = arith.constant 15 : i32
    %231 = tpu.dynamic_rotate %227 by %c15_i32_77 dim 0 : vector<16x32xf32>, i32 -> vector<16x32xf32>
    %232 = arith.mulf %230, %231 : vector<16x32xf32>
    %233 = vector.extract_strided_slice %24 {offsets = [0, 704], sizes = [16, 32], strides = [1, 1]} : vector<16x1280xf32> to vector<16x32xf32>
    %c14_i32_78 = arith.constant 14 : i32
    %234 = tpu.dynamic_rotate %227 by %c14_i32_78 dim 0 : vector<16x32xf32>, i32 -> vector<16x32xf32>
    %235 = arith.mulf %233, %234 : vector<16x32xf32>
    %236 = vector.extract_strided_slice %24 {offsets = [0, 736], sizes = [16, 32], strides = [1, 1]} : vector<16x1280xf32> to vector<16x32xf32>
    %c12_i32_79 = arith.constant 12 : i32
    %237 = tpu.dynamic_rotate %227 by %c12_i32_79 dim 0 : vector<16x32xf32>, i32 -> vector<16x32xf32>
    %238 = arith.mulf %236, %237 : vector<16x32xf32>
    %239 = vector.extract_strided_slice %24 {offsets = [0, 768], sizes = [16, 32], strides = [1, 1]} : vector<16x1280xf32> to vector<16x32xf32>
    %c8_i32_80 = arith.constant 8 : i32
    %240 = tpu.dynamic_rotate %227 by %c8_i32_80 dim 0 : vector<16x32xf32>, i32 -> vector<16x32xf32>
    %241 = arith.mulf %239, %240 : vector<16x32xf32>
    %242 = arith.addf %229, %232 : vector<16x32xf32>
    %243 = arith.addf %235, %238 : vector<16x32xf32>
    %244 = arith.addf %242, %243 : vector<16x32xf32>
    %245 = arith.addf %244, %241 : vector<16x32xf32>
    %246 = vector.extract_strided_slice %24 {offsets = [0, 800], sizes = [16, 32], strides = [1, 1]} : vector<16x1280xf32> to vector<16x32xf32>
    %247 = arith.mulf %246, %245 : vector<16x32xf32>
    %248 = vector.extract_strided_slice %24 {offsets = [0, 832], sizes = [16, 32], strides = [1, 1]} : vector<16x1280xf32> to vector<16x32xf32>
    %c15_i32_81 = arith.constant 15 : i32
    %249 = tpu.dynamic_rotate %245 by %c15_i32_81 dim 0 : vector<16x32xf32>, i32 -> vector<16x32xf32>
    %250 = arith.mulf %248, %249 : vector<16x32xf32>
    %251 = vector.extract_strided_slice %24 {offsets = [0, 864], sizes = [16, 32], strides = [1, 1]} : vector<16x1280xf32> to vector<16x32xf32>
    %c14_i32_82 = arith.constant 14 : i32
    %252 = tpu.dynamic_rotate %245 by %c14_i32_82 dim 0 : vector<16x32xf32>, i32 -> vector<16x32xf32>
    %253 = arith.mulf %251, %252 : vector<16x32xf32>
    %254 = vector.extract_strided_slice %24 {offsets = [0, 896], sizes = [16, 32], strides = [1, 1]} : vector<16x1280xf32> to vector<16x32xf32>
    %c12_i32_83 = arith.constant 12 : i32
    %255 = tpu.dynamic_rotate %245 by %c12_i32_83 dim 0 : vector<16x32xf32>, i32 -> vector<16x32xf32>
    %256 = arith.mulf %254, %255 : vector<16x32xf32>
    %257 = vector.extract_strided_slice %24 {offsets = [0, 928], sizes = [16, 32], strides = [1, 1]} : vector<16x1280xf32> to vector<16x32xf32>
    %c8_i32_84 = arith.constant 8 : i32
    %258 = tpu.dynamic_rotate %245 by %c8_i32_84 dim 0 : vector<16x32xf32>, i32 -> vector<16x32xf32>
    %259 = arith.mulf %257, %258 : vector<16x32xf32>
    %260 = arith.addf %247, %250 : vector<16x32xf32>
    %261 = arith.addf %253, %256 : vector<16x32xf32>
    %262 = arith.addf %260, %261 : vector<16x32xf32>
    %263 = arith.addf %262, %259 : vector<16x32xf32>
    %264 = vector.extract_strided_slice %24 {offsets = [0, 960], sizes = [16, 32], strides = [1, 1]} : vector<16x1280xf32> to vector<16x32xf32>
    %265 = arith.mulf %264, %263 : vector<16x32xf32>
    %266 = vector.extract_strided_slice %24 {offsets = [0, 992], sizes = [16, 32], strides = [1, 1]} : vector<16x1280xf32> to vector<16x32xf32>
    %c15_i32_85 = arith.constant 15 : i32
    %267 = tpu.dynamic_rotate %263 by %c15_i32_85 dim 0 : vector<16x32xf32>, i32 -> vector<16x32xf32>
    %268 = arith.mulf %266, %267 : vector<16x32xf32>
    %269 = vector.extract_strided_slice %24 {offsets = [0, 1024], sizes = [16, 32], strides = [1, 1]} : vector<16x1280xf32> to vector<16x32xf32>
    %c14_i32_86 = arith.constant 14 : i32
    %270 = tpu.dynamic_rotate %263 by %c14_i32_86 dim 0 : vector<16x32xf32>, i32 -> vector<16x32xf32>
    %271 = arith.mulf %269, %270 : vector<16x32xf32>
    %272 = vector.extract_strided_slice %24 {offsets = [0, 1056], sizes = [16, 32], strides = [1, 1]} : vector<16x1280xf32> to vector<16x32xf32>
    %c12_i32_87 = arith.constant 12 : i32
    %273 = tpu.dynamic_rotate %263 by %c12_i32_87 dim 0 : vector<16x32xf32>, i32 -> vector<16x32xf32>
    %274 = arith.mulf %272, %273 : vector<16x32xf32>
    %275 = vector.extract_strided_slice %24 {offsets = [0, 1088], sizes = [16, 32], strides = [1, 1]} : vector<16x1280xf32> to vector<16x32xf32>
    %c8_i32_88 = arith.constant 8 : i32
    %276 = tpu.dynamic_rotate %263 by %c8_i32_88 dim 0 : vector<16x32xf32>, i32 -> vector<16x32xf32>
    %277 = arith.mulf %275, %276 : vector<16x32xf32>
    %278 = arith.addf %265, %268 : vector<16x32xf32>
    %279 = arith.addf %271, %274 : vector<16x32xf32>
    %280 = arith.addf %278, %279 : vector<16x32xf32>
    %281 = arith.addf %280, %277 : vector<16x32xf32>
    %282 = vector.extract_strided_slice %24 {offsets = [0, 1120], sizes = [16, 32], strides = [1, 1]} : vector<16x1280xf32> to vector<16x32xf32>
    %283 = arith.mulf %282, %281 : vector<16x32xf32>
    %284 = vector.extract_strided_slice %24 {offsets = [0, 1152], sizes = [16, 32], strides = [1, 1]} : vector<16x1280xf32> to vector<16x32xf32>
    %c15_i32_89 = arith.constant 15 : i32
    %285 = tpu.dynamic_rotate %281 by %c15_i32_89 dim 0 : vector<16x32xf32>, i32 -> vector<16x32xf32>
    %286 = arith.mulf %284, %285 : vector<16x32xf32>
    %287 = vector.extract_strided_slice %24 {offsets = [0, 1184], sizes = [16, 32], strides = [1, 1]} : vector<16x1280xf32> to vector<16x32xf32>
    %c14_i32_90 = arith.constant 14 : i32
    %288 = tpu.dynamic_rotate %281 by %c14_i32_90 dim 0 : vector<16x32xf32>, i32 -> vector<16x32xf32>
    %289 = arith.mulf %287, %288 : vector<16x32xf32>
    %290 = vector.extract_strided_slice %24 {offsets = [0, 1216], sizes = [16, 32], strides = [1, 1]} : vector<16x1280xf32> to vector<16x32xf32>
    %c12_i32_91 = arith.constant 12 : i32
    %291 = tpu.dynamic_rotate %281 by %c12_i32_91 dim 0 : vector<16x32xf32>, i32 -> vector<16x32xf32>
    %292 = arith.mulf %290, %291 : vector<16x32xf32>
    %293 = vector.extract_strided_slice %24 {offsets = [0, 1248], sizes = [16, 32], strides = [1, 1]} : vector<16x1280xf32> to vector<16x32xf32>
    %c8_i32_92 = arith.constant 8 : i32
    %294 = tpu.dynamic_rotate %281 by %c8_i32_92 dim 0 : vector<16x32xf32>, i32 -> vector<16x32xf32>
    %295 = arith.mulf %293, %294 : vector<16x32xf32>
    %296 = arith.addf %283, %286 : vector<16x32xf32>
    %297 = arith.addf %289, %292 : vector<16x32xf32>
    %298 = arith.addf %296, %297 : vector<16x32xf32>
    %299 = arith.addf %298, %295 : vector<16x32xf32>
    %300 = vector.extract_strided_slice %226 {offsets = [16, 0], sizes = [16, 32], strides = [1, 1]} : vector<32x32xf32> to vector<16x32xf32>
    %301 = vector.extract_strided_slice %25 {offsets = [0, 640], sizes = [16, 32], strides = [1, 1]} : vector<16x1280xf32> to vector<16x32xf32>
    %302 = arith.mulf %301, %300 : vector<16x32xf32>
    %303 = vector.extract_strided_slice %25 {offsets = [0, 672], sizes = [16, 32], strides = [1, 1]} : vector<16x1280xf32> to vector<16x32xf32>
    %c15_i32_93 = arith.constant 15 : i32
    %304 = tpu.dynamic_rotate %300 by %c15_i32_93 dim 0 : vector<16x32xf32>, i32 -> vector<16x32xf32>
    %305 = arith.mulf %303, %304 : vector<16x32xf32>
    %306 = vector.extract_strided_slice %25 {offsets = [0, 704], sizes = [16, 32], strides = [1, 1]} : vector<16x1280xf32> to vector<16x32xf32>
    %c14_i32_94 = arith.constant 14 : i32
    %307 = tpu.dynamic_rotate %300 by %c14_i32_94 dim 0 : vector<16x32xf32>, i32 -> vector<16x32xf32>
    %308 = arith.mulf %306, %307 : vector<16x32xf32>
    %309 = vector.extract_strided_slice %25 {offsets = [0, 736], sizes = [16, 32], strides = [1, 1]} : vector<16x1280xf32> to vector<16x32xf32>
    %c12_i32_95 = arith.constant 12 : i32
    %310 = tpu.dynamic_rotate %300 by %c12_i32_95 dim 0 : vector<16x32xf32>, i32 -> vector<16x32xf32>
    %311 = arith.mulf %309, %310 : vector<16x32xf32>
    %312 = vector.extract_strided_slice %25 {offsets = [0, 768], sizes = [16, 32], strides = [1, 1]} : vector<16x1280xf32> to vector<16x32xf32>
    %c8_i32_96 = arith.constant 8 : i32
    %313 = tpu.dynamic_rotate %300 by %c8_i32_96 dim 0 : vector<16x32xf32>, i32 -> vector<16x32xf32>
    %314 = arith.mulf %312, %313 : vector<16x32xf32>
    %315 = arith.addf %302, %305 : vector<16x32xf32>
    %316 = arith.addf %308, %311 : vector<16x32xf32>
    %317 = arith.addf %315, %316 : vector<16x32xf32>
    %318 = arith.addf %317, %314 : vector<16x32xf32>
    %319 = vector.extract_strided_slice %25 {offsets = [0, 800], sizes = [16, 32], strides = [1, 1]} : vector<16x1280xf32> to vector<16x32xf32>
    %320 = arith.mulf %319, %318 : vector<16x32xf32>
    %321 = vector.extract_strided_slice %25 {offsets = [0, 832], sizes = [16, 32], strides = [1, 1]} : vector<16x1280xf32> to vector<16x32xf32>
    %c15_i32_97 = arith.constant 15 : i32
    %322 = tpu.dynamic_rotate %318 by %c15_i32_97 dim 0 : vector<16x32xf32>, i32 -> vector<16x32xf32>
    %323 = arith.mulf %321, %322 : vector<16x32xf32>
    %324 = vector.extract_strided_slice %25 {offsets = [0, 864], sizes = [16, 32], strides = [1, 1]} : vector<16x1280xf32> to vector<16x32xf32>
    %c14_i32_98 = arith.constant 14 : i32
    %325 = tpu.dynamic_rotate %318 by %c14_i32_98 dim 0 : vector<16x32xf32>, i32 -> vector<16x32xf32>
    %326 = arith.mulf %324, %325 : vector<16x32xf32>
    %327 = vector.extract_strided_slice %25 {offsets = [0, 896], sizes = [16, 32], strides = [1, 1]} : vector<16x1280xf32> to vector<16x32xf32>
    %c12_i32_99 = arith.constant 12 : i32
    %328 = tpu.dynamic_rotate %318 by %c12_i32_99 dim 0 : vector<16x32xf32>, i32 -> vector<16x32xf32>
    %329 = arith.mulf %327, %328 : vector<16x32xf32>
    %330 = vector.extract_strided_slice %25 {offsets = [0, 928], sizes = [16, 32], strides = [1, 1]} : vector<16x1280xf32> to vector<16x32xf32>
    %c8_i32_100 = arith.constant 8 : i32
    %331 = tpu.dynamic_rotate %318 by %c8_i32_100 dim 0 : vector<16x32xf32>, i32 -> vector<16x32xf32>
    %332 = arith.mulf %330, %331 : vector<16x32xf32>
    %333 = arith.addf %320, %323 : vector<16x32xf32>
    %334 = arith.addf %326, %329 : vector<16x32xf32>
    %335 = arith.addf %333, %334 : vector<16x32xf32>
    %336 = arith.addf %335, %332 : vector<16x32xf32>
    %337 = vector.extract_strided_slice %25 {offsets = [0, 960], sizes = [16, 32], strides = [1, 1]} : vector<16x1280xf32> to vector<16x32xf32>
    %338 = arith.mulf %337, %336 : vector<16x32xf32>
    %339 = vector.extract_strided_slice %25 {offsets = [0, 992], sizes = [16, 32], strides = [1, 1]} : vector<16x1280xf32> to vector<16x32xf32>
    %c15_i32_101 = arith.constant 15 : i32
    %340 = tpu.dynamic_rotate %336 by %c15_i32_101 dim 0 : vector<16x32xf32>, i32 -> vector<16x32xf32>
    %341 = arith.mulf %339, %340 : vector<16x32xf32>
    %342 = vector.extract_strided_slice %25 {offsets = [0, 1024], sizes = [16, 32], strides = [1, 1]} : vector<16x1280xf32> to vector<16x32xf32>
    %c14_i32_102 = arith.constant 14 : i32
    %343 = tpu.dynamic_rotate %336 by %c14_i32_102 dim 0 : vector<16x32xf32>, i32 -> vector<16x32xf32>
    %344 = arith.mulf %342, %343 : vector<16x32xf32>
    %345 = vector.extract_strided_slice %25 {offsets = [0, 1056], sizes = [16, 32], strides = [1, 1]} : vector<16x1280xf32> to vector<16x32xf32>
    %c12_i32_103 = arith.constant 12 : i32
    %346 = tpu.dynamic_rotate %336 by %c12_i32_103 dim 0 : vector<16x32xf32>, i32 -> vector<16x32xf32>
    %347 = arith.mulf %345, %346 : vector<16x32xf32>
    %348 = vector.extract_strided_slice %25 {offsets = [0, 1088], sizes = [16, 32], strides = [1, 1]} : vector<16x1280xf32> to vector<16x32xf32>
    %c8_i32_104 = arith.constant 8 : i32
    %349 = tpu.dynamic_rotate %336 by %c8_i32_104 dim 0 : vector<16x32xf32>, i32 -> vector<16x32xf32>
    %350 = arith.mulf %348, %349 : vector<16x32xf32>
    %351 = arith.addf %338, %341 : vector<16x32xf32>
    %352 = arith.addf %344, %347 : vector<16x32xf32>
    %353 = arith.addf %351, %352 : vector<16x32xf32>
    %354 = arith.addf %353, %350 : vector<16x32xf32>
    %355 = vector.extract_strided_slice %25 {offsets = [0, 1120], sizes = [16, 32], strides = [1, 1]} : vector<16x1280xf32> to vector<16x32xf32>
    %356 = arith.mulf %355, %354 : vector<16x32xf32>
    %357 = vector.extract_strided_slice %25 {offsets = [0, 1152], sizes = [16, 32], strides = [1, 1]} : vector<16x1280xf32> to vector<16x32xf32>
    %c15_i32_105 = arith.constant 15 : i32
    %358 = tpu.dynamic_rotate %354 by %c15_i32_105 dim 0 : vector<16x32xf32>, i32 -> vector<16x32xf32>
    %359 = arith.mulf %357, %358 : vector<16x32xf32>
    %360 = vector.extract_strided_slice %25 {offsets = [0, 1184], sizes = [16, 32], strides = [1, 1]} : vector<16x1280xf32> to vector<16x32xf32>
    %c14_i32_106 = arith.constant 14 : i32
    %361 = tpu.dynamic_rotate %354 by %c14_i32_106 dim 0 : vector<16x32xf32>, i32 -> vector<16x32xf32>
    %362 = arith.mulf %360, %361 : vector<16x32xf32>
    %363 = vector.extract_strided_slice %25 {offsets = [0, 1216], sizes = [16, 32], strides = [1, 1]} : vector<16x1280xf32> to vector<16x32xf32>
    %c12_i32_107 = arith.constant 12 : i32
    %364 = tpu.dynamic_rotate %354 by %c12_i32_107 dim 0 : vector<16x32xf32>, i32 -> vector<16x32xf32>
    %365 = arith.mulf %363, %364 : vector<16x32xf32>
    %366 = vector.extract_strided_slice %25 {offsets = [0, 1248], sizes = [16, 32], strides = [1, 1]} : vector<16x1280xf32> to vector<16x32xf32>
    %c8_i32_108 = arith.constant 8 : i32
    %367 = tpu.dynamic_rotate %354 by %c8_i32_108 dim 0 : vector<16x32xf32>, i32 -> vector<16x32xf32>
    %368 = arith.mulf %366, %367 : vector<16x32xf32>
    %369 = arith.addf %356, %359 : vector<16x32xf32>
    %370 = arith.addf %362, %365 : vector<16x32xf32>
    %371 = arith.addf %369, %370 : vector<16x32xf32>
    %372 = arith.addf %371, %368 : vector<16x32xf32>
    %373 = tpu.concatenate %299, %372 in 0 : vector<16x32xf32>, vector<16x32xf32> -> vector<32x32xf32>
    %c0_109 = arith.constant 0 : index
    %c0_110 = arith.constant 0 : index
    %374 = vector.load %arg10[%c0_109, %c0_110] : memref<32x32xf32, #tpu.memory_space<vmem>>, vector<32x32xf32>
    tpu.vector_store %arg10[%c0_109, %c0_110], %373 {strides = array<i32>} : memref<32x32xf32, #tpu.memory_space<vmem>>, vector<32x32xf32>,
    return
  }
  func.func @transform_0(%arg0: i32) -> (i32, i32) {
    %c0_i32 = arith.constant 0 : i32
    %c0_i32_0 = arith.constant 0 : i32
    %c0_i32_1 = arith.constant 0 : i32
    return %c0_i32, %c0_i32_0 : i32, i32
  }
  func.func @transform_1(%arg0: i32) -> (i32, i32, i32) {
    %c0_i32 = arith.constant 0 : i32
    %c0_i32_0 = arith.constant 0 : i32
    %c0_i32_1 = arith.constant 0 : i32
    %c0_i32_2 = arith.constant 0 : i32
    return %c0_i32, %c0_i32_0, %c0_i32_1 : i32, i32, i32
  }
  func.func @transform_2(%arg0: i32) -> (i32, i32, i32) {
    %c0_i32 = arith.constant 0 : i32
    %c0_i32_0 = arith.constant 0 : i32
    %c0_i32_1 = arith.constant 0 : i32
    %c0_i32_2 = arith.constant 0 : i32
    return %c0_i32, %c0_i32_0, %c0_i32_1 : i32, i32, i32
  }
  func.func @transform_3(%arg0: i32) -> (i32, i32, i32) {
    %c0_i32 = arith.constant 0 : i32
    %c0_i32_0 = arith.constant 0 : i32
    %c0_i32_1 = arith.constant 0 : i32
    %c0_i32_2 = arith.constant 0 : i32
    return %c0_i32, %c0_i32_0, %c0_i32_1 : i32, i32, i32
  }
  func.func @transform_4(%arg0: i32) -> (i32, i32, i32) {
    %c0_i32 = arith.constant 0 : i32
    %c0_i32_0 = arith.constant 0 : i32
    %c0_i32_1 = arith.constant 0 : i32
    %c0_i32_2 = arith.constant 0 : i32
    return %c0_i32, %c0_i32_0, %c0_i32_1 : i32, i32, i32
  }
  func.func @transform_5(%arg0: i32) -> (i32, i32) {
    %c0_i32 = arith.constant 0 : i32
    %c0_i32_0 = arith.constant 0 : i32
    %c0_i32_1 = arith.constant 0 : i32
    return %c0_i32, %c0_i32_0 : i32, i32
  }
  func.func @transform_6(%arg0: i32) -> (i32, i32) {
    %c0_i32 = arith.constant 0 : i32
    %c0_i32_0 = arith.constant 0 : i32
    %c0_i32_1 = arith.constant 0 : i32
    return %c0_i32, %c0_i32_0 : i32, i32
  }
  func.func @transform_7(%arg0: i32) -> (i32, i32) {
    %c0_i32 = arith.constant 0 : i32
    %c0_i32_0 = arith.constant 0 : i32
    %c0_i32_1 = arith.constant 0 : i32
    return %c0_i32, %c0_i32_0 : i32, i32
  }
  func.func @transform_8(%arg0: i32) -> (i32, i32) {
    %c0_i32 = arith.constant 0 : i32
    %c0_i32_0 = arith.constant 0 : i32
    %c0_i32_1 = arith.constant 0 : i32
    return %c0_i32, %c0_i32_0 : i32, i32
  }
  func.func @transform_9(%arg0: i32) -> (i32, i32) {
    %c0_i32 = arith.constant 0 : i32
    %c0_i32_0 = arith.constant 0 : i32
    %c0_i32_1 = arith.constant 0 : i32
    return %c0_i32, %c0_i32_0 : i32, i32
  }
}

</mosaic_0001>

<bundles_post_ra>
// kernel: tpu_custom_call.1
= control target key start
LH: loop header
LB: loop body
LE: loop exit
PB: predicated region body
PF: predicated region fallthrough
CT: control target
= control target key end

     0   :  { %14 = vsyncpa [#allocation3], 0  ;;  %s4468_s0 = inlined_call_operand.hbm [shape: f32[32,32], index: 0, kind: input, shape index: {}]   ;;  %s4469_s1 = inlined_call_operand.hbm [shape: f32[2,32,32], index: 1, kind: input, shape index: {}]   ;;  %s4470_s2 = inlined_call_operand.hbm [shape: f32[2,1,32], index: 2, kind: input, shape index: {}]   ;;  %s4471_s3 = inlined_call_operand.hbm [shape: f32[2,32,32], index: 3, kind: input, shape index: {}]   ;;  %s4472_s4 = inlined_call_operand.hbm [shape: f32[2,1,32], index: 4, kind: input, shape index: {}]   ;;  %s4473_s5 = inlined_call_operand.hbm [shape: f32[32,256], index: 5, kind: input, shape index: {}]   ;;  %s4474_s6 = inlined_call_operand.hbm [shape: f32[1,256], index: 6, kind: input, shape index: {}]   ;;  %s4475_s7 = inlined_call_operand.hbm [shape: f32[256,1280], index: 7, kind: input, shape index: {}]   ;;  %s4476_s8 = inlined_call_operand.hbm [shape: f32[1,1280], index: 8, kind: input, shape index: {}]   ;;  %s4477_s9 = inlined_call_operand.hbm [shape: f32[32,32], index: 9, kind: output, shape index: {}]  }
   0x1   :  { %15 = vsyncpa [#allocation6], 0 }
   0x2   :  { %16 = vsyncpa [#allocation9], 0 }
   0x3   :  { %17 = vsyncpa [#allocation12], 0 }
   0x4   :  { %18 = vsyncpa [#allocation15], 0 }
   0x5   :  { %19 = vsyncpa [#allocation4], 0  ;;  %s37_s11 = sshll.u32 %s4469_s1, 4  ;;  %s3251_s12 = smov [#allocation5]   ;;  %s38_s11 = int_to_ptr.hbm [resolvable:$true] %s37_s11 }
   0x6   :  { %s39_s13 = sshll.u32 %s3251_s12, 4  ;;  %s63_s16 = sshll.u32 %s4471_s3, 4  ;;  %s40_s13 = int_to_ptr.vmem [resolvable:$true] %s39_s13  ;;  %s64_s16 = int_to_ptr.hbm [resolvable:$true] %s63_s16 }
   0x7   :  { %s3252_s17 = smov 128   ;;  %s3253_s18 = smov 8  }
   0x8   :  { %45 = dma.hbm_to_vmem [thread:$0]  %s38_s11, 1024, %s40_s13, [#allocation6], %s3252_s17, %s3252_s17, %s3253_s18  }
   0x9   :  { %s3254_s19 = smov [#allocation8]   ;;  %s89_s22 = sshll.u32 %s4473_s5, 4  ;;  %s90_s22 = int_to_ptr.hbm [resolvable:$true] %s89_s22 }
   0xa   :  { %s65_s20 = sshll.u32 %s3254_s19, 4  ;;  %s3255_s3 = smov [#allocation11]   ;;  %s66_s20 = int_to_ptr.vmem [resolvable:$true] %s65_s20 }
   0xb   :  { %71 = dma.hbm_to_vmem [thread:$0]  %s64_s16, 1024, %s66_s20, [#allocation9], %s3252_s17, %s3252_s17, %s3253_s18  }
   0xc   :  { %s91_s23 = sshll.u32 %s3255_s3, 4  ;;  %s113_s26 = sshll.u32 %s4475_s7, 4  ;;  %s92_s23 = int_to_ptr.vmem [resolvable:$true] %s91_s23  ;;  %s114_s26 = int_to_ptr.hbm [resolvable:$true] %s113_s26 }
   0xd   :  { %s3256_s27 = smov 256   ;;  %s3257_s28 = smov 16  }
   0xe   :  { %97 = dma.hbm_to_vmem [thread:$0]  %s90_s22, 1024, %s92_s23, [#allocation12], %s3256_s27, %s3256_s27, %s3257_s28  }
   0xf   :  { %s3258_s29 = smov [#allocation14]   ;;  %s3259_s5 = smov 1280  }
  0x10   :  { %s115_s30 = sshll.u32 %s3258_s29, 4  ;;  %s3260_s10 = smov 80   ;;  %s116_s30 = int_to_ptr.vmem [resolvable:$true] %s115_s30 }
  0x11   :  { %121 = dma.hbm_to_vmem [thread:$0]  %s114_s26, 40960, %s116_s30, [#allocation15], %s3259_s5, %s3259_s5, %s3260_s10  }
  0x12   :  { %s24_s13 = sshll.u32 %s4468_s0, 4  ;;  %s3261_s14 = smov [#allocation2]   ;;  %s25_s13 = int_to_ptr.hbm [resolvable:$true] %s24_s13 }
  0x13   :  { %s26_s15 = sshll.u32 %s3261_s14, 4  ;;  %s50_s19 = sshll.u32 %s4470_s2, 4  ;;  %s27_s15 = int_to_ptr.vmem [resolvable:$true] %s26_s15  ;;  %s51_s19 = int_to_ptr.hbm [resolvable:$true] %s50_s19 }
  0x14   :  { %32 = dma.hbm_to_vmem [thread:$0]  %s25_s13, 512, %s27_s15, [#allocation3], %s3252_s17, %s3252_s17, %s3253_s18  }
  0x15   :  { %s3262_s20 = smov [#allocation7]   ;;  %s76_s0 = sshll.u32 %s4472_s4, 4  ;;  %s77_s0 = int_to_ptr.hbm [resolvable:$true] %s76_s0 }
  0x16   :  { %s52_s21 = sshll.u32 %s3262_s20, 4  ;;  %s3263_s3 = smov 1   ;;  %s53_s21 = int_to_ptr.vmem [resolvable:$true] %s52_s21 }
  0x17   :  { %58 = dma.hbm_to_vmem [thread:$0]  %s51_s19, 32, %s53_s21, [#allocation6], %s3257_s28, %s3257_s28, %s3263_s3  }
  0x18   :  { %s3264_s23 = smov [#allocation10]   ;;  %s103_s26 = sshll.u32 %s4474_s6, 4  ;;  %s104_s26 = int_to_ptr.hbm [resolvable:$true] %s103_s26 }
  0x19   :  { %s78_s24 = sshll.u32 %s3264_s23, 4  ;;  %s127_s4 = sshll.u32 %s4476_s8, 4  ;;  %s79_s24 = int_to_ptr.vmem [resolvable:$true] %s78_s24  ;;  %s128_s4 = int_to_ptr.hbm [resolvable:$true] %s127_s4 }
  0x1a   :  { %84 = dma.hbm_to_vmem [thread:$0]  %s77_s0, 32, %s79_s24, [#allocation9], %s3257_s28, %s3257_s28, %s3263_s3  }
  0x1b   :  { %s3265_s30 = smov [#allocation13]   ;;  %s3266_s10 = smov [#allocation16]  }
  0x1c   :  { %s105_s5 = sshll.u32 %s3265_s30, 4  ;;  %s129_s11 = sshll.u32 %s3266_s10, 4  ;;  %s106_s5 = int_to_ptr.vmem [resolvable:$true] %s105_s5  ;;  %s130_s11 = int_to_ptr.vmem [resolvable:$true] %s129_s11 }
  0x1d   :  { %108 = dma.hbm_to_vmem [thread:$0]  %s104_s26, 32, %s106_s5, [#allocation12]  }
  0x1e   :  { %132 = dma.hbm_to_vmem [thread:$0]  %s128_s4, 160, %s130_s11, [#allocation15]  }
  0x1f   :  { %3239 = dma.done.wait [#allocation3], 512  }
  0x20   :  { %3240 = vsyncadd [#allocation3], 4294966784 }
  0x21   :  { %3241 = dma.done.wait [#allocation6], 1056  }
  0x22   :  { %3242 = vsyncadd [#allocation6], 4294966240 }
  0x23   :  { %3243 = dma.done.wait [#allocation9], 1056  }
  0x24   :  { %3244 = vsyncadd [#allocation9], 4294966240 }
  0x25   :  { %3245 = dma.done.wait [#allocation12], 1056  }
  0x26   :  { %3246 = vsyncadd [#allocation12], 4294966240 }
  0x27   :  { %3247 = dma.done.wait [#allocation15], 41120  }
  0x28   :  { %3248 = vsyncadd [#allocation15], 4294926176  ;;  %v179_v0 = vld [vmem:[#allocation11 + $0x30] sm:$0xff]  ;;  %v177_v1 = vld [vmem:[#allocation11 + $0x20] sm:$0xff]  ;;  %vm187_vm0 = vcmask 261120   ;;  %s3267_s6 = smov 96  }
  0x29   :  { %v180_v2 = vld [vmem:[#allocation11 + $0x38] sm:$0xff]  ;;  %212 = vmatpush.msra.mxu0 %v179_v0  ;;  %v178_v3 = vld [vmem:[#allocation11 + $0x28] sm:$0xff]  ;;  %v175_v4 = vld [vmem:[#allocation11 + $0x10] sm:$0xff]  ;;  %s3268_s8 = smov 32   ;;  %s3269_s28 = smov 64  }
  0x2a   :  { %241 = vmatpush.msra.mxu1 %v180_v2  ;;  %v176_v5 = vld [vmem:[#allocation11 + $0x18] sm:$0xff]  ;;  %v173_v6 = vld [vmem:[#allocation11] sm:$0xff]  ;;  %v174_v7 = vld [vmem:[#allocation11 + $0x8] sm:$0xff]  ;;  %s3270_s12 = smov [#allocation17]   ;;  %s2897_s7 = sshll.u32 %s4477_s9, 4  ;;  %s2898_s7 = int_to_ptr.hbm [resolvable:$true] %s2897_s7 }
  0x2b   :  { %213 = vmatpush.msra.mxu0 %v177_v1  ;;  %v480_v8 = vld [vmem:[#allocation14 + $0x4b0] sm:$0xff]  ;;  %v169_v9 = vld [vmem:[#allocation2] sm:$0xff]  ;;  %v471_v13 = vld [vmem:[#allocation14 + $0x468] sm:$0xff]  ;;  %s2895_s13 = sshll.u32 %s3270_s12, 4  ;;  %s2896_s13 = int_to_ptr.vmem [resolvable:$true] %s2895_s13 }
  0x2c   :  { %242 = vmatpush.msra.mxu1 %v178_v3  ;;  %v640_v10 = vld [vmem:[#allocation14 + $0x9b0] sm:$0xff]  ;;  %674 = vmatpush.msra.mxu2 %v480_v8  ;;  %v481_v11 = vld [vmem:[#allocation14 + $0x4b8] sm:$0xff]  ;;  %v470_v12 = vld [vmem:[#allocation14 + $0x460] sm:$0xff] }
  0x2d   :  { %214 = vmatpush.msra.mxu0 %v175_v4  ;;  %703 = vmatpush.msra.mxu3 %v640_v10  ;;  %v641_v14 = vld [vmem:[#allocation14 + $0x9b8] sm:$0xff]  ;;  %v630_v15 = vld [vmem:[#allocation14 + $0x960] sm:$0xff]  ;;  %v460_v16 = vld [vmem:[#allocation14 + $0x410] sm:$0xff] }
  0x2e   :  { %243 = vmatpush.msra.mxu1 %v176_v5  ;;  %v461_v17 = vld [vmem:[#allocation14 + $0x418] sm:$0xff]  ;;  %v631_v18 = vld [vmem:[#allocation14 + $0x968] sm:$0xff]  ;;  %675 = vmatpush.msra.mxu2 %v470_v12  ;;  %v620_v19 = vld [vmem:[#allocation14 + $0x910] sm:$0xff] }
  0x2f   :  { %215 = vmatpush.msra.mxu0 %v173_v6  ;;  %704 = vmatpush.msra.mxu3 %v630_v15  ;;  %v450_v20 = vld [vmem:[#allocation14 + $0x3c0] sm:$0xff]  ;;  %v621_v21 = vld [vmem:[#allocation14 + $0x918] sm:$0xff]  ;;  %v451_v22 = vld [vmem:[#allocation14 + $0x3c8] sm:$0xff] }
  0x30   :  { %244 = vmatpush.msra.mxu1 %v174_v7  ;;  %2914 = vmatmul.msk.f32.vlgmr.msra.gmra.mxu0 %vm187_vm0, %v169_v9  ;;  %v170_v23 = vld [vmem:[#allocation2 + $0x8] sm:$0xff]  ;;  %v171_v24 = vld [vmem:[#allocation2 + $0x10] sm:$0xff]  ;;  %v172_v25 = vld [vmem:[#allocation2 + $0x18] sm:$0xff] }
  0x31   :  { %2918 = vmatmul.msk.f32.vlgmr.msra.gmra.mxu1 %vm187_vm0, %v169_v9  ;;  %732 = vmatpush.msrb.mxu0 %v481_v11  ;;  %v440_v26 = vld [vmem:[#allocation14 + $0x370] sm:$0xff]  ;;  %v610_v27 = vld [vmem:[#allocation14 + $0x8c0] sm:$0xff]  ;;  %v441_v28 = vld [vmem:[#allocation14 + $0x378] sm:$0xff] }
  0x32   :  { %761 = vmatpush.msrb.mxu1 %v641_v14  ;;  %676 = vmatpush.msra.mxu2 %v460_v16  ;;  %v611_v29 = vld [vmem:[#allocation14 + $0x8c8] sm:$0xff]  ;;  %v430_v30 = vld [vmem:[#allocation14 + $0x320] sm:$0xff]  ;;  %v600_v31 = vld [vmem:[#allocation14 + $0x870] sm:$0xff] }
  0x33   :  { %733 = vmatpush.msrb.mxu0 %v471_v13  ;;  %705 = vmatpush.msra.mxu3 %v620_v19  ;;  %v431_v32 = vld [vmem:[#allocation14 + $0x328] sm:$0xff]  ;;  %v601_v33 = vld [vmem:[#allocation14 + $0x878] sm:$0xff]  ;;  %v420_v34 = vld [vmem:[#allocation14 + $0x2d0] sm:$0xff] }
  0x34   :  { %762 = vmatpush.msrb.mxu1 %v631_v18  ;;  %677 = vmatpush.msra.mxu2 %v450_v20  ;;  %v590_v35 = vld [vmem:[#allocation14 + $0x820] sm:$0xff]  ;;  %v421_v36 = vld [vmem:[#allocation14 + $0x2d8] sm:$0xff]  ;;  %v591_v37 = vld [vmem:[#allocation14 + $0x828] sm:$0xff] }
  0x35   :  { %734 = vmatpush.msrb.mxu0 %v461_v17  ;;  %706 = vmatpush.msra.mxu3 %v610_v27  ;;  %v410_v38 = vld [vmem:[#allocation14 + $0x280] sm:$0xff]  ;;  %v580_v39 = vld [vmem:[#allocation14 + $0x7d0] sm:$0xff]  ;;  %v411_v40 = vld [vmem:[#allocation14 + $0x288] sm:$0xff] }
  0x36   :  { %763 = vmatpush.msrb.mxu1 %v621_v21  ;;  %678 = vmatpush.msra.mxu2 %v440_v26  ;;  %v581_v41 = vld [vmem:[#allocation14 + $0x7d8] sm:$0xff]  ;;  %v400_v42 = vld [vmem:[#allocation14 + $0x230] sm:$0xff]  ;;  %v570_v43 = vld [vmem:[#allocation14 + $0x780] sm:$0xff] }
  0x37   :  { %735 = vmatpush.msrb.mxu0 %v451_v22  ;;  %707 = vmatpush.msra.mxu3 %v600_v31  ;;  %v401_v44 = vld [vmem:[#allocation14 + $0x238] sm:$0xff]  ;;  %v571_v45 = vld [vmem:[#allocation14 + $0x788] sm:$0xff]  ;;  %v390_v46 = vld [vmem:[#allocation14 + $0x1e0] sm:$0xff] }
  0x38   :  { %2915 = vmatmul.msk.f32.gmra.mxu0 %vm187_vm0, %v170_v23  ;;  %764 = vmatpush.msrb.mxu1 %v611_v29  ;;  %v560_v47 = vld [vmem:[#allocation14 + $0x730] sm:$0xff]  ;;  %v391_v48 = vld [vmem:[#allocation14 + $0x1e8] sm:$0xff]  ;;  %v561_v49 = vld [vmem:[#allocation14 + $0x738] sm:$0xff] }
  0x39   :  { %2919 = vmatmul.msk.f32.gmra.mxu1 %vm187_vm0, %v170_v23  ;;  %736 = vmatpush.msrb.mxu0 %v441_v28  ;;  %v380_v50 = vld [vmem:[#allocation14 + $0x190] sm:$0xff]  ;;  %v550_v51 = vld [vmem:[#allocation14 + $0x6e0] sm:$0xff]  ;;  %v381_v52 = vld [vmem:[#allocation14 + $0x198] sm:$0xff] }
  0x3a   :  { %679 = vmatpush.msra.mxu2 %v430_v30  ;;  %765 = vmatpush.msrb.mxu1 %v601_v33  ;;  %v551_v53 = vld [vmem:[#allocation14 + $0x6e8] sm:$0xff]  ;;  %v370_v54 = vld [vmem:[#allocation14 + $0x140] sm:$0xff]  ;;  %v540_v55 = vld [vmem:[#allocation14 + $0x690] sm:$0xff] }
  0x3b   :  { %737 = vmatpush.msrb.mxu0 %v431_v32  ;;  %708 = vmatpush.msra.mxu3 %v590_v35  ;;  %v371_v56 = vld [vmem:[#allocation14 + $0x148] sm:$0xff]  ;;  %v541_v57 = vld [vmem:[#allocation14 + $0x698] sm:$0xff]  ;;  %v360_v58 = vld [vmem:[#allocation14 + $0xf0] sm:$0xff] }
  0x3c   :  { %680 = vmatpush.msra.mxu2 %v420_v34  ;;  %766 = vmatpush.msrb.mxu1 %v591_v37  ;;  %v530_v59 = vld [vmem:[#allocation14 + $0x640] sm:$0xff]  ;;  %v361_v60 = vld [vmem:[#allocation14 + $0xf8] sm:$0xff]  ;;  %v531_v61 = vld [vmem:[#allocation14 + $0x648] sm:$0xff] }
  0x3d   :  { %738 = vmatpush.msrb.mxu0 %v421_v36  ;;  %709 = vmatpush.msra.mxu3 %v580_v39  ;;  %v350_v62 = vld [vmem:[#allocation14 + $0xa0] sm:$0xff]  ;;  %v520_v63 = vld [vmem:[#allocation14 + $0x5f0] sm:$0xff]  ;;  %v351_v0 = vld [vmem:[#allocation14 + $0xa8] sm:$0xff] }
  0x3e   :  { %681 = vmatpush.msra.mxu2 %v410_v38  ;;  %767 = vmatpush.msrb.mxu1 %v581_v41  ;;  %v521_v1 = vld [vmem:[#allocation14 + $0x5f8] sm:$0xff]  ;;  %v340_v2 = vld [vmem:[#allocation14 + $0x50] sm:$0xff]  ;;  %v510_v3 = vld [vmem:[#allocation14 + $0x5a0] sm:$0xff] }
  0x3f   :  { %739 = vmatpush.msrb.mxu0 %v411_v40  ;;  %710 = vmatpush.msra.mxu3 %v570_v43  ;;  %v341_v4 = vld [vmem:[#allocation14 + $0x58] sm:$0xff]  ;;  %v511_v5 = vld [vmem:[#allocation14 + $0x5a8] sm:$0xff]  ;;  %v330_v6 = vld [vmem:[#allocation14] sm:$0xff] }
  0x40   :  { %2916 = vmatmul.msk.f32.gmra.mxu0 %vm187_vm0, %v171_v24  ;;  %682 = vmatpush.msra.mxu2 %v400_v42  ;;  %v500_v7 = vld [vmem:[#allocation14 + $0x550] sm:$0xff]  ;;  %v331_v8 = vld [vmem:[#allocation14 + $0x8] sm:$0xff]  ;;  %v501_v9 = vld [vmem:[#allocation14 + $0x558] sm:$0xff] }
  0x41   :  { %2920 = vmatmul.msk.f32.gmra.mxu1 %vm187_vm0, %v171_v24  ;;  %740 = vmatpush.msrb.mxu0 %v401_v44  ;;  %v482_v10 = vld [vmem:[#allocation14 + $0x4c0] sm:$0xff]  ;;  %v491_v12 = vld [vmem:[#allocation14 + $0x508] sm:$0xff]  ;;  %v181_v13 = vld [vmem:[#allocation13] sm:$0x3] }
  0x42   :  { %768 = vmatpush.msrb.mxu1 %v571_v45  ;;  %683 = vmatpush.msra.mxu2 %v390_v46  ;;  %v490_v11 = vld [vmem:[#allocation14 + $0x500] sm:$0xff]  ;;  %v483_v14 = vld [vmem:[#allocation14 + $0x4c8] sm:$0xff]  ;;  %v472_v15 = vld [vmem:[#allocation14 + $0x470] sm:$0xff]  ;;  %v3370_v19 = vperm.slane %v181_v13, 0  ;;  %v3372_v20 = vperm.slane %v181_v13, 1 }
  0x43   :  { %711 = vmatpush.msra.mxu3 %v560_v47  ;;  %741 = vmatpush.msrb.mxu0 %v391_v48  ;;  %v642_v16 = vld [vmem:[#allocation14 + $0x9c0] sm:$0xff]  ;;  %v473_v17 = vld [vmem:[#allocation14 + $0x478] sm:$0xff]  ;;  %v643_v18 = vld [vmem:[#allocation14 + $0x9c8] sm:$0xff] }
  0x44   :  { %769 = vmatpush.msrb.mxu1 %v561_v49  ;;  %684 = vmatpush.msra.mxu2 %v380_v50  ;;  %v462_v21 = vld [vmem:[#allocation14 + $0x420] sm:$0xff]  ;;  %v632_v22 = vld [vmem:[#allocation14 + $0x970] sm:$0xff]  ;;  %v463_v23 = vld [vmem:[#allocation14 + $0x428] sm:$0xff] }
  0x45   :  { %712 = vmatpush.msra.mxu3 %v550_v51  ;;  %742 = vmatpush.msrb.mxu0 %v381_v52  ;;  %v633_v24 = vld [vmem:[#allocation14 + $0x978] sm:$0xff]  ;;  %v622_v26 = vld [vmem:[#allocation14 + $0x920] sm:$0xff]  ;;  %v623_v30 = vld [vmem:[#allocation14 + $0x928] sm:$0xff] }
  0x46   :  { %770 = vmatpush.msrb.mxu1 %v551_v53  ;;  %685 = vmatpush.msra.mxu2 %v370_v54  ;;  %v453_v27 = vld [vmem:[#allocation14 + $0x3d8] sm:$0xff]  ;;  %v442_v33 = vld [vmem:[#allocation14 + $0x380] sm:$0xff]  ;;  %v612_v34 = vld [vmem:[#allocation14 + $0x8d0] sm:$0xff] }
  0x47   :  { %713 = vmatpush.msra.mxu3 %v540_v55  ;;  %743 = vmatpush.msrb.mxu0 %v371_v56  ;;  %v443_v35 = vld [vmem:[#allocation14 + $0x388] sm:$0xff]  ;;  %v613_v36 = vld [vmem:[#allocation14 + $0x8d8] sm:$0xff]  ;;  %v432_v39 = vld [vmem:[#allocation14 + $0x330] sm:$0xff] }
  0x48   :  { %2917 = vmatmul.msk.f32.gmra.mxu0 %vm187_vm0, %v172_v25  ;;  %771 = vmatpush.msrb.mxu1 %v541_v57  ;;  %v602_v40 = vld [vmem:[#allocation14 + $0x880] sm:$0xff]  ;;  %v433_v41 = vld [vmem:[#allocation14 + $0x338] sm:$0xff]  ;;  %v603_v44 = vld [vmem:[#allocation14 + $0x888] sm:$0xff] }
  0x49   :  { %2921 = vmatmul.msk.f32.gmra.mxu1 %vm187_vm0, %v172_v25  ;;  %686 = vmatpush.msra.mxu2 %v360_v58  ;;  %v452_v25 = vld [vmem:[#allocation14 + $0x3d0] sm:$0xff]  ;;  %v422_v45 = vld [vmem:[#allocation14 + $0x2e0] sm:$0xff]  ;;  %v423_v47 = vld [vmem:[#allocation14 + $0x2e8] sm:$0xff] }
  0x4a   :  { %714 = vmatpush.msra.mxu3 %v530_v59  ;;  %744 = vmatpush.msrb.mxu0 %v361_v60  ;;  %v592_v46 = vld [vmem:[#allocation14 + $0x830] sm:$0xff]  ;;  %v593_v48 = vld [vmem:[#allocation14 + $0x838] sm:$0xff]  ;;  %v582_v52 = vld [vmem:[#allocation14 + $0x7e0] sm:$0xff] }
  0x4b   :  { %772 = vmatpush.msrb.mxu1 %v531_v61  ;;  %687 = vmatpush.msra.mxu2 %v350_v62  ;;  %v412_v51 = vld [vmem:[#allocation14 + $0x290] sm:$0xff]  ;;  %v413_v53 = vld [vmem:[#allocation14 + $0x298] sm:$0xff]  ;;  %v583_v56 = vld [vmem:[#allocation14 + $0x7e8] sm:$0xff] }
  0x4c   :  { %715 = vmatpush.msra.mxu3 %v520_v63  ;;  %745 = vmatpush.msrb.mxu0 %v351_v0  ;;  %v402_v61 = vld [vmem:[#allocation14 + $0x240] sm:$0xff]  ;;  %v572_v62 = vld [vmem:[#allocation14 + $0x790] sm:$0xff]  ;;  %v403_v63 = vld [vmem:[#allocation14 + $0x248] sm:$0xff] }
  0x4d   :  { %773 = vmatpush.msrb.mxu1 %v521_v1  ;;  %688 = vmatpush.msra.mxu2 %v340_v2  ;;  %v573_v0 = vld [vmem:[#allocation14 + $0x798] sm:$0xff]  ;;  %v383_v13 = vld [vmem:[#allocation14 + $0x1a8] sm:$0xff] }
  0x4e   :  { %716 = vmatpush.msra.mxu3 %v510_v3  ;;  %746 = vmatpush.msrb.mxu0 %v341_v4 }
  0x4f   :  { %774 = vmatpush.msrb.mxu1 %v511_v5  ;;  %689 = vmatpush.msra.mxu2 %v330_v6  ;;  %v392_v5 = vld [vmem:[#allocation14 + $0x1f0] sm:$0xff]  ;;  %v562_v6 = vld [vmem:[#allocation14 + $0x740] sm:$0xff] }
  0x50   :  { %717 = vmatpush.msra.mxu3 %v500_v7  ;;  %747 = vmatpush.msrb.mxu0 %v331_v8  ;;  %v393_v7 = vld [vmem:[#allocation14 + $0x1f8] sm:$0xff]  ;;  %v563_v8 = vld [vmem:[#allocation14 + $0x748] sm:$0xff] }
  0x51   :  { %775 = vmatpush.msrb.mxu1 %v501_v9  ;;  %790 = vmatpush.msrb.mxu2 %v482_v10  ;;  %v382_v9 = vld [vmem:[#allocation14 + $0x1a0] sm:$0xff] }
  0x52   :  { %718 = vmatpush.msra.mxu3 %v490_v11  ;;  %848 = vmatpush.msra.mxu0 %v483_v14  ;;  %v553_v14 = vld [vmem:[#allocation14 + $0x6f8] sm:$0xff] }
  0x53   :  { %776 = vmatpush.msrb.mxu1 %v491_v12  ;;  %791 = vmatpush.msrb.mxu2 %v472_v15  ;;  %v552_v12 = vld [vmem:[#allocation14 + $0x6f0] sm:$0xff] }
  0x54   :  { %819 = vmatpush.msrb.mxu3 %v642_v16  ;;  %849 = vmatpush.msra.mxu0 %v473_v17  ;;  %v372_v15 = vld [vmem:[#allocation14 + $0x150] sm:$0xff]  ;;  %v542_v16 = vld [vmem:[#allocation14 + $0x6a0] sm:$0xff]  ;;  %v373_v17 = vld [vmem:[#allocation14 + $0x158] sm:$0xff] }
  0x55   :  { %877 = vmatpush.msra.mxu1 %v643_v18  ;;  %792 = vmatpush.msrb.mxu2 %v462_v21 }
  0x56   :  { %820 = vmatpush.msrb.mxu3 %v632_v22  ;;  %850 = vmatpush.msra.mxu0 %v463_v23 }
  0x57   :  { %878 = vmatpush.msra.mxu1 %v633_v24  ;;  %793 = vmatpush.msrb.mxu2 %v452_v25  ;;  %v543_v24 = vld [vmem:[#allocation14 + $0x6a8] sm:$0xff] }
  0x58   :  { %821 = vmatpush.msrb.mxu3 %v622_v26  ;;  %851 = vmatpush.msra.mxu0 %v453_v27  ;;  %v362_v27 = vld [vmem:[#allocation14 + $0x100] sm:$0xff] }
  0x59   :  { %879 = vmatpush.msra.mxu1 %v623_v30  ;;  %794 = vmatpush.msrb.mxu2 %v442_v33 }
  0x5a   :  { %822 = vmatpush.msrb.mxu3 %v612_v34  ;;  %852 = vmatpush.msra.mxu0 %v443_v35  ;;  %v533_v35 = vld [vmem:[#allocation14 + $0x658] sm:$0xff] }
  0x5b   :  { %880 = vmatpush.msra.mxu1 %v613_v36  ;;  %795 = vmatpush.msrb.mxu2 %v432_v39  ;;  %v352_v36 = vld [vmem:[#allocation14 + $0xb0] sm:$0xff] }
  0x5c   :  { %823 = vmatpush.msrb.mxu3 %v602_v40  ;;  %853 = vmatpush.msra.mxu0 %v433_v41  ;;  %v522_v41 = vld [vmem:[#allocation14 + $0x600] sm:$0xff] }
  0x5d   :  { %881 = vmatpush.msra.mxu1 %v603_v44  ;;  %796 = vmatpush.msrb.mxu2 %v422_v45  ;;  %v353_v45 = vld [vmem:[#allocation14 + $0xb8] sm:$0xff] }
  0x5e   :  { %824 = vmatpush.msrb.mxu3 %v592_v46  ;;  %854 = vmatpush.msra.mxu0 %v423_v47 }
  0x5f   :  { %882 = vmatpush.msra.mxu1 %v593_v48  ;;  %797 = vmatpush.msrb.mxu2 %v412_v51 }
  0x60   :  { %825 = vmatpush.msrb.mxu3 %v582_v52  ;;  %855 = vmatpush.msra.mxu0 %v413_v53 }
  0x61   :  { %883 = vmatpush.msra.mxu1 %v583_v56  ;;  %798 = vmatpush.msrb.mxu2 %v402_v61 }
  0x62   :  { %826 = vmatpush.msrb.mxu3 %v572_v62  ;;  %856 = vmatpush.msra.mxu0 %v403_v63 }
  0x63   :  { %884 = vmatpush.msra.mxu1 %v573_v0  ;;  %799 = vmatpush.msrb.mxu2 %v392_v5  ;;  %v503_v5 = vld [vmem:[#allocation14 + $0x568] sm:$0xff] }
  0x64   :  { %827 = vmatpush.msrb.mxu3 %v562_v6  ;;  %857 = vmatpush.msra.mxu0 %v393_v7 }
  0x65   :  { %885 = vmatpush.msra.mxu1 %v563_v8  ;;  %800 = vmatpush.msrb.mxu2 %v382_v9  ;;  %v492_v8 = vld [vmem:[#allocation14 + $0x510] sm:$0xff] }
  0x66   :  { %828 = vmatpush.msrb.mxu3 %v552_v12  ;;  %858 = vmatpush.msra.mxu0 %v383_v13 }
  0x67   :  { %886 = vmatpush.msra.mxu1 %v553_v14  ;;  %801 = vmatpush.msrb.mxu2 %v372_v15  ;;  %v474_v15 = vld [vmem:[#allocation14 + $0x480] sm:$0xff] }
  0x68   :  { %829 = vmatpush.msrb.mxu3 %v542_v16  ;;  %859 = vmatpush.msra.mxu0 %v373_v17  ;;  %v644_v16 = vld [vmem:[#allocation14 + $0x9d0] sm:$0xff] }
  0x69   :  { %887 = vmatpush.msra.mxu1 %v543_v24  ;;  %802 = vmatpush.msrb.mxu2 %v362_v27  ;;  %v475_v27 = vld [vmem:[#allocation14 + $0x488] sm:$0xff] }
  0x6b   :  { %888 = vmatpush.msra.mxu1 %v533_v35  ;;  %803 = vmatpush.msrb.mxu2 %v352_v36  ;;  %v465_v35 = vld [vmem:[#allocation14 + $0x438] sm:$0xff]  ;;  %v635_v36 = vld [vmem:[#allocation14 + $0x988] sm:$0xff] }
  0xad   :  { %v217_v28 = vpop.f32.mrf.mxu0 }
  0xae   :  { %v246_v29 = vpop.f32.mrf.mxu1  ;;  %v3375_v31 = vadd.f32 %v217_v28, %v3370_v19  ;;  %v532_v28 = vld [vmem:[#allocation14 + $0x650] sm:$0xff] }
  0xaf   :  { %v3378_v32 = vadd.f32 %v246_v29, %v3372_v20  ;;  %v363_v29 = vld [vmem:[#allocation14 + $0x108] sm:$0xff]  ;;  %830 = vmatpush.msrb.mxu3 %v532_v28  ;;  %v645_v28 = vld [vmem:[#allocation14 + $0x9d8] sm:$0xff] }
  0xb0   :  { %v266_v37 = vmul.f32 0.044715, %v3375_v31  ;;  %v258_v30 = vmul.f32 0.5, %v3375_v31  ;;  %860 = vmatpush.msra.mxu0 %v363_v29  ;;  %v464_v29 = vld [vmem:[#allocation14 + $0x430] sm:$0xff] }
  0xb1   :  { %v267_v38 = vmul.f32 0.044715, %v3378_v32  ;;  %831 = vmatpush.msrb.mxu3 %v522_v41  ;;  %v624_v41 = vld [vmem:[#allocation14 + $0x930] sm:$0xff] }
  0xb2   :  { %v274_v42 = vmul.f32 %v266_v37, %v3375_v31  ;;  %861 = vmatpush.msra.mxu0 %v353_v45 }
  0xb3   :  { %v275_v43 = vmul.f32 %v267_v38, %v3378_v32  ;;  %v259_v38 = vmul.f32 0.5, %v3378_v32 }
  0xb4   :  { %v282_v49 = vmul.f32 %v274_v42, %v3375_v31 }
  0xb5   :  { %v283_v50 = vmul.f32 %v275_v43, %v3378_v32  ;;  %v220_v54 = vpop.f32.mrf.mxu0 }
  0xb6   :  { %v249_v55 = vpop.f32.mrf.mxu1  ;;  %v290_v57 = vadd.f32 %v282_v49, %v3375_v31  ;;  %v3389_v59 = vadd.f32 %v220_v54, %v3370_v19  ;;  %v342_v49 = vld [vmem:[#allocation14 + $0x60] sm:$0xff]  ;;  %v512_v54 = vld [vmem:[#allocation14 + $0x5b0] sm:$0xff] }
  0xb7   :  { %v291_v58 = vadd.f32 %v283_v50, %v3378_v32  ;;  %v3392_v60 = vadd.f32 %v249_v55, %v3372_v20  ;;  %v523_v32 = vld [vmem:[#allocation14 + $0x608] sm:$0xff]  ;;  %804 = vmatpush.msrb.mxu2 %v342_v49  ;;  %832 = vmatpush.msrb.mxu3 %v512_v54  ;;  %v445_v49 = vld [vmem:[#allocation14 + $0x398] sm:$0xff]  ;;  %v604_v54 = vld [vmem:[#allocation14 + $0x890] sm:$0xff] }
  0xb8   :  { %v298_v1 = vmul.f32 0.7978846, %v290_v57  ;;  %v268_v3 = vmul.f32 0.044715, %v3389_v59  ;;  %889 = vmatpush.msra.mxu1 %v523_v32  ;;  %v343_v57 = vld [vmem:[#allocation14 + $0x68] sm:$0xff]  ;;  %v260_v13 = vmul.f32 0.5, %v3389_v59 }
  0xb9   :  { %v299_v2 = vmul.f32 0.7978846, %v291_v58  ;;  %v269_v4 = vmul.f32 0.044715, %v3392_v60  ;;  %v513_v58 = vld [vmem:[#allocation14 + $0x5b8] sm:$0xff]  ;;  %862 = vmatpush.msra.mxu0 %v343_v57  ;;  %v614_v32 = vld [vmem:[#allocation14 + $0x8e0] sm:$0xff] }
  0xba   :  { %2962 = vtanh.f32 %v298_v1  ;;  %v276_v10 = vmul.f32 %v268_v3, %v3389_v59  ;;  %v332_v1 = vld [vmem:[#allocation14 + $0x10] sm:$0xff]  ;;  %v261_v3 = vmul.f32 0.5, %v3392_v60  ;;  %890 = vmatpush.msra.mxu1 %v513_v58  ;;  %v594_v58 = vld [vmem:[#allocation14 + $0x840] sm:$0xff] }
  0xbb   :  { %2964 = vtanh.f32 %v299_v2  ;;  %v277_v11 = vmul.f32 %v269_v4, %v3392_v60  ;;  %v502_v2 = vld [vmem:[#allocation14 + $0x560] sm:$0xff]  ;;  %v333_v4 = vld [vmem:[#allocation14 + $0x18] sm:$0xff]  ;;  %805 = vmatpush.msrb.mxu2 %v332_v1  ;;  %v424_v57 = vld [vmem:[#allocation14 + $0x2f0] sm:$0xff] }
  0xbc   :  { %v284_v18 = vmul.f32 %v276_v10, %v3389_v59  ;;  %833 = vmatpush.msrb.mxu3 %v502_v2  ;;  %863 = vmatpush.msra.mxu0 %v333_v4  ;;  %v425_v1 = vld [vmem:[#allocation14 + $0x2f8] sm:$0xff]  ;;  %v595_v2 = vld [vmem:[#allocation14 + $0x848] sm:$0xff] }
  0xbd   :  { %v285_v21 = vmul.f32 %v277_v11, %v3392_v60  ;;  %v223_v22 = vpop.f32.mrf.mxu0  ;;  %v493_v11 = vld [vmem:[#allocation14 + $0x518] sm:$0xff]  ;;  %891 = vmatpush.msra.mxu1 %v503_v5 }
  0xbe   :  { %v252_v23 = vpop.f32.mrf.mxu1  ;;  %v3401_v25 = vadd.f32 %v223_v22, %v3370_v19  ;;  %v292_v33 = vadd.f32 %v284_v18, %v3389_v59  ;;  %834 = vmatpush.msrb.mxu3 %v492_v8 }
  0xbf   :  { %v3404_v26 = vadd.f32 %v252_v23, %v3372_v20  ;;  %v293_v34 = vadd.f32 %v285_v21, %v3392_v60  ;;  %v485_v60 = vld [vmem:[#allocation14 + $0x4d8] sm:$0xff]  ;;  %892 = vmatpush.msra.mxu1 %v493_v11 }
  0xc0   :  { %v2963_v37 = vpop.eup %2962  ;;  %v270_v39 = vmul.f32 0.044715, %v3401_v25  ;;  %v300_v43 = vmul.f32 0.7978846, %v292_v33  ;;  %v405_v11 = vld [vmem:[#allocation14 + $0x258] sm:$0xff] }
  0xc1   :  { %v271_v40 = vmul.f32 0.044715, %v3404_v26  ;;  %v2965_v42 = vpop.eup %2964  ;;  %v314_v31 = vadd.f32 1.0, %v2963_v37  ;;  %v301_v44 = vmul.f32 0.7978846, %v293_v34 }
  0xc2   :  { %v315_v46 = vadd.f32 1.0, %v2965_v42  ;;  %v278_v47 = vmul.f32 %v270_v39, %v3401_v25  ;;  %2966 = vtanh.f32 %v300_v43  ;;  %v263_v39 = vmul.f32 0.5, %v3404_v26  ;;  %v455_v42 = vld [vmem:[#allocation14 + $0x3e8] sm:$0xff] }
  0xc3   :  { %v279_v48 = vmul.f32 %v271_v40, %v3404_v26  ;;  %v3414_v50 = vmul.f32 %v314_v31, %v258_v30  ;;  %2968 = vtanh.f32 %v301_v44  ;;  %v634_v30 = vld [vmem:[#allocation14 + $0x980] sm:$0xff] }
  0xc4   :  { %v3416_v51 = vmul.f32 %v315_v46, %v259_v38  ;;  %v286_v52 = vmul.f32 %v278_v47, %v3401_v25  ;;  %v262_v38 = vmul.f32 0.5, %v3401_v25  ;;  %v454_v40 = vld [vmem:[#allocation14 + $0x3e0] sm:$0xff]  ;;  %v625_v46 = vld [vmem:[#allocation14 + $0x938] sm:$0xff] }
  0xc5   :  { %v287_v53 = vmul.f32 %v279_v48, %v3404_v26  ;;  %v226_v55 = vpop.f32.mrf.mxu0  ;;  %690 = vmatmul.f32.vlgmr.msra.gmra.mxu2 %v3414_v50  ;;  %748 = vmatmul.f32.vlgmr.msrb.gmra.mxu0 %v3414_v50  ;;  %v444_v48 = vld [vmem:[#allocation14 + $0x390] sm:$0xff] }
  0xc6   :  { %v255_v56 = vpop.f32.mrf.mxu1  ;;  %v294_v61 = vadd.f32 %v286_v52, %v3401_v25  ;;  %v3425_v63 = vadd.f32 %v226_v55, %v3370_v19  ;;  %719 = vmatmul.f32.vlgmr.msra.gmra.mxu3 %v3416_v51  ;;  %777 = vmatmul.f32.vlgmr.msrb.gmra.mxu1 %v3416_v51  ;;  %v484_v19 = vld [vmem:[#allocation14 + $0x4d0] sm:$0xff]  ;;  %v615_v52 = vld [vmem:[#allocation14 + $0x8e8] sm:$0xff] }
  0xc7   :  { %v295_v62 = vadd.f32 %v287_v53, %v3404_v26  ;;  %v3428_v0 = vadd.f32 %v255_v56, %v3372_v20  ;;  %906 = vmatpush.msra.mxu2 %v484_v19  ;;  %964 = vmatpush.msrb.mxu0 %v485_v60  ;;  %v434_v53 = vld [vmem:[#allocation14 + $0x340] sm:$0xff]  ;;  %v435_v55 = vld [vmem:[#allocation14 + $0x348] sm:$0xff]  ;;  %v605_v56 = vld [vmem:[#allocation14 + $0x898] sm:$0xff] }
  0xc8   :  { %v302_v6 = vmul.f32 0.7978846, %v294_v61  ;;  %v2967_v9 = vpop.eup %2966  ;;  %v272_v20 = vmul.f32 0.044715, %v3425_v63  ;;  %935 = vmatpush.msra.mxu3 %v644_v16  ;;  %993 = vmatpush.msrb.mxu1 %v645_v28  ;;  %v264_v4 = vmul.f32 0.5, %v3425_v63  ;;  %v575_v60 = vld [vmem:[#allocation14 + $0x7a8] sm:$0xff] }
  0xc9   :  { %v303_v7 = vmul.f32 0.7978846, %v295_v62  ;;  %v273_v10 = vmul.f32 0.044715, %v3428_v0  ;;  %v2969_v12 = vpop.eup %2968  ;;  %v316_v14 = vadd.f32 1.0, %v2967_v9  ;;  %907 = vmatpush.msra.mxu2 %v474_v15  ;;  %965 = vmatpush.msrb.mxu0 %v475_v27  ;;  %v265_v62 = vmul.f32 0.5, %v3428_v0 }
  0xca   :  { %2970 = vtanh.f32 %v302_v6  ;;  %v317_v17 = vadd.f32 1.0, %v2969_v12  ;;  %v280_v18 = vmul.f32 %v272_v20, %v3425_v63  ;;  %936 = vmatpush.msra.mxu3 %v634_v30  ;;  %994 = vmatpush.msrb.mxu1 %v635_v36  ;;  %v414_v6 = vld [vmem:[#allocation14 + $0x2a0] sm:$0xff]  ;;  %v415_v9 = vld [vmem:[#allocation14 + $0x2a8] sm:$0xff]  ;;  %v585_v20 = vld [vmem:[#allocation14 + $0x7f8] sm:$0xff] }
  0xcb   :  { %2972 = vtanh.f32 %v303_v7  ;;  %v281_v21 = vmul.f32 %v273_v10, %v3428_v0  ;;  %v3438_v22 = vmul.f32 %v316_v14, %v260_v13  ;;  %908 = vmatpush.msra.mxu2 %v464_v29  ;;  %966 = vmatpush.msrb.mxu0 %v465_v35  ;;  %v584_v7 = vld [vmem:[#allocation14 + $0x7f0] sm:$0xff]  ;;  %v574_v10 = vld [vmem:[#allocation14 + $0x7a0] sm:$0xff]  ;;  %v395_v14 = vld [vmem:[#allocation14 + $0x208] sm:$0xff] }
  0xcc   :  { %v3440_v23 = vmul.f32 %v317_v17, %v261_v3  ;;  %v288_v59 = vmul.f32 %v280_v18, %v3425_v63  ;;  %937 = vmatpush.msra.mxu3 %v624_v41  ;;  %995 = vmatpush.msrb.mxu1 %v625_v46  ;;  %v394_v12 = vld [vmem:[#allocation14 + $0x200] sm:$0xff]  ;;  %v564_v13 = vld [vmem:[#allocation14 + $0x750] sm:$0xff]  ;;  %v565_v15 = vld [vmem:[#allocation14 + $0x758] sm:$0xff] }
  0xcd   :  { %v289_v24 = vmul.f32 %v281_v21, %v3428_v0  ;;  %693 = vmatmul.f32.gmra.mxu2 %v3438_v22  ;;  %751 = vmatmul.f32.gmra.mxu0 %v3438_v22  ;;  %v384_v16 = vld [vmem:[#allocation14 + $0x1b0] sm:$0xff]  ;;  %v554_v17 = vld [vmem:[#allocation14 + $0x700] sm:$0xff]  ;;  %v385_v18 = vld [vmem:[#allocation14 + $0x1b8] sm:$0xff] }
  0xce   :  { %v296_v33 = vadd.f32 %v288_v59, %v3425_v63  ;;  %722 = vmatmul.f32.gmra.mxu3 %v3440_v23  ;;  %780 = vmatmul.f32.gmra.mxu1 %v3440_v23  ;;  %v404_v63 = vld [vmem:[#allocation14 + $0x250] sm:$0xff]  ;;  %v555_v21 = vld [vmem:[#allocation14 + $0x708] sm:$0xff]  ;;  %v374_v59 = vld [vmem:[#allocation14 + $0x160] sm:$0xff] }
  0xcf   :  { %v297_v34 = vadd.f32 %v289_v24, %v3428_v0  ;;  %909 = vmatpush.msra.mxu2 %v454_v40  ;;  %967 = vmatpush.msrb.mxu0 %v455_v42  ;;  %v544_v24 = vld [vmem:[#allocation14 + $0x6b0] sm:$0xff]  ;;  %v375_v27 = vld [vmem:[#allocation14 + $0x168] sm:$0xff]  ;;  %v545_v28 = vld [vmem:[#allocation14 + $0x6b8] sm:$0xff] }
  0xd0   :  { %v2971_v37 = vpop.eup %2970  ;;  %v304_v44 = vmul.f32 0.7978846, %v296_v33  ;;  %938 = vmatpush.msra.mxu3 %v614_v32  ;;  %996 = vmatpush.msrb.mxu1 %v615_v52  ;;  %v364_v29 = vld [vmem:[#allocation14 + $0x110] sm:$0xff]  ;;  %v534_v30 = vld [vmem:[#allocation14 + $0x660] sm:$0xff]  ;;  %v365_v33 = vld [vmem:[#allocation14 + $0x118] sm:$0xff] }
  0xd1   :  { %v2973_v31 = vpop.eup %2972  ;;  %v318_v43 = vadd.f32 1.0, %v2971_v37  ;;  %v305_v45 = vmul.f32 0.7978846, %v297_v34  ;;  %910 = vmatpush.msra.mxu2 %v444_v48  ;;  %968 = vmatpush.msrb.mxu0 %v445_v49  ;;  %v535_v34 = vld [vmem:[#allocation14 + $0x668] sm:$0xff]  ;;  %v354_v35 = vld [vmem:[#allocation14 + $0xc0] sm:$0xff]  ;;  %v524_v36 = vld [vmem:[#allocation14 + $0x610] sm:$0xff] }
  0xd2   :  { %v319_v47 = vadd.f32 1.0, %v2973_v31  ;;  %2974 = vtanh.f32 %v304_v44  ;;  %939 = vmatpush.msra.mxu3 %v604_v54  ;;  %997 = vmatpush.msrb.mxu1 %v605_v56  ;;  %v355_v37 = vld [vmem:[#allocation14 + $0xc8] sm:$0xff]  ;;  %v514_v40 = vld [vmem:[#allocation14 + $0x5c0] sm:$0xff]  ;;  %v345_v41 = vld [vmem:[#allocation14 + $0x78] sm:$0xff] }
  0xd3   :  { %v3452_v25 = vmul.f32 %v318_v43, %v262_v38  ;;  %2976 = vtanh.f32 %v305_v45  ;;  %911 = vmatpush.msra.mxu2 %v434_v53  ;;  %969 = vmatpush.msrb.mxu0 %v435_v55  ;;  %v525_v38 = vld [vmem:[#allocation14 + $0x618] sm:$0xff]  ;;  %v515_v42 = vld [vmem:[#allocation14 + $0x5c8] sm:$0xff]  ;;  %v334_v31 = vld [vmem:[#allocation14 + $0x20] sm:$0xff] }
  0xd4   :  { %v3454_v26 = vmul.f32 %v319_v47, %v263_v39  ;;  %940 = vmatpush.msra.mxu3 %v594_v58  ;;  %998 = vmatpush.msrb.mxu1 %v595_v2  ;;  %v344_v39 = vld [vmem:[#allocation14 + $0x70] sm:$0xff]  ;;  %v335_v44 = vld [vmem:[#allocation14 + $0x28] sm:$0xff]  ;;  %v505_v45 = vld [vmem:[#allocation14 + $0x578] sm:$0xff] }
  0xd5   :  { %696 = vmatmul.f32.gmra.mxu2 %v3452_v25  ;;  %754 = vmatmul.f32.gmra.mxu0 %v3452_v25  ;;  %v504_v43 = vld [vmem:[#allocation14 + $0x570] sm:$0xff]  ;;  %v486_v46 = vld [vmem:[#allocation14 + $0x4e0] sm:$0xff]  ;;  %v495_v48 = vld [vmem:[#allocation14 + $0x528] sm:$0xff] }
  0xd6   :  { %725 = vmatmul.f32.gmra.mxu3 %v3454_v26  ;;  %783 = vmatmul.f32.gmra.mxu1 %v3454_v26  ;;  %v494_v47 = vld [vmem:[#allocation14 + $0x520] sm:$0xff]  ;;  %v487_v32 = vld [vmem:[#allocation14 + $0x4e8] sm:$0xff]  ;;  %v476_v49 = vld [vmem:[#allocation14 + $0x490] sm:$0xff] }
  0xd7   :  { %912 = vmatpush.msra.mxu2 %v424_v57  ;;  %970 = vmatpush.msrb.mxu0 %v425_v1  ;;  %v646_v52 = vld [vmem:[#allocation14 + $0x9e0] sm:$0xff]  ;;  %v477_v53 = vld [vmem:[#allocation14 + $0x498] sm:$0xff]  ;;  %v647_v54 = vld [vmem:[#allocation14 + $0x9e8] sm:$0xff] }
  0xd8   :  { %v2975_v61 = vpop.eup %2974  ;;  %941 = vmatpush.msra.mxu3 %v584_v7  ;;  %999 = vmatpush.msrb.mxu1 %v585_v20  ;;  %v466_v55 = vld [vmem:[#allocation14 + $0x440] sm:$0xff]  ;;  %v636_v56 = vld [vmem:[#allocation14 + $0x990] sm:$0xff]  ;;  %v467_v57 = vld [vmem:[#allocation14 + $0x448] sm:$0xff] }
  0xd9   :  { %v2977_v3 = vpop.eup %2976  ;;  %v320_v5 = vadd.f32 1.0, %v2975_v61  ;;  %913 = vmatpush.msra.mxu2 %v414_v6  ;;  %971 = vmatpush.msrb.mxu0 %v415_v9  ;;  %v637_v58 = vld [vmem:[#allocation14 + $0x998] sm:$0xff]  ;;  %v456_v61 = vld [vmem:[#allocation14 + $0x3f0] sm:$0xff]  ;;  %v627_v2 = vld [vmem:[#allocation14 + $0x948] sm:$0xff] }
  0xda   :  { %v321_v19 = vadd.f32 1.0, %v2977_v3  ;;  %942 = vmatpush.msra.mxu3 %v574_v10  ;;  %1000 = vmatpush.msrb.mxu1 %v575_v60  ;;  %v457_v1 = vld [vmem:[#allocation14 + $0x3f8] sm:$0xff]  ;;  %v446_v3 = vld [vmem:[#allocation14 + $0x3a0] sm:$0xff]  ;;  %v436_v7 = vld [vmem:[#allocation14 + $0x350] sm:$0xff] }
  0xdb   :  { %v3462_v8 = vmul.f32 %v320_v5, %v264_v4  ;;  %914 = vmatpush.msra.mxu2 %v404_v63  ;;  %972 = vmatpush.msrb.mxu0 %v405_v11  ;;  %v616_v4 = vld [vmem:[#allocation14 + $0x8f0] sm:$0xff]  ;;  %v447_v5 = vld [vmem:[#allocation14 + $0x3a8] sm:$0xff]  ;;  %v617_v6 = vld [vmem:[#allocation14 + $0x8f8] sm:$0xff] }
  0xdc   :  { %v3464_v0 = vmul.f32 %v321_v19, %v265_v62  ;;  %943 = vmatpush.msra.mxu3 %v564_v13  ;;  %1001 = vmatpush.msrb.mxu1 %v565_v15  ;;  %v626_v62 = vld [vmem:[#allocation14 + $0x940] sm:$0xff]  ;;  %v437_v9 = vld [vmem:[#allocation14 + $0x358] sm:$0xff]  ;;  %v607_v20 = vld [vmem:[#allocation14 + $0x8a8] sm:$0xff] }
  0xdd   :  { %699 = vmatmul.f32.gmra.mxu2 %v3462_v8  ;;  %757 = vmatmul.f32.gmra.mxu0 %v3462_v8  ;;  %v606_v19 = vld [vmem:[#allocation14 + $0x8a0] sm:$0xff]  ;;  %v596_v10 = vld [vmem:[#allocation14 + $0x850] sm:$0xff]  ;;  %v427_v11 = vld [vmem:[#allocation14 + $0x308] sm:$0xff] }
  0xde   :  { %728 = vmatmul.f32.gmra.mxu3 %v3464_v0  ;;  %786 = vmatmul.f32.gmra.mxu1 %v3464_v0  ;;  %v426_v63 = vld [vmem:[#allocation14 + $0x300] sm:$0xff]  ;;  %v597_v60 = vld [vmem:[#allocation14 + $0x858] sm:$0xff]  ;;  %v587_v15 = vld [vmem:[#allocation14 + $0x808] sm:$0xff] }
  0xdf   :  { %915 = vmatpush.msra.mxu2 %v394_v12  ;;  %973 = vmatpush.msrb.mxu0 %v395_v14  ;;  %v416_v12 = vld [vmem:[#allocation14 + $0x2b0] sm:$0xff]  ;;  %v586_v13 = vld [vmem:[#allocation14 + $0x800] sm:$0xff]  ;;  %v417_v14 = vld [vmem:[#allocation14 + $0x2b8] sm:$0xff] }
  0xe0   :  { %944 = vmatpush.msra.mxu3 %v554_v17  ;;  %1002 = vmatpush.msrb.mxu1 %v555_v21  ;;  %v576_v17 = vld [vmem:[#allocation14 + $0x7b0] sm:$0xff]  ;;  %v577_v21 = vld [vmem:[#allocation14 + $0x7b8] sm:$0xff] }
  0xe1   :  { %916 = vmatpush.msra.mxu2 %v384_v16  ;;  %974 = vmatpush.msrb.mxu0 %v385_v18  ;;  %v406_v16 = vld [vmem:[#allocation14 + $0x260] sm:$0xff]  ;;  %v407_v18 = vld [vmem:[#allocation14 + $0x268] sm:$0xff] }
  0xe2   :  { %945 = vmatpush.msra.mxu3 %v544_v24  ;;  %1003 = vmatpush.msrb.mxu1 %v545_v28  ;;  %v566_v24 = vld [vmem:[#allocation14 + $0x760] sm:$0xff]  ;;  %v567_v28 = vld [vmem:[#allocation14 + $0x768] sm:$0xff] }
  0xe3   :  { %917 = vmatpush.msra.mxu2 %v374_v59  ;;  %975 = vmatpush.msrb.mxu0 %v375_v27  ;;  %v396_v59 = vld [vmem:[#allocation14 + $0x210] sm:$0xff]  ;;  %v397_v27 = vld [vmem:[#allocation14 + $0x218] sm:$0xff] }
  0xe4   :  { %946 = vmatpush.msra.mxu3 %v534_v30  ;;  %1004 = vmatpush.msrb.mxu1 %v535_v34  ;;  %v556_v30 = vld [vmem:[#allocation14 + $0x710] sm:$0xff]  ;;  %v557_v34 = vld [vmem:[#allocation14 + $0x718] sm:$0xff] }
  0xe5   :  { %806 = vmatmul.f32.vlgmr.msrb.gmra.mxu2 %v3414_v50  ;;  %864 = vmatmul.f32.vlgmr.msra.gmra.mxu0 %v3414_v50 }
  0xe6   :  { %835 = vmatmul.f32.vlgmr.msrb.gmra.mxu3 %v3416_v51  ;;  %893 = vmatmul.f32.vlgmr.msra.gmra.mxu1 %v3416_v51 }
  0xe7   :  { %918 = vmatpush.msra.mxu2 %v364_v29  ;;  %976 = vmatpush.msrb.mxu0 %v365_v33  ;;  %v386_v29 = vld [vmem:[#allocation14 + $0x1c0] sm:$0xff]  ;;  %v387_v33 = vld [vmem:[#allocation14 + $0x1c8] sm:$0xff] }
  0xe8   :  { %947 = vmatpush.msra.mxu3 %v524_v36  ;;  %1005 = vmatpush.msrb.mxu1 %v525_v38  ;;  %v546_v36 = vld [vmem:[#allocation14 + $0x6c0] sm:$0xff]  ;;  %v547_v38 = vld [vmem:[#allocation14 + $0x6c8] sm:$0xff] }
  0xe9   :  { %919 = vmatpush.msra.mxu2 %v354_v35  ;;  %977 = vmatpush.msrb.mxu0 %v355_v37  ;;  %v376_v35 = vld [vmem:[#allocation14 + $0x170] sm:$0xff]  ;;  %v377_v37 = vld [vmem:[#allocation14 + $0x178] sm:$0xff] }
  0xea   :  { %948 = vmatpush.msra.mxu3 %v514_v40  ;;  %1006 = vmatpush.msrb.mxu1 %v515_v42  ;;  %v536_v40 = vld [vmem:[#allocation14 + $0x670] sm:$0xff]  ;;  %v537_v42 = vld [vmem:[#allocation14 + $0x678] sm:$0xff] }
  0xeb   :  { %920 = vmatpush.msra.mxu2 %v344_v39  ;;  %978 = vmatpush.msrb.mxu0 %v345_v41  ;;  %v366_v39 = vld [vmem:[#allocation14 + $0x120] sm:$0xff]  ;;  %v367_v41 = vld [vmem:[#allocation14 + $0x128] sm:$0xff] }
  0xec   :  { %949 = vmatpush.msra.mxu3 %v504_v43  ;;  %1007 = vmatpush.msrb.mxu1 %v505_v45  ;;  %v526_v43 = vld [vmem:[#allocation14 + $0x620] sm:$0xff]  ;;  %v527_v45 = vld [vmem:[#allocation14 + $0x628] sm:$0xff] }
  0xed   :  { %809 = vmatmul.f32.gmra.mxu2 %v3438_v22  ;;  %867 = vmatmul.f32.gmra.mxu0 %v3438_v22 }
  0xee   :  { %838 = vmatmul.f32.gmra.mxu3 %v3440_v23  ;;  %896 = vmatmul.f32.gmra.mxu1 %v3440_v23 }
  0xef   :  { %921 = vmatpush.msra.mxu2 %v334_v31  ;;  %979 = vmatpush.msrb.mxu0 %v335_v44  ;;  %v356_v31 = vld [vmem:[#allocation14 + $0xd0] sm:$0xff]  ;;  %v357_v44 = vld [vmem:[#allocation14 + $0xd8] sm:$0xff] }
  0xf0   :  { %950 = vmatpush.msra.mxu3 %v494_v47  ;;  %1008 = vmatpush.msrb.mxu1 %v495_v48  ;;  %v516_v47 = vld [vmem:[#allocation14 + $0x5d0] sm:$0xff]  ;;  %v347_v48 = vld [vmem:[#allocation14 + $0x88] sm:$0xff] }
  0xf1   :  { %1022 = vmatpush.msrb.mxu2 %v486_v46  ;;  %1080 = vmatpush.msra.mxu0 %v487_v32  ;;  %v346_v46 = vld [vmem:[#allocation14 + $0x80] sm:$0xff]  ;;  %v517_v32 = vld [vmem:[#allocation14 + $0x5d8] sm:$0xff] }
  0xf2   :  { %1051 = vmatpush.msrb.mxu3 %v646_v52  ;;  %1109 = vmatpush.msra.mxu1 %v647_v54  ;;  %v506_v52 = vld [vmem:[#allocation14 + $0x580] sm:$0xff]  ;;  %v507_v54 = vld [vmem:[#allocation14 + $0x588] sm:$0xff] }
  0xf3   :  { %1023 = vmatpush.msrb.mxu2 %v476_v49  ;;  %1081 = vmatpush.msra.mxu0 %v477_v53  ;;  %v336_v49 = vld [vmem:[#allocation14 + $0x30] sm:$0xff]  ;;  %v337_v53 = vld [vmem:[#allocation14 + $0x38] sm:$0xff] }
  0xf4   :  { %1052 = vmatpush.msrb.mxu3 %v636_v56  ;;  %1110 = vmatpush.msra.mxu1 %v637_v58  ;;  %v496_v56 = vld [vmem:[#allocation14 + $0x530] sm:$0xff]  ;;  %v489_v58 = vld [vmem:[#allocation14 + $0x4f8] sm:$0xff] }
  0xf5   :  { %812 = vmatmul.f32.gmra.mxu2 %v3452_v25  ;;  %870 = vmatmul.f32.gmra.mxu0 %v3452_v25 }
  0xf6   :  { %841 = vmatmul.f32.gmra.mxu3 %v3454_v26  ;;  %899 = vmatmul.f32.gmra.mxu1 %v3454_v26 }
  0xf7   :  { %1024 = vmatpush.msrb.mxu2 %v466_v55  ;;  %1082 = vmatpush.msra.mxu0 %v467_v57  ;;  %v488_v55 = vld [vmem:[#allocation14 + $0x4f0] sm:$0xff]  ;;  %v497_v57 = vld [vmem:[#allocation14 + $0x538] sm:$0xff] }
  0xf8   :  { %1053 = vmatpush.msrb.mxu3 %v626_v62  ;;  %1111 = vmatpush.msra.mxu1 %v627_v2  ;;  %v648_v62 = vld [vmem:[#allocation14 + $0x9f0] sm:$0xff]  ;;  %v649_v2 = vld [vmem:[#allocation14 + $0x9f8] sm:$0xff] }
  0xf9   :  { %1025 = vmatpush.msrb.mxu2 %v456_v61  ;;  %1083 = vmatpush.msra.mxu0 %v457_v1  ;;  %v478_v61 = vld [vmem:[#allocation14 + $0x4a0] sm:$0xff]  ;;  %v479_v1 = vld [vmem:[#allocation14 + $0x4a8] sm:$0xff] }
  0xfa   :  { %1054 = vmatpush.msrb.mxu3 %v616_v4  ;;  %1112 = vmatpush.msra.mxu1 %v617_v6  ;;  %v638_v4 = vld [vmem:[#allocation14 + $0x9a0] sm:$0xff]  ;;  %v639_v6 = vld [vmem:[#allocation14 + $0x9a8] sm:$0xff] }
  0xfb   :  { %1026 = vmatpush.msrb.mxu2 %v446_v3  ;;  %1084 = vmatpush.msra.mxu0 %v447_v5  ;;  %v468_v3 = vld [vmem:[#allocation14 + $0x450] sm:$0xff]  ;;  %v469_v5 = vld [vmem:[#allocation14 + $0x458] sm:$0xff] }
  0xfc   :  { %1055 = vmatpush.msrb.mxu3 %v606_v19  ;;  %1113 = vmatpush.msra.mxu1 %v607_v20  ;;  %v628_v19 = vld [vmem:[#allocation14 + $0x950] sm:$0xff]  ;;  %v629_v20 = vld [vmem:[#allocation14 + $0x958] sm:$0xff] }
  0xfd   :  { %815 = vmatmul.f32.gmra.mxu2 %v3462_v8  ;;  %873 = vmatmul.f32.gmra.mxu0 %v3462_v8 }
  0xfe   :  { %844 = vmatmul.f32.gmra.mxu3 %v3464_v0  ;;  %902 = vmatmul.f32.gmra.mxu1 %v3464_v0 }
  0xff   :  { %1027 = vmatpush.msrb.mxu2 %v436_v7  ;;  %1085 = vmatpush.msra.mxu0 %v437_v9  ;;  %v458_v7 = vld [vmem:[#allocation14 + $0x400] sm:$0xff]  ;;  %v459_v9 = vld [vmem:[#allocation14 + $0x408] sm:$0xff] }
 0x100   :  { %1056 = vmatpush.msrb.mxu3 %v596_v10  ;;  %1114 = vmatpush.msra.mxu1 %v597_v60  ;;  %v618_v10 = vld [vmem:[#allocation14 + $0x900] sm:$0xff]  ;;  %v619_v60 = vld [vmem:[#allocation14 + $0x908] sm:$0xff] }
 0x101   :  { %1028 = vmatpush.msrb.mxu2 %v426_v63  ;;  %1086 = vmatpush.msra.mxu0 %v427_v11  ;;  %v448_v63 = vld [vmem:[#allocation14 + $0x3b0] sm:$0xff]  ;;  %v449_v11 = vld [vmem:[#allocation14 + $0x3b8] sm:$0xff] }
 0x102   :  { %1057 = vmatpush.msrb.mxu3 %v586_v13  ;;  %1115 = vmatpush.msra.mxu1 %v587_v15  ;;  %v608_v13 = vld [vmem:[#allocation14 + $0x8b0] sm:$0xff]  ;;  %v609_v15 = vld [vmem:[#allocation14 + $0x8b8] sm:$0xff] }
 0x103   :  { %1029 = vmatpush.msrb.mxu2 %v416_v12  ;;  %1087 = vmatpush.msra.mxu0 %v417_v14  ;;  %v438_v12 = vld [vmem:[#allocation14 + $0x360] sm:$0xff]  ;;  %v439_v14 = vld [vmem:[#allocation14 + $0x368] sm:$0xff] }
 0x104   :  { %1058 = vmatpush.msrb.mxu3 %v576_v17  ;;  %1116 = vmatpush.msra.mxu1 %v577_v21  ;;  %v598_v17 = vld [vmem:[#allocation14 + $0x860] sm:$0xff]  ;;  %v599_v21 = vld [vmem:[#allocation14 + $0x868] sm:$0xff] }
 0x105   :  { %922 = vmatmul.f32.vlgmr.msra.gmra.mxu2 %v3414_v50  ;;  %980 = vmatmul.f32.vlgmr.msrb.gmra.mxu0 %v3414_v50 }
 0x106   :  { %951 = vmatmul.f32.vlgmr.msra.gmra.mxu3 %v3416_v51  ;;  %1009 = vmatmul.f32.vlgmr.msrb.gmra.mxu1 %v3416_v51 }
 0x107   :  { %1030 = vmatpush.msrb.mxu2 %v406_v16  ;;  %1088 = vmatpush.msra.mxu0 %v407_v18  ;;  %v428_v16 = vld [vmem:[#allocation14 + $0x310] sm:$0xff]  ;;  %v429_v18 = vld [vmem:[#allocation14 + $0x318] sm:$0xff] }
 0x108   :  { %1059 = vmatpush.msrb.mxu3 %v566_v24  ;;  %1117 = vmatpush.msra.mxu1 %v567_v28  ;;  %v588_v24 = vld [vmem:[#allocation14 + $0x810] sm:$0xff]  ;;  %v589_v28 = vld [vmem:[#allocation14 + $0x818] sm:$0xff] }
 0x109   :  { %1031 = vmatpush.msrb.mxu2 %v396_v59  ;;  %1089 = vmatpush.msra.mxu0 %v397_v27  ;;  %v418_v59 = vld [vmem:[#allocation14 + $0x2c0] sm:$0xff]  ;;  %v419_v27 = vld [vmem:[#allocation14 + $0x2c8] sm:$0xff] }
 0x10a   :  { %1060 = vmatpush.msrb.mxu3 %v556_v30  ;;  %1118 = vmatpush.msra.mxu1 %v557_v34  ;;  %v578_v30 = vld [vmem:[#allocation14 + $0x7c0] sm:$0xff]  ;;  %v579_v34 = vld [vmem:[#allocation14 + $0x7c8] sm:$0xff] }
 0x10b   :  { %1032 = vmatpush.msrb.mxu2 %v386_v29  ;;  %1090 = vmatpush.msra.mxu0 %v387_v33  ;;  %v408_v29 = vld [vmem:[#allocation14 + $0x270] sm:$0xff]  ;;  %v409_v33 = vld [vmem:[#allocation14 + $0x278] sm:$0xff] }
 0x10c   :  { %1061 = vmatpush.msrb.mxu3 %v546_v36  ;;  %1119 = vmatpush.msra.mxu1 %v547_v38  ;;  %v568_v36 = vld [vmem:[#allocation14 + $0x770] sm:$0xff]  ;;  %v569_v38 = vld [vmem:[#allocation14 + $0x778] sm:$0xff] }
 0x10d   :  { %925 = vmatmul.f32.gmra.mxu2 %v3438_v22  ;;  %983 = vmatmul.f32.gmra.mxu0 %v3438_v22 }
 0x10e   :  { %954 = vmatmul.f32.gmra.mxu3 %v3440_v23  ;;  %1012 = vmatmul.f32.gmra.mxu1 %v3440_v23 }
 0x10f   :  { %1033 = vmatpush.msrb.mxu2 %v376_v35  ;;  %1091 = vmatpush.msra.mxu0 %v377_v37  ;;  %v398_v35 = vld [vmem:[#allocation14 + $0x220] sm:$0xff]  ;;  %v399_v37 = vld [vmem:[#allocation14 + $0x228] sm:$0xff] }
 0x110   :  { %1062 = vmatpush.msrb.mxu3 %v536_v40  ;;  %1120 = vmatpush.msra.mxu1 %v537_v42  ;;  %v558_v40 = vld [vmem:[#allocation14 + $0x720] sm:$0xff]  ;;  %v559_v42 = vld [vmem:[#allocation14 + $0x728] sm:$0xff] }
 0x111   :  { %1034 = vmatpush.msrb.mxu2 %v366_v39  ;;  %1092 = vmatpush.msra.mxu0 %v367_v41  ;;  %v388_v39 = vld [vmem:[#allocation14 + $0x1d0] sm:$0xff]  ;;  %v389_v41 = vld [vmem:[#allocation14 + $0x1d8] sm:$0xff] }
 0x112   :  { %1063 = vmatpush.msrb.mxu3 %v526_v43  ;;  %1121 = vmatpush.msra.mxu1 %v527_v45  ;;  %v548_v43 = vld [vmem:[#allocation14 + $0x6d0] sm:$0xff]  ;;  %v549_v45 = vld [vmem:[#allocation14 + $0x6d8] sm:$0xff] }
 0x113   :  { %1035 = vmatpush.msrb.mxu2 %v356_v31  ;;  %1093 = vmatpush.msra.mxu0 %v357_v44  ;;  %v378_v31 = vld [vmem:[#allocation14 + $0x180] sm:$0xff]  ;;  %v379_v44 = vld [vmem:[#allocation14 + $0x188] sm:$0xff] }
 0x114   :  { %1064 = vmatpush.msrb.mxu3 %v516_v47  ;;  %1122 = vmatpush.msra.mxu1 %v517_v32  ;;  %v538_v47 = vld [vmem:[#allocation14 + $0x680] sm:$0xff]  ;;  %v539_v32 = vld [vmem:[#allocation14 + $0x688] sm:$0xff] }
 0x115   :  { %928 = vmatmul.f32.gmra.mxu2 %v3452_v25  ;;  %986 = vmatmul.f32.gmra.mxu0 %v3452_v25 }
 0x116   :  { %957 = vmatmul.f32.gmra.mxu3 %v3454_v26  ;;  %1015 = vmatmul.f32.gmra.mxu1 %v3454_v26 }
 0x117   :  { %1036 = vmatpush.msrb.mxu2 %v346_v46  ;;  %1094 = vmatpush.msra.mxu0 %v347_v48  ;;  %v368_v46 = vld [vmem:[#allocation14 + $0x130] sm:$0xff]  ;;  %v369_v48 = vld [vmem:[#allocation14 + $0x138] sm:$0xff] }
 0x118   :  { %1065 = vmatpush.msrb.mxu3 %v506_v52  ;;  %1123 = vmatpush.msra.mxu1 %v507_v54  ;;  %v528_v52 = vld [vmem:[#allocation14 + $0x630] sm:$0xff]  ;;  %v529_v54 = vld [vmem:[#allocation14 + $0x638] sm:$0xff] }
 0x119   :  { %1037 = vmatpush.msrb.mxu2 %v336_v49  ;;  %1095 = vmatpush.msra.mxu0 %v337_v53  ;;  %v358_v49 = vld [vmem:[#allocation14 + $0xe0] sm:$0xff]  ;;  %v359_v53 = vld [vmem:[#allocation14 + $0xe8] sm:$0xff] }
 0x11a   :  { %1066 = vmatpush.msrb.mxu3 %v496_v56  ;;  %1124 = vmatpush.msra.mxu1 %v497_v57  ;;  %v518_v57 = vld [vmem:[#allocation14 + $0x5e0] sm:$0xff] }
 0x11b   :  { %1138 = vmatpush.msra.mxu2 %v488_v55  ;;  %1196 = vmatpush.msrb.mxu0 %v489_v58  ;;  %v348_v55 = vld [vmem:[#allocation14 + $0x90] sm:$0xff]  ;;  %v349_v58 = vld [vmem:[#allocation14 + $0x98] sm:$0xff] }
 0x11c   :  { %1167 = vmatpush.msra.mxu3 %v648_v62  ;;  %1225 = vmatpush.msrb.mxu1 %v649_v2  ;;  %v3520_v62 = vld [vmem:[#allocation16] sm:$0xff] }
 0x11d   :  { %931 = vmatmul.f32.gmra.mxu2 %v3462_v8  ;;  %989 = vmatmul.f32.gmra.mxu0 %v3462_v8 }
 0x11e   :  { %960 = vmatmul.f32.gmra.mxu3 %v3464_v0  ;;  %1018 = vmatmul.f32.gmra.mxu1 %v3464_v0 }
 0x11f   :  { %1139 = vmatpush.msra.mxu2 %v478_v61  ;;  %1197 = vmatpush.msrb.mxu0 %v479_v1  ;;  %v519_v61 = vld [vmem:[#allocation14 + $0x5e8] sm:$0xff]  ;;  %v338_v1 = vld [vmem:[#allocation14 + $0x40] sm:$0xff] }
 0x120   :  { %1168 = vmatpush.msra.mxu3 %v638_v4  ;;  %1226 = vmatpush.msrb.mxu1 %v639_v6  ;;  %v339_v4 = vld [vmem:[#allocation14 + $0x48] sm:$0xff]  ;;  %v654_v6 = vperm.slane %v3520_v62, 0 }
 0x121   :  { %1140 = vmatpush.msra.mxu2 %v468_v3  ;;  %1198 = vmatpush.msrb.mxu0 %v469_v5  ;;  %v508_v3 = vld [vmem:[#allocation14 + $0x590] sm:$0xff]  ;;  %v509_v5 = vld [vmem:[#allocation14 + $0x598] sm:$0xff] }
 0x122   :  { %1169 = vmatpush.msra.mxu3 %v628_v19  ;;  %1227 = vmatpush.msrb.mxu1 %v629_v20  ;;  %v498_v19 = vld [vmem:[#allocation14 + $0x540] sm:$0xff] }
 0x123   :  { %1141 = vmatpush.msra.mxu2 %v458_v7  ;;  %1199 = vmatpush.msrb.mxu0 %v459_v9  ;;  %v1257_v7 = vld [vmem:[#allocation5 + $0x18] sm:$0xff]  ;;  %v499_v9 = vld [vmem:[#allocation14 + $0x548] sm:$0xff] }
 0x124   :  { %1170 = vmatpush.msra.mxu3 %v618_v10  ;;  %1228 = vmatpush.msrb.mxu1 %v619_v60 }
 0x125   :  { %1038 = vmatmul.f32.vlgmr.msrb.gmra.mxu2 %v3414_v50  ;;  %1096 = vmatmul.f32.vlgmr.msra.gmra.mxu0 %v3414_v50 }
 0x126   :  { %1067 = vmatmul.f32.vlgmr.msrb.gmra.mxu3 %v3416_v51  ;;  %1125 = vmatmul.f32.vlgmr.msra.gmra.mxu1 %v3416_v51 }
 0x127   :  { %1142 = vmatpush.msra.mxu2 %v448_v63  ;;  %1200 = vmatpush.msrb.mxu0 %v449_v11  ;;  %v1256_v11 = vld [vmem:[#allocation5 + $0x10] sm:$0xff] }
 0x128   :  { %1171 = vmatpush.msra.mxu3 %v608_v13  ;;  %1229 = vmatpush.msrb.mxu1 %v609_v15  ;;  %v1255_v13 = vld [vmem:[#allocation5 + $0x8] sm:$0xff]  ;;  %v1254_v15 = vld [vmem:[#allocation5] sm:$0xff] }
 0x129   :  { %1143 = vmatpush.msra.mxu2 %v438_v12  ;;  %1201 = vmatpush.msrb.mxu0 %v439_v14 }
 0x12a   :  { %1172 = vmatpush.msra.mxu3 %v598_v17  ;;  %1230 = vmatpush.msrb.mxu1 %v599_v21 }
 0x12b   :  { %1144 = vmatpush.msra.mxu2 %v428_v16  ;;  %1202 = vmatpush.msrb.mxu0 %v429_v18 }
 0x12c   :  { %1173 = vmatpush.msra.mxu3 %v588_v24  ;;  %1231 = vmatpush.msrb.mxu1 %v589_v28 }
 0x12d   :  { %1041 = vmatmul.f32.gmra.mxu2 %v3438_v22  ;;  %1099 = vmatmul.f32.gmra.mxu0 %v3438_v22 }
 0x12e   :  { %1070 = vmatmul.f32.gmra.mxu3 %v3440_v23  ;;  %1128 = vmatmul.f32.gmra.mxu1 %v3440_v23 }
 0x12f   :  { %1145 = vmatpush.msra.mxu2 %v418_v59  ;;  %1203 = vmatpush.msrb.mxu0 %v419_v27 }
 0x130   :  { %1174 = vmatpush.msra.mxu3 %v578_v30  ;;  %1232 = vmatpush.msrb.mxu1 %v579_v34 }
 0x131   :  { %1146 = vmatpush.msra.mxu2 %v408_v29  ;;  %1204 = vmatpush.msrb.mxu0 %v409_v33 }
 0x132   :  { %1175 = vmatpush.msra.mxu3 %v568_v36  ;;  %1233 = vmatpush.msrb.mxu1 %v569_v38  ;;  %v2994_v36 = vld [vmem:[#allocation2] sm:$0xff] }
 0x133   :  { %1147 = vmatpush.msra.mxu2 %v398_v35  ;;  %1205 = vmatpush.msrb.mxu0 %v399_v37  ;;  %v656_v35 = vperm.slane %v3520_v62, 2 }
 0x134   :  { %1176 = vmatpush.msra.mxu3 %v558_v40  ;;  %1234 = vmatpush.msrb.mxu1 %v559_v42  ;;  %v2995_v42 = vld [vmem:[#allocation2 + $0x8] sm:$0xff] }
 0x135   :  { %1044 = vmatmul.f32.gmra.mxu2 %v3452_v25  ;;  %1102 = vmatmul.f32.gmra.mxu0 %v3452_v25 }
 0x136   :  { %1073 = vmatmul.f32.gmra.mxu3 %v3454_v26  ;;  %1131 = vmatmul.f32.gmra.mxu1 %v3454_v26 }
 0x137   :  { %1148 = vmatpush.msra.mxu2 %v388_v39  ;;  %1206 = vmatpush.msrb.mxu0 %v389_v41 }
 0x138   :  { %1177 = vmatpush.msra.mxu3 %v548_v43  ;;  %1235 = vmatpush.msrb.mxu1 %v549_v45 }
 0x139   :  { %1149 = vmatpush.msra.mxu2 %v378_v31  ;;  %1207 = vmatpush.msrb.mxu0 %v379_v44 }
 0x13a   :  { %1178 = vmatpush.msra.mxu3 %v538_v47  ;;  %1236 = vmatpush.msrb.mxu1 %v539_v32  ;;  %v2996_v47 = vld [vmem:[#allocation2 + $0x10] sm:$0xff] }
 0x13b   :  { %1150 = vmatpush.msra.mxu2 %v368_v46  ;;  %1208 = vmatpush.msrb.mxu0 %v369_v48 }
 0x13c   :  { %1179 = vmatpush.msra.mxu3 %v528_v52  ;;  %1237 = vmatpush.msrb.mxu1 %v529_v54 }
 0x13d   :  { %1047 = vmatmul.f32.gmra.mxu2 %v3462_v8  ;;  %1105 = vmatmul.f32.gmra.mxu0 %v3462_v8 }
 0x13e   :  { %1076 = vmatmul.f32.gmra.mxu3 %v3464_v0  ;;  %1134 = vmatmul.f32.gmra.mxu1 %v3464_v0 }
 0x13f   :  { %1151 = vmatpush.msra.mxu2 %v358_v49  ;;  %1209 = vmatpush.msrb.mxu0 %v359_v53 }
 0x140   :  { %1180 = vmatpush.msra.mxu3 %v518_v57  ;;  %1238 = vmatpush.msrb.mxu1 %v519_v61  ;;  %v2997_v57 = vld [vmem:[#allocation2 + $0x18] sm:$0xff] }
 0x141   :  { %1152 = vmatpush.msra.mxu2 %v348_v55  ;;  %1210 = vmatpush.msrb.mxu0 %v349_v58  ;;  %v659_v55 = vperm.slane %v3520_v62, 5 }
 0x142   :  { %v3518_v56 = vpop.f32.mrf.mxu0  ;;  %1181 = vmatpush.msra.mxu3 %v508_v3  ;;  %1239 = vmatpush.msrb.mxu1 %v509_v5 }
 0x143   :  { %v3522_v2 = vpop.f32.mrf.mxu1  ;;  %1153 = vmatpush.msra.mxu2 %v338_v1  ;;  %1211 = vmatpush.msrb.mxu0 %v339_v4 }
 0x144   :  { %1182 = vmatpush.msra.mxu3 %v498_v19  ;;  %1240 = vmatpush.msrb.mxu1 %v499_v9  ;;  %v658_v19 = vperm.slane %v3520_v62, 4 }
 0x145   :  { %1154 = vmatmul.f32.vlgmr.msra.gmra.mxu2 %v3414_v50  ;;  %1212 = vmatmul.f32.vlgmr.msrb.gmra.mxu0 %v3414_v50 }
 0x146   :  { %1274 = vmatpush.msrb.mxu2 %v1257_v7  ;;  %1183 = vmatmul.f32.vlgmr.msra.gmra.mxu3 %v3416_v51 }
 0x147   :  { %1241 = vmatmul.f32.vlgmr.msrb.gmra.mxu1 %v3416_v51 }
 0x148   :  { %v691_v20 = vpop.f32.mrf.mxu2  ;;  %1275 = vmatpush.msrb.mxu2 %v1256_v11 }
 0x149   :  { %v692_v63 = vadd.f32 %v691_v20, %v654_v6  ;;  %v720_v10 = vpop.f32.mrf.mxu3 }
 0x14a   :  { %v3530_v12 = vpop.f32.mrf.mxu0  ;;  %1276 = vmatpush.msrb.mxu2 %v1255_v13 }
 0x14b   :  { %v3528_v60 = vadd.f32 %v720_v10, %v692_v63  ;;  %v3533_v14 = vpop.f32.mrf.mxu1 }
 0x14c   :  { %1277 = vmatpush.msrb.mxu2 %v1254_v15 }
 0x14d   :  { %1157 = vmatmul.f32.gmra.mxu2 %v3438_v22  ;;  %1215 = vmatmul.f32.gmra.mxu0 %v3438_v22 }
 0x14e   :  { %1186 = vmatmul.f32.gmra.mxu3 %v3440_v23 }
 0x14f   :  { %1244 = vmatmul.f32.gmra.mxu1 %v3440_v23 }
 0x150   :  { %v694_v50 = vpop.f32.mrf.mxu2 }
 0x151   :  { %v695_v16 = vadd.f32 %v694_v50, %v654_v6  ;;  %v723_v17 = vpop.f32.mrf.mxu3 }
 0x152   :  { %v3538_v18 = vpop.f32.mrf.mxu0 }
 0x153   :  { %v3541_v51 = vadd.f32 %v723_v17, %v695_v16  ;;  %v3543_v21 = vpop.f32.mrf.mxu1 }
 0x155   :  { %1160 = vmatmul.f32.gmra.mxu2 %v3452_v25  ;;  %1218 = vmatmul.f32.gmra.mxu0 %v3452_v25 }
 0x156   :  { %1189 = vmatmul.f32.gmra.mxu3 %v3454_v26 }
 0x157   :  { %1247 = vmatmul.f32.gmra.mxu1 %v3454_v26 }
 0x158   :  { %v697_v59 = vpop.f32.mrf.mxu2 }
 0x159   :  { %v698_v24 = vadd.f32 %v697_v59, %v654_v6  ;;  %v726_v22 = vpop.f32.mrf.mxu3 }
 0x15a   :  { %v3548_v27 = vpop.f32.mrf.mxu0 }
 0x15b   :  { %v3551_v28 = vadd.f32 %v726_v22, %v698_v24  ;;  %v3553_v23 = vpop.f32.mrf.mxu1 }
 0x15d   :  { %1163 = vmatmul.f32.gmra.mxu2 %v3462_v8  ;;  %1221 = vmatmul.f32.gmra.mxu0 %v3462_v8 }
 0x15e   :  { %1192 = vmatmul.f32.gmra.mxu3 %v3464_v0 }
 0x15f   :  { %1250 = vmatmul.f32.gmra.mxu1 %v3464_v0 }
 0x160   :  { %v700_v29 = vpop.f32.mrf.mxu2 }
 0x161   :  { %v701_v30 = vadd.f32 %v700_v29, %v654_v6  ;;  %v729_v25 = vpop.f32.mrf.mxu3 }
 0x162   :  { %v3558_v33 = vpop.f32.mrf.mxu0 }
 0x163   :  { %v3561_v34 = vadd.f32 %v729_v25, %v701_v30  ;;  %v3563_v26 = vpop.f32.mrf.mxu1 }
 0x165   :  { %2922 = vmatmul.msk.f32.vlgmr.msrb.gmra.mxu2 %vm187_vm0, %v2994_v36 }
 0x168   :  { %v807_v37 = vpop.f32.mrf.mxu2 }
 0x169   :  { %v808_v8 = vadd.f32 %v807_v37, %v656_v35  ;;  %v836_v38 = vpop.f32.mrf.mxu3 }
 0x16a   :  { %v3567_v39 = vpop.f32.mrf.mxu0 }
 0x16b   :  { %v3569_v40 = vadd.f32 %v836_v38, %v808_v8  ;;  %v3571_v41 = vpop.f32.mrf.mxu1 }
 0x16d   :  { %2923 = vmatmul.msk.f32.gmra.mxu2 %vm187_vm0, %v2995_v42 }
 0x170   :  { %v810_v0 = vpop.f32.mrf.mxu2 }
 0x171   :  { %v811_v31 = vadd.f32 %v810_v0, %v656_v35  ;;  %v839_v43 = vpop.f32.mrf.mxu3 }
 0x172   :  { %v3574_v44 = vpop.f32.mrf.mxu0 }
 0x173   :  { %v3576_v45 = vadd.f32 %v839_v43, %v811_v31  ;;  %v3578_v46 = vpop.f32.mrf.mxu1  ;;  %v661_v43 = vperm.slane %v3520_v62, 7 }
 0x175   :  { %2924 = vmatmul.msk.f32.gmra.mxu2 %vm187_vm0, %v2996_v47 }
 0x178   :  { %v813_v48 = vpop.f32.mrf.mxu2 }
 0x179   :  { %v814_v32 = vadd.f32 %v813_v48, %v656_v35  ;;  %v842_v49 = vpop.f32.mrf.mxu3 }
 0x17a   :  { %v3581_v52 = vpop.f32.mrf.mxu0 }
 0x17b   :  { %v3583_v53 = vadd.f32 %v842_v49, %v814_v32  ;;  %v3585_v54 = vpop.f32.mrf.mxu1 }
 0x17d   :  { %2925 = vmatmul.msk.f32.gmra.mxu2 %vm187_vm0, %v2997_v57 }
 0x180   :  { %v816_v58 = vpop.f32.mrf.mxu2 }
 0x181   :  { %v817_v61 = vadd.f32 %v816_v58, %v656_v35  ;;  %v845_v1 = vpop.f32.mrf.mxu3 }
 0x182   :  { %v981_v3 = vpop.f32.mrf.mxu0 }
 0x183   :  { %v3589_v4 = vadd.f32 %v845_v1, %v817_v61  ;;  %v982_v5 = vadd.f32 %v981_v3, %v659_v55  ;;  %v1010_v6 = vpop.f32.mrf.mxu1  ;;  %v660_v3 = vperm.slane %v3520_v62, 6 }
 0x185   :  { %v3591_v7 = vadd.f32 %v1010_v6, %v982_v5 }
 0x188   :  { %v923_v9 = vpop.f32.mrf.mxu2 }
 0x189   :  { %v924_v20 = vadd.f32 %v923_v9, %v658_v19  ;;  %v952_v63 = vpop.f32.mrf.mxu3 }
 0x18a   :  { %v984_v10 = vpop.f32.mrf.mxu0 }
 0x18b   :  { %v3594_v11 = vadd.f32 %v952_v63, %v924_v20  ;;  %v985_v13 = vadd.f32 %v984_v10, %v659_v55  ;;  %v1013_v15 = vpop.f32.mrf.mxu1 }
 0x18d   :  { %v3596_v50 = vadd.f32 %v1013_v15, %v985_v13 }
 0x190   :  { %v926_v16 = vpop.f32.mrf.mxu2 }
 0x191   :  { %v927_v17 = vadd.f32 %v926_v16, %v658_v19  ;;  %v955_v59 = vpop.f32.mrf.mxu3 }
 0x192   :  { %v987_v24 = vpop.f32.mrf.mxu0 }
 0x193   :  { %v3598_v22 = vadd.f32 %v955_v59, %v927_v17  ;;  %v988_v29 = vadd.f32 %v987_v24, %v659_v55  ;;  %v1016_v30 = vpop.f32.mrf.mxu1 }
 0x195   :  { %v3600_v25 = vadd.f32 %v1016_v30, %v988_v29 }
 0x198   :  { %v929_v35 = vpop.f32.mrf.mxu2 }
 0x199   :  { %v930_v36 = vadd.f32 %v929_v35, %v658_v19  ;;  %v958_v37 = vpop.f32.mrf.mxu3 }
 0x19a   :  { %v990_v8 = vpop.f32.mrf.mxu0 }
 0x19b   :  { %v3602_v38 = vadd.f32 %v958_v37, %v930_v36  ;;  %v991_v42 = vadd.f32 %v990_v8, %v659_v55  ;;  %v1019_v0 = vpop.f32.mrf.mxu1 }
 0x19d   :  { %v3604_v31 = vadd.f32 %v1019_v0, %v991_v42 }
 0x1a0   :  { %v932_v47 = vpop.f32.mrf.mxu2 }
 0x1a1   :  { %v933_v48 = vadd.f32 %v932_v47, %v658_v19  ;;  %v961_v32 = vpop.f32.mrf.mxu3 }
 0x1a2   :  { %v1097_v49 = vpop.f32.mrf.mxu0 }
 0x1a3   :  { %v3607_v57 = vadd.f32 %v961_v32, %v933_v48  ;;  %v1098_v58 = vadd.f32 %v1097_v49, %v661_v43  ;;  %v1126_v61 = vpop.f32.mrf.mxu1  ;;  %v651_v32 = vld [vmem:[#allocation16 + $0x8] sm:$0x3] }
 0x1a5   :  { %v3609_v1 = vadd.f32 %v1126_v61, %v1098_v58  ;;  %v3624_v61 = vperm.slane %v651_v32, 1 }
 0x1a7   :  { %4486 = vst [vmem:[#allocation24_spill] sm:$0xff] %v3624_v61 }
 0x1a8   :  { %v1039_v5 = vpop.f32.mrf.mxu2 }
 0x1a9   :  { %v1040_v6 = vadd.f32 %v1039_v5, %v660_v3  ;;  %v1068_v55 = vpop.f32.mrf.mxu3 }
 0x1aa   :  { %v1100_v9 = vpop.f32.mrf.mxu0 }
 0x1ab   :  { %v3612_v20 = vadd.f32 %v1068_v55, %v1040_v6  ;;  %v1101_v63 = vadd.f32 %v1100_v9, %v661_v43  ;;  %v1129_v10 = vpop.f32.mrf.mxu1  ;;  %v1330_v6 = vld [vmem:[#allocation8 + $0x18] sm:$0xff] }
 0x1ac   :  { %1359 = vmatpush.msrb.mxu3 %v1330_v6  ;;  %v1328_v6 = vld [vmem:[#allocation8 + $0x8] sm:$0xff] }
 0x1ad   :  { %v3614_v13 = vadd.f32 %v1129_v10, %v1101_v63 }
 0x1b0   :  { %v1042_v19 = vpop.f32.mrf.mxu2 }
 0x1b1   :  { %v1043_v15 = vadd.f32 %v1042_v19, %v660_v3  ;;  %v1071_v16 = vpop.f32.mrf.mxu3  ;;  %v3629_v19 = vperm.slane %v651_v32, 0 }
 0x1b2   :  { %v1103_v17 = vpop.f32.mrf.mxu0 }
 0x1b3   :  { %v3616_v59 = vadd.f32 %v1071_v16, %v1043_v15  ;;  %v1104_v24 = vadd.f32 %v1103_v17, %v661_v43  ;;  %v1132_v29 = vpop.f32.mrf.mxu1  ;;  %4487 = vst [vmem:[#allocation25_spill] sm:$0xff] %v3629_v19 }
 0x1b5   :  { %v3618_v30 = vadd.f32 %v1132_v29, %v1104_v24 }
 0x1b8   :  { %v1045_v35 = vpop.f32.mrf.mxu2 }
 0x1b9   :  { %v1046_v36 = vadd.f32 %v1045_v35, %v660_v3  ;;  %v1074_v37 = vpop.f32.mrf.mxu3 }
 0x1ba   :  { %v1106_v42 = vpop.f32.mrf.mxu0 }
 0x1bb   :  { %v3620_v8 = vadd.f32 %v1074_v37, %v1046_v36  ;;  %v1107_v0 = vadd.f32 %v1106_v42, %v661_v43  ;;  %v1135_v47 = vpop.f32.mrf.mxu1 }
 0x1bd   :  { %v3622_v48 = vadd.f32 %v1135_v47, %v1107_v0 }
 0x1c0   :  { %v1048_v49 = vpop.f32.mrf.mxu2 }
 0x1c1   :  { %v1049_v58 = vadd.f32 %v1048_v49, %v660_v3  ;;  %v1077_v5 = vpop.f32.mrf.mxu3 }
 0x1c2   :  { %v1213_v9 = vpop.f32.mrf.mxu0 }
 0x1c3   :  { %v3626_v55 = vadd.f32 %v1077_v5, %v1049_v58  ;;  %v1214_v63 = vadd.f32 %v1213_v9, %v3624_v61  ;;  %v1329_v5 = vld [vmem:[#allocation8 + $0x10] sm:$0xff] }
 0x1c4   :  { %v1242_v10 = vpop.f32.mrf.mxu1  ;;  %1360 = vmatpush.msrb.mxu3 %v1329_v5 }
 0x1c5   :  { %v3631_v43 = vadd.f32 %v1242_v10, %v1214_v63 }
 0x1c6   :  { %1361 = vmatpush.msrb.mxu3 %v1328_v6 }
 0x1c7   :  { %4488 = vst [vmem:[#allocation26_spill] sm:$0xff] %v3631_v43 }
 0x1c8   :  { %v1155_v15 = vpop.f32.mrf.mxu2 }
 0x1c9   :  { %v1156_v16 = vadd.f32 %v1155_v15, %v3629_v19  ;;  %v1184_v17 = vpop.f32.mrf.mxu3 }
 0x1ca   :  { %v1216_v3 = vpop.f32.mrf.mxu0 }
 0x1cb   :  { %v3634_v24 = vadd.f32 %v1184_v17, %v1156_v16  ;;  %v1217_v29 = vadd.f32 %v1216_v3, %v3624_v61  ;;  %v1327_v17 = vld [vmem:[#allocation8] sm:$0xff] }
 0x1cc   :  { %v1245_v35 = vpop.f32.mrf.mxu1  ;;  %1362 = vmatpush.msrb.mxu3 %v1327_v17 }
 0x1cd   :  { %4489 = vst [vmem:[#allocation27_spill] sm:$0xff] %v3634_v24  ;;  %v3637_v36 = vadd.f32 %v1245_v35, %v1217_v29  ;;  %v2958_v29 = vld [vmem:[#allocation7] ss:$0 sm:$0xff] }
 0x1cf   :  { %4490 = vst [vmem:[#allocation28_spill] sm:$0xff] %v3637_v36 }
 0x1d0   :  { %v1158_v37 = vpop.f32.mrf.mxu2 }
 0x1d1   :  { %v1159_v42 = vadd.f32 %v1158_v37, %v3629_v19  ;;  %v1187_v0 = vpop.f32.mrf.mxu3 }
 0x1d2   :  { %v1219_v47 = vpop.f32.mrf.mxu0 }
 0x1d3   :  { %v3640_v32 = vadd.f32 %v1187_v0, %v1159_v42  ;;  %v1220_v49 = vadd.f32 %v1219_v47, %v3624_v61 }
 0x1d4   :  { %v1248_v58 = vpop.f32.mrf.mxu1 }
 0x1d5   :  { %4491 = vst [vmem:[#allocation29_spill] sm:$0xff] %v3640_v32  ;;  %v3643_v9 = vadd.f32 %v1248_v58, %v1220_v49 }
 0x1d7   :  { %4492 = vst [vmem:[#allocation30_spill] sm:$0xff] %v3643_v9 }
 0x1d8   :  { %v1161_v63 = vpop.f32.mrf.mxu2 }
 0x1d9   :  { %v1162_v10 = vadd.f32 %v1161_v63, %v3629_v19  ;;  %v1190_v15 = vpop.f32.mrf.mxu3 }
 0x1db   :  { %v3646_v16 = vadd.f32 %v1190_v15, %v1162_v10 }
 0x1dd   :  { %4493 = vst [vmem:[#allocation31_spill] sm:$0xff] %v3646_v16 }
 0x1e0   :  { %v3648_v3 = vpop.f32.mrf.mxu2 }
 0x1e1   :  { %4494 = vst [vmem:[#allocation32_spill] sm:$0xff] %v3648_v3 }
 0x1e8   :  { %v1279_v35 = vpop.f32.mrf.mxu2 }
 0x1e9   :  { %v1280_v37 = vadd.f32 %v2958_v29, %v1279_v35 }
 0x1eb   :  { %v1295_v42 = vmul.f32 0.044715, %v1280_v37  ;;  %v1291_v19 = vmul.f32 0.5, %v1280_v37 }
 0x1ed   :  { %v1299_v0 = vmul.f32 %v1295_v42, %v1280_v37 }
 0x1ef   :  { %v1303_v47 = vmul.f32 %v1299_v0, %v1280_v37 }
 0x1f0   :  { %v1282_v49 = vpop.f32.mrf.mxu2 }
 0x1f1   :  { %v1307_v58 = vadd.f32 %v1303_v47, %v1280_v37  ;;  %v1283_v5 = vadd.f32 %v2958_v29, %v1282_v49 }
 0x1f3   :  { %v1311_v9 = vmul.f32 0.7978846, %v1307_v58  ;;  %v1296_v6 = vmul.f32 0.044715, %v1283_v5 }
 0x1f5   :  { %2978 = vtanh.f32 %v1311_v9  ;;  %v1300_v63 = vmul.f32 %v1296_v6, %v1283_v5 }
 0x1f7   :  { %v1304_v61 = vmul.f32 %v1300_v63, %v1283_v5  ;;  %v1292_v63 = vmul.f32 0.5, %v1283_v5 }
 0x1f8   :  { %v1285_v10 = vpop.f32.mrf.mxu2 }
 0x1f9   :  { %v1286_v15 = vadd.f32 %v2958_v29, %v1285_v10  ;;  %v1308_v36 = vadd.f32 %v1304_v61, %v1283_v5 }
 0x1fb   :  { %v2979_v17 = vpop.eup %2978  ;;  %v1297_v43 = vmul.f32 0.044715, %v1286_v15  ;;  %v1312_v3 = vmul.f32 0.7978846, %v1308_v36 }
 0x1fc   :  { %v1319_v16 = vadd.f32 1.0, %v2979_v17 }
 0x1fd   :  { %2980 = vtanh.f32 %v1312_v3  ;;  %v1301_v35 = vmul.f32 %v1297_v43, %v1286_v15  ;;  %v1293_v43 = vmul.f32 0.5, %v1286_v15 }
 0x1fe   :  { %v1323_v42 = vmul.f32 %v1319_v16, %v1291_v19 }
 0x1ff   :  { %v1305_v0 = vmul.f32 %v1301_v35, %v1286_v15 }
 0x200   :  { %v1288_v24 = vpop.f32.mrf.mxu2  ;;  %2926 = vmatmul.msk.f32.vlgmr.msrb.gmra.mxu3 %vm187_vm0, %v1323_v42  ;;  %v3654_v42 = vpop.f32.mrf.mxu3 }
 0x201   :  { %v1289_v47 = vadd.f32 %v2958_v29, %v1288_v24  ;;  %v1309_v49 = vadd.f32 %v1305_v0, %v1286_v15 }
 0x203   :  { %v2981_v9 = vpop.eup %2980  ;;  %v1298_v58 = vmul.f32 0.044715, %v1289_v47  ;;  %v1313_v6 = vmul.f32 0.7978846, %v1309_v49  ;;  %v1294_v24 = vmul.f32 0.5, %v1289_v47  ;;  %v1380_v49 = vlaneseq }
 0x204   :  { %v1320_v10 = vadd.f32 1.0, %v2981_v9 }
 0x205   :  { %2982 = vtanh.f32 %v1313_v6  ;;  %v1302_v61 = vmul.f32 %v1298_v58, %v1289_v47  ;;  %v3656_v9 = vshrl.u32 %v1380_v49, 7 }
 0x206   :  { %v1324_v32 = vmul.f32 %v1320_v10, %v1292_v63 }
 0x207   :  { %v1306_v36 = vmul.f32 %v1302_v61, %v1289_v47  ;;  %vm1412_vm1 = vcmp.lt.s32.totalorder %v3656_v9, 4  ;;  %vm1382_vm2 = vcmp.lt.s32.totalorder %v3656_v9, 7  ;;  %vm1397_vm3 = vcmp.lt.s32.totalorder %v3656_v9, 6 }
 0x208   :  { %2927 = vmatmul.msk.f32.gmra.mxu3 %vm187_vm0, %v1324_v32  ;;  %v2959_v32 = vld [vmem:[#allocation10] ss:$0 sm:$0xff] }
 0x209   :  { %v1310_v3 = vadd.f32 %v1306_v36, %v1289_v47 }
 0x20b   :  { %v2983_v19 = vpop.eup %2982  ;;  %v1314_v16 = vmul.f32 0.7978846, %v1310_v3 }
 0x20c   :  { %v1321_v37 = vadd.f32 1.0, %v2983_v19 }
 0x20d   :  { %2984 = vtanh.f32 %v1314_v16 }
 0x20e   :  { %v1325_v17 = vmul.f32 %v1321_v37, %v1293_v43 }
 0x210   :  { %2928 = vmatmul.msk.f32.gmra.mxu3 %vm187_vm0, %v1325_v17 }
 0x213   :  { %v2985_v29 = vpop.eup %2984 }
 0x214   :  { %v1322_v35 = vadd.f32 1.0, %v2985_v29 }
 0x216   :  { %v1326_v5 = vmul.f32 %v1322_v35, %v1294_v24 }
 0x218   :  { %2929 = vmatmul.msk.f32.gmra.mxu3 %vm187_vm0, %v1326_v5 }
 0x283   :  { %v1364_v0 = vpop.f32.mrf.mxu3 }
 0x284   :  { %v3658_v15 = vadd.f32 %v2959_v32, %v1364_v0 }
 0x286   :  { %v1410_v47 = vrot.slane %v3658_v15, 4  ;;  %v1378_v10 = vrot.slane %v3658_v15, 1  ;;  %v1395_v49 = vrot.slane %v3658_v15, 2 }
 0x28b   :  { %v1367_v58 = vpop.f32.mrf.mxu3 }
 0x28c   :  { %v3660_v6 = vadd.f32 %v2959_v32, %v1367_v58 }
 0x28e   :  { %v1411_v63 = vrot.slane %v3660_v6, 4  ;;  %v1379_v61 = vrot.slane %v3660_v6, 1  ;;  %v1396_v35 = vrot.slane %v3660_v6, 2 }
 0x290   :  { %v1413_v36 = vsel %vm1412_vm1, %v1410_v47, %v1411_v63  ;;  %v1383_v3 = vsel %vm1382_vm2, %v1378_v10, %v1379_v61  ;;  %v1414_v19 = vsel %vm1412_vm1, %v1411_v63, %v1410_v47  ;;  %v1384_v16 = vsel %vm1382_vm2, %v1379_v61, %v1378_v10 }
 0x291   :  { %1417 = vrot.lane.b32.xlu0 %v1413_v36, %s3267_s6  ;;  %1387 = vrot.lane.b32.xlu2 %v1383_v3, %s3268_s8  ;;  %v1398_v10 = vsel %vm1397_vm3, %v1395_v49, %v1396_v35 }
 0x293   :  { %v1370_v43 = vpop.f32.mrf.mxu3 }
 0x294   :  { %v3680_v37 = vadd.f32 %v2959_v32, %v1370_v43  ;;  %v1399_v43 = vsel %vm1397_vm3, %v1396_v35, %v1395_v49 }
 0x296   :  { %v1747_v29 = vrot.slane %v3680_v37, 4  ;;  %v1733_v5 = vrot.slane %v3680_v37, 2  ;;  %v1719_v47 = vrot.slane %v3680_v37, 1 }
 0x299   :  { %1419 = vrot.lane.b32.xlu0 %v1414_v19, %s3267_s6  ;;  %1389 = vrot.lane.b32.xlu2 %v1384_v16, %s3268_s8 }
 0x29b   :  { %v1373_v17 = vpop.f32.mrf.mxu3 }
 0x29c   :  { %v3682_v24 = vadd.f32 %v2959_v32, %v1373_v17 }
 0x29e   :  { %v1748_v0 = vrot.slane %v3682_v24, 4  ;;  %v1734_v58 = vrot.slane %v3682_v24, 2  ;;  %v1720_v63 = vrot.slane %v3682_v24, 1 }
 0x2a0   :  { %v1749_v32 = vsel %vm1412_vm1, %v1747_v29, %v1748_v0  ;;  %v1722_v61 = vsel %vm1382_vm2, %v1720_v63, %v1719_v47  ;;  %v1735_v36 = vsel %vm1397_vm3, %v1733_v5, %v1734_v58  ;;  %v1750_v3 = vsel %vm1412_vm1, %v1748_v0, %v1747_v29 }
 0x2a1   :  { %1753 = vrot.lane.b32.xlu1 %v1749_v32, %s3267_s6  ;;  %1402 = vrot.lane.b32.xlu0 %v1398_v10, %s3269_s28  ;;  %v1721_v19 = vsel %vm1382_vm2, %v1719_v47, %v1720_v63  ;;  %v1736_v16 = vsel %vm1397_vm3, %v1734_v58, %v1733_v5 }
 0x2a9   :  { %1755 = vrot.lane.b32.xlu1 %v1750_v3, %s3267_s6 }
 0x2b1   :  { %1404 = vrot.lane.b32.xlu1 %v1399_v43, %s3269_s28 }
 0x2b9   :  { %1725 = vrot.lane.b32.xlu1 %v1721_v19, %s3268_s8 }
 0x2c1   :  { %1741 = vrot.lane.b32.xlu1 %v1736_v16, %s3269_s28 }
 0x2eb   :  { %v1388_v17 = vpop.permute.xlu2 %1387 }
 0x2ec   :  { %v1393_v29 = vmul.f32 %v1388_v17, %v3528_v60 }
 0x2ee   :  { %1429 = vrot.lane.b32.xlu1 %v1393_v29, %s3267_s6 }
 0x2f3   :  { %v1390_v63 = vpop.permute.xlu2 %1389 }
 0x2f4   :  { %v1394_v10 = vmul.f32 %v1390_v63, %v3541_v51 }
 0x303   :  { %v1418_v0 = vpop.permute.xlu0 %1417 }
 0x304   :  { %v1423_v35 = vmul.f32 %v1418_v0, %v3528_v60 }
 0x306   :  { %1439 = vrot.lane.b32.xlu2 %v1423_v35, %s3267_s6 }
 0x30b   :  { %v1420_v49 = vpop.permute.xlu0 %1419 }
 0x30c   :  { %v1424_v47 = vmul.f32 %v1420_v49, %v3541_v51 }
 0x30e   :  { %1441 = vrot.lane.b32.xlu0 %v1424_v47, %s3267_s6  ;;  %1727 = vrot.lane.b32.xlu2 %v1722_v61, %s3268_s8 }
 0x313   :  { %v1754_v5 = vpop.permute.xlu1 %1753  ;;  %v1403_v16 = vpop.permute.xlu0 %1402 }
 0x314   :  { %v1759_v58 = vmul.f32 %v1754_v5, %v3551_v28 }
 0x316   :  { %1739 = vrot.lane.b32.xlu0 %v1735_v36, %s3269_s28  ;;  %1775 = vrot.lane.b32.xlu2 %v1759_v58, %s3267_s6  ;;  %v1408_v36 = vmul.f32 %v1403_v16, %v3528_v60 }
 0x31b   :  { %v1756_v32 = vpop.permute.xlu1 %1755 }
 0x31c   :  { %v1760_v3 = vmul.f32 %v1756_v32, %v3561_v34 }
 0x31e   :  { %1777 = vrot.lane.b32.xlu0 %v1760_v3, %s3267_s6  ;;  %1431 = vrot.lane.b32.xlu2 %v1394_v10, %s3267_s6 }
 0x323   :  { %v1405_v43 = vpop.permute.xlu1 %1404 }
 0x324   :  { %v1409_v49 = vmul.f32 %v1405_v43, %v3541_v51  ;;  %v655_v43 = vperm.slane %v3520_v62, 1 }
 0x326   :  { %v759_v62 = vadd.f32 %v3548_v27, %v655_v43  ;;  %v1377_v27 = vmul.f32 %v3660_v6, %v3541_v51 }
 0x32b   :  { %v1726_v19 = vpop.permute.xlu1 %1725 }
 0x32c   :  { %v1731_v61 = vmul.f32 %v1726_v19, %v3551_v28 }
 0x32e   :  { %1765 = vrot.lane.b32.xlu2 %v1731_v61, %s3267_s6 }
 0x333   :  { %v1742_v3 = vpop.permute.xlu1 %1741 }
 0x334   :  { %v1746_v19 = vmul.f32 %v1742_v3, %v3561_v34 }
 0x360   :  { %v1440_v17 = vpop.permute.xlu2 %1439 }
 0x361   :  { %v1445_v29 = vadd.f32 %v1440_v17, %v1408_v36  ;;  %v750_v36 = vadd.f32 %v3518_v56, %v655_v43  ;;  %v1430_v17 = vpop.permute.xlu1 %1429 }
 0x363   :  { %1449 = vrot.lane.b32.xlu0 %v1445_v29, %s3269_s28  ;;  %v1376_v29 = vmul.f32 %v3658_v15, %v3528_v60  ;;  %v3756_v60 = vadd.f32 %v3553_v23, %v759_v62 }
 0x368   :  { %v1728_v0 = vpop.permute.xlu2 %1727 }
 0x369   :  { %v1732_v35 = vmul.f32 %v1728_v0, %v3561_v34  ;;  %v3746_v0 = vadd.f32 %v3522_v2, %v750_v36 }
 0x36b   :  { %1767 = vrot.lane.b32.xlu0 %v1732_v35, %s3267_s6  ;;  %v1435_v35 = vadd.f32 %v1430_v17, %v1376_v29 }
 0x370   :  { %v1776_v32 = vpop.permute.xlu2 %1775 }
 0x380   :  { %v1442_v47 = vpop.permute.xlu0 %1441 }
 0x381   :  { %v1446_v5 = vadd.f32 %v1442_v47, %v1409_v49  ;;  %v1425_v47 = vmul.f32 %v3660_v6, %v3746_v0 }
 0x383   :  { %1451 = vrot.lane.b32.xlu1 %v1446_v5, %s3269_s28 }
 0x388   :  { %v1740_v58 = vpop.permute.xlu0 %1739 }
 0x389   :  { %v1745_v63 = vmul.f32 %v1740_v58, %v3551_v28 }
 0x38b   :  { %v1781_v10 = vadd.f32 %v1776_v32, %v1745_v63  ;;  %v1432_v63 = vpop.permute.xlu2 %1431 }
 0x38d   :  { %1785 = vrot.lane.b32.xlu1 %v1781_v10, %s3269_s28  ;;  %v1718_v10 = vmul.f32 %v3682_v24, %v3561_v34  ;;  %v1436_v34 = vadd.f32 %v1432_v63, %v1377_v27 }
 0x390   :  { %v1778_v61 = vpop.permute.xlu0 %1777 }
 0x391   :  { %v1782_v16 = vadd.f32 %v1778_v61, %v1746_v19  ;;  %v1762_v19 = vmul.f32 %v3680_v37, %v3756_v60 }
 0x393   :  { %1787 = vrot.lane.b32.xlu2 %v1782_v16, %s3269_s28  ;;  %v1766_v32 = vpop.permute.xlu2 %1765  ;;  %v753_v16 = vadd.f32 %v3530_v12, %v655_v43 }
 0x395   :  { %v3766_v17 = vadd.f32 %v3533_v14, %v753_v16  ;;  %v1717_v14 = vmul.f32 %v3680_v37, %v3551_v28 }
 0x397   :  { %v1426_v23 = vmul.f32 %v3658_v15, %v3766_v17 }
 0x3d5   :  { %v1450_v49 = vpop.permute.xlu0 %1449 }
 0x3d6   :  { %v1455_v5 = vadd.f32 %v1450_v49, %v1435_v35 }
 0x3d8   :  { %v3750_v58 = vadd.f32 %v1455_v5, %v1425_v47  ;;  %v756_v47 = vadd.f32 %v3538_v18, %v655_v43 }
 0x3da   :  { %v1483_v5 = vrot.slane %v3750_v58, 2  ;;  %v1469_v12 = vrot.slane %v3750_v58, 1  ;;  %v1497_v51 = vrot.slane %v3750_v58, 4  ;;  %v3791_v37 = vadd.f32 %v3543_v21, %v756_v47 }
 0x3dd   :  { %v1768_v56 = vpop.permute.xlu0 %1767 }
 0x3de   :  { %v1772_v2 = vadd.f32 %v1768_v56, %v1718_v10 }
 0x3ed   :  { %v1788_v3 = vpop.permute.xlu2 %1787 }
 0x3ee   :  { %v1792_v61 = vadd.f32 %v1788_v3, %v1772_v2  ;;  %v1771_v2 = vadd.f32 %v1766_v32, %v1717_v14 }
 0x3f0   :  { %v3761_v36 = vadd.f32 %v1792_v61, %v1762_v19  ;;  %v1761_v19 = vmul.f32 %v3682_v24, %v3791_v37 }
 0x3f5   :  { %v1452_v29 = vpop.permute.xlu1 %1451 }
 0x3f6   :  { %v1456_v35 = vadd.f32 %v1452_v29, %v1436_v34  ;;  %v1820_v29 = vrot.slane %v3761_v36, 2 }
 0x3f8   :  { %v1458_v49 = vadd.f32 %v1456_v35, %v1426_v23  ;;  %v1806_v23 = vrot.slane %v3761_v36, 1 }
 0x3fa   :  { %v1484_v62 = vrot.slane %v1458_v49, 2  ;;  %v1470_v56 = vrot.slane %v1458_v49, 1  ;;  %v1498_v6 = vrot.slane %v1458_v49, 4 }
 0x3fc   :  { %v1485_v63 = vsel %vm1397_vm3, %v1483_v5, %v1484_v62  ;;  %v1472_v15 = vsel %vm1382_vm2, %v1470_v56, %v1469_v12  ;;  %v1471_v18 = vsel %vm1382_vm2, %v1469_v12, %v1470_v56  ;;  %v1500_v43 = vsel %vm1412_vm1, %v1498_v6, %v1497_v51 }
 0x3fd   :  { %1489 = vrot.lane.b32.xlu2 %v1485_v63, %s3267_s6  ;;  %1477 = vrot.lane.b32.xlu1 %v1472_v15, %s3269_s28  ;;  %v1499_v10 = vsel %vm1412_vm1, %v1497_v51, %v1498_v6  ;;  %v1486_v28 = vsel %vm1397_vm3, %v1484_v62, %v1483_v5  ;;  %v1502_v27 = vmul.f32 %v1500_v43, %v3576_v45  ;;  %v1834_v12 = vrot.slane %v3761_v36, 4 }
 0x3fe   :  { %1475 = vrot.lane.b32.xlu0 %v1471_v18, %s3269_s28  ;;  %v1501_v34 = vmul.f32 %v1499_v10, %v3569_v40 }
 0x3ff   :  { %v1786_v3 = vpop.permute.xlu1 %1785 }
 0x400   :  { %v1791_v61 = vadd.f32 %v1786_v3, %v1771_v2 }
 0x402   :  { %v1793_v16 = vadd.f32 %v1791_v61, %v1761_v19 }
 0x404   :  { %v1819_v21 = vrot.slane %v1793_v16, 2  ;;  %v1805_v32 = vrot.slane %v1793_v16, 1  ;;  %v1833_v47 = vrot.slane %v1793_v16, 4 }
 0x405   :  { %1519 = vrot.lane.b32.xlu2 %v1502_v27, %s3267_s6  ;;  %1517 = vrot.lane.b32.xlu1 %v1501_v34, %s3267_s6 }
 0x406   :  { %1491 = vrot.lane.b32.xlu0 %v1486_v28, %s3267_s6  ;;  %v1821_v24 = vsel %vm1397_vm3, %v1819_v21, %v1820_v29  ;;  %v1808_v35 = vsel %vm1382_vm2, %v1806_v23, %v1805_v32  ;;  %v1807_v5 = vsel %vm1382_vm2, %v1805_v32, %v1806_v23  ;;  %v1836_v62 = vsel %vm1412_vm1, %v1834_v12, %v1833_v47 }
 0x407   :  { %v1835_v56 = vsel %vm1412_vm1, %v1833_v47, %v1834_v12  ;;  %v1838_v51 = vmul.f32 %v1836_v62, %v3589_v4  ;;  %v1822_v14 = vsel %vm1397_vm3, %v1820_v29, %v1819_v21 }
 0x408   :  { %v1837_v6 = vmul.f32 %v1835_v56, %v3583_v53 }
 0x40d   :  { %1825 = vrot.lane.b32.xlu2 %v1821_v24, %s3267_s6  ;;  %1813 = vrot.lane.b32.xlu1 %v1808_v35, %s3269_s28 }
 0x40e   :  { %1811 = vrot.lane.b32.xlu0 %v1807_v5, %s3269_s28 }
 0x415   :  { %1855 = vrot.lane.b32.xlu2 %v1838_v51, %s3267_s6  ;;  %1853 = vrot.lane.b32.xlu1 %v1837_v6, %s3267_s6 }
 0x416   :  { %1827 = vrot.lane.b32.xlu0 %v1822_v14, %s3267_s6 }
 0x41d   :  { %1463 = vrot.lane.b32.xlu1 %v1458_v49, %s3268_s8 }
 0x41e   :  { %1461 = vrot.lane.b32.xlu0 %v3750_v58, %s3268_s8 }
 0x457   :  { %v1490_v63 = vpop.permute.xlu2 %1489 }
 0x458   :  { %v1495_v28 = vmul.f32 %v1490_v63, %v3746_v0 }
 0x45f   :  { %v1520_v2 = vpop.permute.xlu2 %1519 }
 0x467   :  { %v1826_v34 = vpop.permute.xlu2 %1825 }
 0x468   :  { %v1831_v23 = vmul.f32 %v1826_v34, %v3791_v37 }
 0x46f   :  { %v1478_v15 = vpop.permute.xlu1 %1477  ;;  %v1856_v5 = vpop.permute.xlu2 %1855 }
 0x470   :  { %v1482_v18 = vmul.f32 %v1478_v15, %v3766_v17  ;;  %v1476_v43 = vpop.permute.xlu0 %1475 }
 0x471   :  { %v1481_v10 = vmul.f32 %v1476_v43, %v3746_v0 }
 0x472   :  { %1509 = vrot.lane.b32.xlu0 %v1482_v18, %s3267_s6 }
 0x473   :  { %1507 = vrot.lane.b32.xlu2 %v1481_v10, %s3267_s6 }
 0x477   :  { %v1518_v3 = vpop.permute.xlu1 %1517 }
 0x478   :  { %v1523_v19 = vadd.f32 %v1518_v3, %v1495_v28  ;;  %v1492_v49 = vpop.permute.xlu0 %1491 }
 0x479   :  { %v1496_v61 = vmul.f32 %v1492_v49, %v3766_v17 }
 0x47a   :  { %1527 = vrot.lane.b32.xlu1 %v1523_v19, %s3269_s28  ;;  %1797 = vrot.lane.b32.xlu0 %v1793_v16, %s3268_s8 }
 0x47b   :  { %v1524_v58 = vadd.f32 %v1520_v2, %v1496_v61 }
 0x47d   :  { %1529 = vrot.lane.b32.xlu2 %v1524_v58, %s3269_s28 }
 0x47f   :  { %v1814_v27 = vpop.permute.xlu1 %1813 }
 0x480   :  { %v1818_v21 = vmul.f32 %v1814_v27, %v3756_v60  ;;  %v1812_v32 = vpop.permute.xlu0 %1811 }
 0x481   :  { %v1817_v29 = vmul.f32 %v1812_v32, %v3791_v37 }
 0x482   :  { %1799 = vrot.lane.b32.xlu1 %v3761_v36, %s3268_s8  ;;  %1845 = vrot.lane.b32.xlu0 %v1818_v21, %s3267_s6 }
 0x485   :  { %1843 = vrot.lane.b32.xlu2 %v1817_v29, %s3267_s6 }
 0x487   :  { %v1854_v16 = vpop.permute.xlu1 %1853 }
 0x488   :  { %v1859_v24 = vadd.f32 %v1854_v16, %v1831_v23  ;;  %v1828_v35 = vpop.permute.xlu0 %1827 }
 0x489   :  { %v1832_v47 = vmul.f32 %v1828_v35, %v3756_v60 }
 0x48a   :  { %1863 = vrot.lane.b32.xlu1 %v1859_v24, %s3269_s28 }
 0x48b   :  { %v1860_v12 = vadd.f32 %v1856_v5, %v1832_v47 }
 0x48d   :  { %1865 = vrot.lane.b32.xlu2 %v1860_v12, %s3269_s28 }
 0x48f   :  { %v1464_v56 = vpop.permute.xlu1 %1463 }
 0x490   :  { %v1462_v36 = vpop.permute.xlu0 %1461  ;;  %v1468_v51 = vmul.f32 %v1464_v56, %v3766_v17  ;;  %v1503_v19 = vmul.f32 %v1464_v56, %v3569_v40 }
 0x491   :  { %v1504_v15 = vmul.f32 %v1462_v36, %v3576_v45  ;;  %v1467_v43 = vmul.f32 %v1462_v36, %v3746_v0 }
 0x4cd   :  { %v1508_v62 = vpop.permute.xlu2 %1507 }
 0x4ce   :  { %v1513_v28 = vadd.f32 %v1508_v62, %v1467_v43 }
 0x4d7   :  { %v1530_v6 = vpop.permute.xlu2 %1529 }
 0x4df   :  { %v1844_v17 = vpop.permute.xlu2 %1843 }
 0x4e4   :  { %v1510_v14 = vpop.permute.xlu0 %1509 }
 0x4e5   :  { %v1514_v63 = vadd.f32 %v1510_v14, %v1468_v51 }
 0x4e7   :  { %v1534_v18 = vadd.f32 %v1530_v6, %v1514_v63  ;;  %v1866_v32 = vpop.permute.xlu2 %1865 }
 0x4e9   :  { %v3849_v10 = vadd.f32 %v1534_v18, %v1504_v15 }
 0x4eb   :  { %1549 = vrot.lane.b32.xlu1 %v3849_v10, %s3267_s6 }
 0x4ec   :  { %v1528_v2 = vpop.permute.xlu1 %1527  ;;  %v1798_v3 = vpop.permute.xlu0 %1797 }
 0x4ed   :  { %v1533_v49 = vadd.f32 %v1528_v2, %v1513_v28  ;;  %v1803_v34 = vmul.f32 %v1798_v3, %v3791_v37  ;;  %v1840_v29 = vmul.f32 %v1798_v3, %v3589_v4 }
 0x4ef   :  { %v3854_v61 = vadd.f32 %v1533_v49, %v1503_v19  ;;  %v1849_v16 = vadd.f32 %v1844_v17, %v1803_v34 }
 0x4f1   :  { %1547 = vrot.lane.b32.xlu0 %v3854_v61, %s3267_s6 }
 0x4f4   :  { %v1800_v58 = vpop.permute.xlu1 %1799  ;;  %v1846_v27 = vpop.permute.xlu0 %1845 }
 0x4f5   :  { %v1804_v0 = vmul.f32 %v1800_v58, %v3756_v60  ;;  %v1839_v47 = vmul.f32 %v1800_v58, %v3583_v53 }
 0x4f7   :  { %v1850_v21 = vadd.f32 %v1846_v27, %v1804_v0  ;;  %v2998_v27 = vld [vmem:[#allocation16] sm:$0xff] }
 0x4f8   :  { %v657_v34 = vperm.slane %v2998_v27, 3 }
 0x4f9   :  { %v1870_v23 = vadd.f32 %v1866_v32, %v1850_v21 }
 0x4fa   :  { %v869_v21 = vadd.f32 %v3567_v39, %v657_v34  ;;  %v872_v39 = vadd.f32 %v3574_v44, %v657_v34 }
 0x4fb   :  { %v3861_v24 = vadd.f32 %v1870_v23, %v1840_v29 }
 0x4fc   :  { %v1864_v35 = vpop.permute.xlu1 %1863  ;;  %v3908_v32 = vadd.f32 %v3571_v41, %v869_v21  ;;  %v875_v41 = vadd.f32 %v3581_v52, %v657_v34 }
 0x4fd   :  { %v1869_v5 = vadd.f32 %v1864_v35, %v1849_v16  ;;  %1885 = vrot.lane.b32.xlu0 %v3861_v24, %s3267_s6  ;;  %v866_v16 = vadd.f32 %v3558_v33, %v657_v34 }
 0x4ff   :  { %v1871_v12 = vadd.f32 %v1869_v5, %v1839_v47  ;;  %v3914_v35 = vadd.f32 %v3563_v26, %v866_v16 }
 0x501   :  { %1883 = vrot.lane.b32.xlu2 %v1871_v12, %s3267_s6 }
 0x55b   :  { %v3881_v63 = vpop.permute.xlu2 %1883 }
 0x55c   :  { %v1909_v43 = vrot.slane %v3881_v63, 4  ;;  %v1889_v2 = vrot.slane %v3881_v63, 1 }
 0x55d   :  { %v3867_v60 = vpop.permute.xlu1 %1549 }
 0x55e   :  { %v1574_v62 = vrot.slane %v3867_v60, 4  ;;  %v1554_v14 = vrot.slane %v3867_v60, 1 }
 0x563   :  { %v3869_v37 = vpop.permute.xlu0 %1547 }
 0x564   :  { %v1573_v36 = vrot.slane %v3869_v37, 4  ;;  %v1553_v6 = vrot.slane %v3869_v37, 1 }
 0x566   :  { %v1576_v56 = vsel %vm1412_vm1, %v1574_v62, %v1573_v36  ;;  %v1575_v51 = vsel %vm1412_vm1, %v1573_v36, %v1574_v62  ;;  %v1555_v15 = vsel %vm1382_vm2, %v1553_v6, %v1554_v14  ;;  %v1556_v58 = vsel %vm1382_vm2, %v1554_v14, %v1553_v6 }
 0x567   :  { %1581 = vrot.lane.b32.xlu2 %v1576_v56, %s3268_s8  ;;  %1579 = vrot.lane.b32.xlu1 %v1575_v51, %s3268_s8  ;;  %v3921_v36 = vadd.f32 %v3578_v46, %v872_v39  ;;  %v3924_v62 = vadd.f32 %v3585_v54, %v875_v41 }
 0x56f   :  { %1559 = vrot.lane.b32.xlu2 %v1555_v15, %s3267_s6  ;;  %v3886_v18 = vpop.permute.xlu0 %1885 }
 0x570   :  { %v1910_v28 = vrot.slane %v3886_v18, 4  ;;  %v1890_v3 = vrot.slane %v3886_v18, 1 }
 0x572   :  { %v1912_v19 = vsel %vm1412_vm1, %v1910_v28, %v1909_v43  ;;  %v1911_v49 = vsel %vm1412_vm1, %v1909_v43, %v1910_v28  ;;  %v1892_v17 = vsel %vm1382_vm2, %v1890_v3, %v1889_v2  ;;  %v1891_v0 = vsel %vm1382_vm2, %v1889_v2, %v1890_v3 }
 0x573   :  { %1917 = vrot.lane.b32.xlu1 %v1912_v19, %s3268_s8  ;;  %1915 = vrot.lane.b32.xlu0 %v1911_v49, %s3268_s8  ;;  %v1904_v3 = vrot.slane %v3886_v18, 2 }
 0x57b   :  { %1561 = vrot.lane.b32.xlu0 %v1556_v58, %s3267_s6 }
 0x583   :  { %1895 = vrot.lane.b32.xlu0 %v1891_v0, %s3267_s6 }
 0x5c1   :  { %v1582_v29 = vpop.permute.xlu2 %1581 }
 0x5c2   :  { %v1586_v23 = vmul.f32 %v1582_v29, %v3908_v32 }
 0x5c4   :  { %1609 = vrot.lane.b32.xlu2 %v1586_v23, %s3267_s6 }
 0x5c9   :  { %v1560_v44 = vpop.permute.xlu2 %1559 }
 0x5ca   :  { %v1565_v46 = vmul.f32 %v1560_v44, %v3569_v40 }
 0x5d9   :  { %v1580_v47 = vpop.permute.xlu1 %1579 }
 0x5da   :  { %v1585_v5 = vmul.f32 %v1580_v47, %v3914_v35 }
 0x5dc   :  { %1607 = vrot.lane.b32.xlu1 %v1585_v5, %s3267_s6 }
 0x5e4   :  { %1897 = vrot.lane.b32.xlu1 %v1892_v17, %s3267_s6  ;;  %v1903_v17 = vrot.slane %v3881_v63, 2 }
 0x5e5   :  { %v1918_v33 = vpop.permute.xlu1 %1917  ;;  %v1916_v26 = vpop.permute.xlu0 %1915 }
 0x5e6   :  { %v1922_v56 = vmul.f32 %v1918_v33, %v3924_v62  ;;  %v1921_v51 = vmul.f32 %v1916_v26, %v3921_v36  ;;  %v1905_v58 = vsel %vm1397_vm3, %v1903_v17, %v1904_v3  ;;  %v1906_v0 = vsel %vm1397_vm3, %v1904_v3, %v1903_v17 }
 0x5e7   :  { %v1907_v21 = vmul.f32 %v1905_v58, %v3921_v36  ;;  %v1908_v29 = vmul.f32 %v1906_v0, %v3924_v62 }
 0x5e8   :  { %1943 = vrot.lane.b32.xlu2 %v1921_v51, %s3267_s6  ;;  %1945 = vrot.lane.b32.xlu0 %v1922_v56, %s3267_s6 }
 0x5ec   :  { %1539 = vrot.lane.b32.xlu1 %v3854_v61, %s3268_s8  ;;  %v1567_v61 = vrot.slane %v3869_v37, 2 }
 0x5ed   :  { %v1562_v52 = vpop.permute.xlu0 %1561 }
 0x5ee   :  { %v1566_v54 = vmul.f32 %v1562_v52, %v3576_v45 }
 0x5f0   :  { %1541 = vrot.lane.b32.xlu2 %v3849_v10, %s3268_s8  ;;  %1597 = vrot.lane.b32.xlu0 %v1565_v46, %s3267_s6  ;;  %v1568_v10 = vrot.slane %v3867_v60, 2 }
 0x5f2   :  { %v1570_v6 = vsel %vm1397_vm3, %v1568_v10, %v1567_v61 }
 0x5f3   :  { %v1572_v14 = vmul.f32 %v1570_v6, %v3908_v32 }
 0x5f4   :  { %1599 = vrot.lane.b32.xlu1 %v1566_v54, %s3267_s6 }
 0x5f5   :  { %v1896_v28 = vpop.permute.xlu0 %1895 }
 0x5f6   :  { %v1901_v2 = vmul.f32 %v1896_v28, %v3583_v53 }
 0x5f8   :  { %1587 = vrot.lane.b32.xlu2 %v3867_v60, %s3269_s28  ;;  %1589 = vrot.lane.b32.xlu0 %v3869_v37, %s3269_s28 }
 0x5fc   :  { %1877 = vrot.lane.b32.xlu1 %v3861_v24, %s3268_s8  ;;  %v1569_v24 = vsel %vm1397_vm3, %v1567_v61, %v1568_v10 }
 0x600   :  { %1875 = vrot.lane.b32.xlu0 %v1871_v12, %s3268_s8  ;;  %v1571_v12 = vmul.f32 %v1569_v24, %v3914_v35 }
 0x61e   :  { %v1610_v15 = vpop.permute.xlu2 %1609 }
 0x61f   :  { %v1614_v43 = vadd.f32 %v1610_v15, %v1572_v14 }
 0x621   :  { %1619 = vrot.lane.b32.xlu2 %v1614_v43, %s3269_s28 }
 0x629   :  { %1933 = vrot.lane.b32.xlu2 %v1901_v2, %s3267_s6 }
 0x631   :  { %1925 = vrot.lane.b32.xlu2 %v3881_v63, %s3269_s28 }
 0x642   :  { %v1944_v27 = vpop.permute.xlu2 %1943 }
 0x643   :  { %v1949_v23 = vadd.f32 %v1944_v27, %v1907_v21 }
 0x64a   :  { %v1542_v63 = vpop.permute.xlu2 %1541 }
 0x64b   :  { %v1546_v41 = vmul.f32 %v1542_v63, %v3576_v45 }
 0x64e   :  { %v1608_v60 = vpop.permute.xlu1 %1607 }
 0x64f   :  { %v1613_v37 = vadd.f32 %v1608_v60, %v1571_v12 }
 0x651   :  { %1617 = vrot.lane.b32.xlu1 %v1613_v37, %s3269_s28 }
 0x652   :  { %v1588_v5 = vpop.permute.xlu2 %1587 }
 0x653   :  { %v1593_v14 = vmul.f32 %v1588_v5, %v3914_v35 }
 0x656   :  { %v1898_v19 = vpop.permute.xlu1 %1897 }
 0x657   :  { %v1902_v49 = vmul.f32 %v1898_v19, %v3589_v4 }
 0x659   :  { %1923 = vrot.lane.b32.xlu1 %v3886_v18, %s3269_s28  ;;  %1935 = vrot.lane.b32.xlu0 %v1902_v49, %s3267_s6 }
 0x65a   :  { %v1946_v34 = vpop.permute.xlu0 %1945 }
 0x65b   :  { %v1950_v16 = vadd.f32 %v1946_v34, %v1908_v29 }
 0x65e   :  { %v1540_v18 = vpop.permute.xlu1 %1539 }
 0x65f   :  { %v1545_v54 = vmul.f32 %v1540_v18, %v3569_v40 }
 0x661   :  { %1953 = vrot.lane.b32.xlu0 %v1949_v23, %s3269_s28  ;;  %1955 = vrot.lane.b32.xlu1 %v1950_v16, %s3269_s28 }
 0x662   :  { %v1598_v47 = vpop.permute.xlu0 %1597 }
 0x663   :  { %v1603_v61 = vadd.f32 %v1598_v47, %v1545_v54 }
 0x666   :  { %v1600_v39 = vpop.permute.xlu1 %1599 }
 0x667   :  { %v1604_v26 = vadd.f32 %v1600_v39, %v1546_v41 }
 0x66a   :  { %v1590_v33 = vpop.permute.xlu0 %1589 }
 0x66b   :  { %v1594_v51 = vmul.f32 %v1590_v33, %v3908_v32 }
 0x66e   :  { %v1878_v52 = vpop.permute.xlu1 %1877 }
 0x66f   :  { %v1882_v24 = vmul.f32 %v1878_v52, %v3589_v4 }
 0x672   :  { %v1876_v10 = vpop.permute.xlu0 %1875 }
 0x673   :  { %v1881_v12 = vmul.f32 %v1876_v10, %v3583_v53 }
 0x67b   :  { %v1620_v56 = vpop.permute.xlu2 %1619 }
 0x67c   :  { %v1624_v44 = vadd.f32 %v1620_v56, %v1604_v26 }
 0x67e   :  { %v3976_v46 = vadd.f32 %v1624_v44, %v1594_v51 }
 0x680   :  { %1639 = vrot.lane.b32.xlu0 %v3976_v46, %s3269_s28 }
 0x683   :  { %v1934_v43 = vpop.permute.xlu2 %1933 }
 0x684   :  { %v1939_v37 = vadd.f32 %v1934_v43, %v1881_v12 }
 0x68b   :  { %v1926_v60 = vpop.permute.xlu2 %1925 }
 0x68c   :  { %v1930_v49 = vmul.f32 %v1926_v60, %v3924_v62 }
 0x6c3   :  { %v1618_v6 = vpop.permute.xlu1 %1617 }
 0x6c4   :  { %v1623_v45 = vadd.f32 %v1618_v6, %v1603_v61 }
 0x6c6   :  { %v1625_v15 = vadd.f32 %v1623_v45, %v1593_v14 }
 0x6c8   :  { %1637 = vrot.lane.b32.xlu2 %v1625_v15, %s3269_s28 }
 0x6cb   :  { %v1924_v28 = vpop.permute.xlu1 %1923  ;;  %v1936_v2 = vpop.permute.xlu0 %1935 }
 0x6cc   :  { %v1940_v3 = vadd.f32 %v1936_v2, %v1882_v24  ;;  %v1929_v17 = vmul.f32 %v1924_v28, %v3921_v36 }
 0x6d3   :  { %v1956_v40 = vpop.permute.xlu1 %1955  ;;  %v1954_v19 = vpop.permute.xlu0 %1953 }
 0x6d4   :  { %v1960_v58 = vadd.f32 %v1956_v40, %v1940_v3  ;;  %v1959_v0 = vadd.f32 %v1954_v19, %v1939_v37 }
 0x6d6   :  { %v3987_v27 = vadd.f32 %v1960_v58, %v1930_v49  ;;  %v1961_v34 = vadd.f32 %v1959_v0, %v1929_v17 }
 0x6d8   :  { %1975 = vrot.lane.b32.xlu2 %v3987_v27, %s3269_s28  ;;  %1973 = vrot.lane.b32.xlu1 %v1961_v34, %s3269_s28 }
 0x6f2   :  { %v1640_v53 = vpop.permute.xlu0 %1639 }
 0x6f3   :  { %v1664_v29 = vrot.slane %v1640_v53, 4  ;;  %v1650_v18 = vrot.slane %v1640_v53, 2  ;;  %v1644_v28 = vrot.slane %v1640_v53, 1 }
 0x722   :  { %v1638_v4 = vpop.permute.xlu2 %1637 }
 0x723   :  { %v1663_v21 = vrot.slane %v1638_v4, 4  ;;  %v1649_v63 = vrot.slane %v1638_v4, 2  ;;  %v1643_v14 = vrot.slane %v1638_v4, 1 }
 0x725   :  { %v1666_v23 = vsel %vm1412_vm1, %v1664_v29, %v1663_v21  ;;  %v1665_v16 = vsel %vm1412_vm1, %v1663_v21, %v1664_v29  ;;  %v1651_v47 = vsel %vm1397_vm3, %v1649_v63, %v1650_v18  ;;  %v1652_v51 = vsel %vm1397_vm3, %v1650_v18, %v1649_v63 }
 0x726   :  { %1671 = vrot.lane.b32.xlu1 %v1666_v23, %s3269_s28  ;;  %1669 = vrot.lane.b32.xlu0 %v1665_v16, %s3269_s28  ;;  %v1645_v2 = vsel %vm1382_vm2, %v1643_v14, %v1644_v28  ;;  %v1646_v40 = vsel %vm1382_vm2, %v1644_v28, %v1643_v14 }
 0x727   :  { %v1647_v60 = vmul.f32 %v1645_v2, %v3594_v11  ;;  %v1648_v19 = vmul.f32 %v1646_v40, %v3598_v22 }
 0x72e   :  { %1655 = vrot.lane.b32.xlu1 %v1651_v47, %s3268_s8 }
 0x732   :  { %v4001_v5 = vpop.permute.xlu2 %1975 }
 0x733   :  { %v2000_v33 = vrot.slane %v4001_v5, 4  ;;  %v1986_v6 = vrot.slane %v4001_v5, 2  ;;  %v1980_v0 = vrot.slane %v4001_v5, 1 }
 0x74a   :  { %v4003_v39 = vpop.permute.xlu1 %1973 }
 0x74b   :  { %v1999_v41 = vrot.slane %v4003_v39, 4  ;;  %v1985_v10 = vrot.slane %v4003_v39, 2  ;;  %v1979_v58 = vrot.slane %v4003_v39, 1 }
 0x74d   :  { %v2001_v26 = vsel %vm1412_vm1, %v1999_v41, %v2000_v33  ;;  %v2002_v56 = vsel %vm1412_vm1, %v2000_v33, %v1999_v41  ;;  %v1987_v45 = vsel %vm1397_vm3, %v1985_v10, %v1986_v6  ;;  %v1988_v43 = vsel %vm1397_vm3, %v1986_v6, %v1985_v10 }
 0x74e   :  { %2005 = vrot.lane.b32.xlu2 %v2001_v26, %s3269_s28  ;;  %2007 = vrot.lane.b32.xlu0 %v2002_v56, %s3269_s28  ;;  %v1982_v41 = vsel %vm1382_vm2, %v1980_v0, %v1979_v58 }
 0x756   :  { %1657 = vrot.lane.b32.xlu0 %v1652_v51, %s3268_s8  ;;  %v1984_v51 = vmul.f32 %v1982_v41, %v3607_v57 }
 0x798   :  { %v1672_v44 = vpop.permute.xlu1 %1671  ;;  %v1670_v52 = vpop.permute.xlu0 %1669 }
 0x799   :  { %v1676_v54 = vmul.f32 %v1672_v44, %v3598_v22  ;;  %v1675_v61 = vmul.f32 %v1670_v52, %v3594_v11 }
 0x79b   :  { %1697 = vrot.lane.b32.xlu2 %v1675_v61, %s3267_s6  ;;  %1699 = vrot.lane.b32.xlu1 %v1676_v54, %s3267_s6 }
 0x7a3   :  { %1991 = vrot.lane.b32.xlu2 %v1987_v45, %s3268_s8  ;;  %1993 = vrot.lane.b32.xlu1 %v1988_v43, %s3268_s8 }
 0x7a8   :  { %v2006_v24 = vpop.permute.xlu2 %2005 }
 0x7a9   :  { %v2011_v12 = vmul.f32 %v2006_v24, %v3602_v38  ;;  %v2057_v24 = vld [vmem:[#allocation5 + $0x38] sm:$0xff] }
 0x7aa   :  { %2095 = vmatpush.msra.mxu0 %v2057_v24 }
 0x7ab   :  { %2033 = vrot.lane.b32.xlu0 %v2011_v12, %s3267_s6  ;;  %1687 = vrot.lane.b32.xlu1 %v1647_v60, %s3267_s6  ;;  %v2056_v12 = vld [vmem:[#allocation5 + $0x30] sm:$0xff]  ;;  %v2054_v60 = vld [vmem:[#allocation5 + $0x20] sm:$0xff] }
 0x7ac   :  { %2096 = vmatpush.msra.mxu0 %v2056_v12 }
 0x7b3   :  { %1629 = vrot.lane.b32.xlu0 %v1625_v15, %s3268_s8  ;;  %1631 = vrot.lane.b32.xlu1 %v3976_v46, %s3268_s8  ;;  %v1656_v15 = vpop.permute.xlu1 %1655 }
 0x7b4   :  { %v1661_v46 = vmul.f32 %v1656_v15, %v3594_v11 }
 0x7bb   :  { %1679 = vrot.lane.b32.xlu0 %v1638_v4, %s3267_s6 }
 0x7c0   :  { %v2008_v37 = vpop.permute.xlu0 %2007 }
 0x7c1   :  { %v2012_v3 = vmul.f32 %v2008_v37, %v3607_v57 }
 0x7c3   :  { %2035 = vrot.lane.b32.xlu2 %v2012_v3, %s3267_s6 }
 0x7cb   :  { %1677 = vrot.lane.b32.xlu2 %v1640_v53, %s3267_s6  ;;  %v1981_v53 = vsel %vm1382_vm2, %v1979_v58, %v1980_v0 }
 0x7cc   :  { %v1983_v4 = vmul.f32 %v1981_v53, %v3602_v38 }
 0x7d3   :  { %1689 = vrot.lane.b32.xlu2 %v1648_v19, %s3267_s6 }
 0x7db   :  { %1965 = vrot.lane.b32.xlu2 %v1961_v34, %s3268_s8  ;;  %v1658_v34 = vpop.permute.xlu0 %1657 }
 0x7dc   :  { %v1662_v21 = vmul.f32 %v1658_v34, %v3598_v22 }
 0x7f5   :  { %v1698_v49 = vpop.permute.xlu2 %1697 }
 0x7f6   :  { %v1703_v17 = vadd.f32 %v1698_v49, %v1661_v46 }
 0x7f8   :  { %1707 = vrot.lane.b32.xlu0 %v1703_v17, %s3269_s28 }
 0x7fd   :  { %v1992_v16 = vpop.permute.xlu2 %1991 }
 0x7fe   :  { %v1997_v18 = vmul.f32 %v1992_v16, %v3602_v38 }
 0x800   :  { %2023 = vrot.lane.b32.xlu0 %v1983_v4, %s3267_s6 }
 0x808   :  { %1967 = vrot.lane.b32.xlu0 %v3987_v27, %s3268_s8 }
 0x80d   :  { %v1700_v29 = vpop.permute.xlu1 %1699 }
 0x80e   :  { %v1704_v23 = vadd.f32 %v1700_v29, %v1662_v21 }
 0x810   :  { %1709 = vrot.lane.b32.xlu1 %v1704_v23, %s3269_s28 }
 0x815   :  { %v1994_v63 = vpop.permute.xlu1 %1993 }
 0x816   :  { %v1998_v47 = vmul.f32 %v1994_v63, %v3607_v57 }
 0x818   :  { %2013 = vrot.lane.b32.xlu1 %v4001_v5, %s3267_s6 }
 0x81d   :  { %v2036_v27 = vpop.permute.xlu2 %2035  ;;  %v2034_v33 = vpop.permute.xlu0 %2033 }
 0x81e   :  { %v2040_v26 = vadd.f32 %v2036_v27, %v1998_v47  ;;  %v2039_v56 = vadd.f32 %v2034_v33, %v1997_v18  ;;  %v1688_v54 = vpop.permute.xlu1 %1687  ;;  %v2152_v27 = vld [vmem:[#allocation8 + $0x38] sm:$0xff]  ;;  %v2151_v33 = vld [vmem:[#allocation8 + $0x30] sm:$0xff] }
 0x81f   :  { %2182 = vmatpush.msra.mxu1 %v2152_v27  ;;  %v4092_v27 = vpop.f32.mrf.mxu1 }
 0x820   :  { %2045 = vrot.lane.b32.xlu0 %v2040_v26, %s3269_s28  ;;  %2043 = vrot.lane.b32.xlu2 %v2039_v56, %s3269_s28  ;;  %v2149_v26 = vld [vmem:[#allocation8 + $0x20] sm:$0xff]  ;;  %v4086_v56 = vpop.f32.mrf.mxu0 }
 0x821   :  { %2025 = vrot.lane.b32.xlu1 %v1984_v51, %s3267_s6  ;;  %2183 = vmatpush.msra.mxu1 %v2151_v33  ;;  %v2960_v51 = vld [vmem:[#allocation7 + $0x1] ss:$0 sm:$0xff] }
 0x825   :  { %v1630_v5 = vpop.permute.xlu0 %1629  ;;  %v1678_v61 = vpop.permute.xlu2 %1677 }
 0x826   :  { %v1635_v52 = vmul.f32 %v1630_v5, %v3914_v35  ;;  %v1683_v14 = vmul.f32 %v1678_v61, %v3594_v11  ;;  %v1632_v2 = vpop.permute.xlu1 %1631 }
 0x827   :  { %v1636_v35 = vmul.f32 %v1632_v2, %v3908_v32 }
 0x828   :  { %2015 = vrot.lane.b32.xlu2 %v4003_v39, %s3267_s6  ;;  %v1693_v10 = vadd.f32 %v1688_v54, %v1635_v52  ;;  %v2055_v39 = vld [vmem:[#allocation5 + $0x28] sm:$0xff] }
 0x829   :  { %2097 = vmatpush.msra.mxu0 %v2055_v39 }
 0x82b   :  { %2098 = vmatpush.msra.mxu0 %v2054_v60 }
 0x82d   :  { %v1680_v44 = vpop.permute.xlu0 %1679  ;;  %v1690_v28 = vpop.permute.xlu2 %1689 }
 0x82e   :  { %v1694_v3 = vadd.f32 %v1690_v28, %v1636_v35  ;;  %v1684_v11 = vmul.f32 %v1680_v44, %v3598_v22 }
 0x835   :  { %v1966_v37 = vpop.permute.xlu2 %1965 }
 0x836   :  { %v1971_v49 = vmul.f32 %v1966_v37, %v3921_v36 }
 0x86a   :  { %v1708_v6 = vpop.permute.xlu0 %1707 }
 0x86b   :  { %v1713_v45 = vadd.f32 %v1708_v6, %v1693_v10 }
 0x86d   :  { %v1715_v43 = vadd.f32 %v1713_v45, %v1683_v14 }
 0x86f   :  { %2067 = vrot.lane.b32.xlu1 %v1715_v43, %s3268_s8 }
 0x872   :  { %v2024_v19 = vpop.permute.xlu0 %2023 }
 0x873   :  { %v2029_v58 = vadd.f32 %v2024_v19, %v1971_v49 }
 0x87a   :  { %v2044_v17 = vpop.permute.xlu2 %2043  ;;  %v1968_v4 = vpop.permute.xlu0 %1967 }
 0x87b   :  { %v2049_v53 = vadd.f32 %v2044_v17, %v2029_v58  ;;  %v1972_v21 = vmul.f32 %v1968_v4, %v3924_v62 }
 0x882   :  { %v1710_v40 = vpop.permute.xlu1 %1709  ;;  %v2016_v22 = vpop.permute.xlu2 %2015 }
 0x883   :  { %v1714_v15 = vadd.f32 %v1710_v40, %v1694_v3  ;;  %v2020_v36 = vmul.f32 %v2016_v22, %v3607_v57  ;;  %v2150_v57 = vld [vmem:[#allocation8 + $0x28] sm:$0xff] }
 0x884   :  { %2184 = vmatpush.msra.mxu1 %v2150_v57  ;;  %v2961_v57 = vld [vmem:[#allocation10 + $0x1] ss:$0 sm:$0xff] }
 0x885   :  { %v1716_v46 = vadd.f32 %v1714_v15, %v1684_v11 }
 0x886   :  { %2185 = vmatpush.msra.mxu1 %v2149_v26 }
 0x887   :  { %2069 = vrot.lane.b32.xlu2 %v1716_v46, %s3268_s8 }
 0x88a   :  { %v2014_v0 = vpop.permute.xlu1 %2013 }
 0x88b   :  { %v2019_v32 = vmul.f32 %v2014_v0, %v3602_v38 }
 0x88d   :  { %v2051_v34 = vadd.f32 %v2049_v53, %v2019_v32 }
 0x88f   :  { %2071 = vrot.lane.b32.xlu0 %v2051_v34, %s3268_s8 }
 0x892   :  { %v2046_v16 = vpop.permute.xlu0 %2045 }
 0x893   :  { %v2026_v29 = vpop.permute.xlu1 %2025 }
 0x894   :  { %v2030_v23 = vadd.f32 %v2026_v29, %v1972_v21 }
 0x896   :  { %v2050_v63 = vadd.f32 %v2046_v16, %v2030_v23 }
 0x898   :  { %v2052_v18 = vadd.f32 %v2050_v63, %v2020_v36 }
 0x89a   :  { %2073 = vrot.lane.b32.xlu1 %v2052_v18, %s3268_s8 }
 0x8e1   :  { %v2068_v47 = vpop.permute.xlu1 %2067  ;;  %v2070_v38 = vpop.permute.xlu2 %2069 }
 0x8e2   :  { %2930 = vmatmul.msk.f32.vlgmr.msra.gmra.mxu0 %vm187_vm0, %v2068_v47 }
 0x8ea   :  { %2931 = vmatmul.msk.f32.gmra.mxu0 %vm187_vm0, %v2070_v38 }
 0x901   :  { %v2072_v41 = vpop.permute.xlu0 %2071 }
 0x902   :  { %2932 = vmatmul.msk.f32.gmra.mxu0 %vm187_vm0, %v2072_v41 }
 0x90c   :  { %v2074_v62 = vpop.permute.xlu1 %2073 }
 0x90d   :  { %2933 = vmatmul.msk.f32.gmra.mxu0 %vm187_vm0, %v2074_v62 }
 0x95f   :  { %v2100_v5 = vpop.f32.mrf.mxu0 }
 0x960   :  { %v2101_v44 = vadd.f32 %v2960_v51, %v2100_v5 }
 0x962   :  { %v2116_v52 = vmul.f32 0.044715, %v2101_v44  ;;  %v2112_v60 = vmul.f32 0.5, %v2101_v44 }
 0x964   :  { %v2120_v54 = vmul.f32 %v2116_v52, %v2101_v44 }
 0x966   :  { %v2124_v61 = vmul.f32 %v2120_v54, %v2101_v44 }
 0x967   :  { %v2103_v10 = vpop.f32.mrf.mxu0 }
 0x968   :  { %v2128_v6 = vadd.f32 %v2124_v61, %v2101_v44  ;;  %v2104_v14 = vadd.f32 %v2960_v51, %v2103_v10 }
 0x96a   :  { %v2132_v45 = vmul.f32 0.7978846, %v2128_v6  ;;  %v2117_v43 = vmul.f32 0.044715, %v2104_v14  ;;  %v2113_v40 = vmul.f32 0.5, %v2104_v14 }
 0x96c   :  { %2986 = vtanh.f32 %v2132_v45  ;;  %v2121_v28 = vmul.f32 %v2117_v43, %v2104_v14 }
 0x96e   :  { %v2125_v2 = vmul.f32 %v2121_v28, %v2104_v14 }
 0x970   :  { %v2129_v24 = vadd.f32 %v2125_v2, %v2104_v14 }
 0x972   :  { %v2987_v12 = vpop.eup %2986  ;;  %v2133_v39 = vmul.f32 0.7978846, %v2129_v24 }
 0x973   :  { %v2140_v35 = vadd.f32 1.0, %v2987_v12 }
 0x974   :  { %2988 = vtanh.f32 %v2133_v39 }
 0x975   :  { %v2144_v37 = vmul.f32 %v2140_v35, %v2112_v60 }
 0x977   :  { %2934 = vmatmul.msk.f32.vlgmr.msra.gmra.mxu1 %vm187_vm0, %v2144_v37 }
 0x97a   :  { %v2989_v3 = vpop.eup %2988 }
 0x97b   :  { %v2141_v11 = vadd.f32 1.0, %v2989_v3 }
 0x97d   :  { %v2145_v19 = vmul.f32 %v2141_v11, %v2113_v40 }
 0x97f   :  { %v2106_v15 = vpop.f32.mrf.mxu0  ;;  %2935 = vmatmul.msk.f32.gmra.mxu1 %vm187_vm0, %v2145_v19 }
 0x980   :  { %v2107_v46 = vadd.f32 %v2960_v51, %v2106_v15 }
 0x982   :  { %v2118_v49 = vmul.f32 0.044715, %v2107_v46  ;;  %v2114_v23 = vmul.f32 0.5, %v2107_v46 }
 0x984   :  { %v2122_v17 = vmul.f32 %v2118_v49, %v2107_v46 }
 0x986   :  { %v2126_v58 = vmul.f32 %v2122_v17, %v2107_v46 }
 0x988   :  { %v2130_v0 = vadd.f32 %v2126_v58, %v2107_v46 }
 0x98a   :  { %v2109_v53 = vpop.f32.mrf.mxu0  ;;  %v2134_v32 = vmul.f32 0.7978846, %v2130_v0 }
 0x98b   :  { %v2110_v4 = vadd.f32 %v2960_v51, %v2109_v53 }
 0x98c   :  { %2990 = vtanh.f32 %v2134_v32 }
 0x98d   :  { %v2119_v34 = vmul.f32 0.044715, %v2110_v4  ;;  %v2115_v38 = vmul.f32 0.5, %v2110_v4 }
 0x98f   :  { %v2123_v21 = vmul.f32 %v2119_v34, %v2110_v4 }
 0x991   :  { %v2127_v22 = vmul.f32 %v2123_v21, %v2110_v4 }
 0x992   :  { %v2991_v29 = vpop.eup %2990 }
 0x993   :  { %v2142_v16 = vadd.f32 1.0, %v2991_v29  ;;  %v2131_v36 = vadd.f32 %v2127_v22, %v2110_v4 }
 0x995   :  { %v2146_v63 = vmul.f32 %v2142_v16, %v2114_v23  ;;  %v2135_v18 = vmul.f32 0.7978846, %v2131_v36 }
 0x997   :  { %2936 = vmatmul.msk.f32.gmra.mxu1 %vm187_vm0, %v2146_v63  ;;  %2992 = vtanh.f32 %v2135_v18 }
 0x99d   :  { %v2993_v47 = vpop.eup %2992 }
 0x99e   :  { %v2143_v41 = vadd.f32 1.0, %v2993_v47 }
 0x9a0   :  { %v2147_v62 = vmul.f32 %v2143_v41, %v2115_v38 }
 0x9a2   :  { %2937 = vmatmul.msk.f32.gmra.mxu1 %vm187_vm0, %v2147_v62 }
 0x9f4   :  { %v2187_v33 = vpop.f32.mrf.mxu1 }
 0x9f5   :  { %v4094_v26 = vadd.f32 %v2961_v57, %v2187_v33 }
 0x9f7   :  { %v2229_v44 = vrot.slane %v4094_v26, 4  ;;  %v2201_v6 = vrot.slane %v4094_v26, 1  ;;  %v2215_v43 = vrot.slane %v4094_v26, 2 }
 0x9fc   :  { %v2190_v51 = vpop.f32.mrf.mxu1 }
 0x9fd   :  { %v4096_v5 = vadd.f32 %v2961_v57, %v2190_v51 }
 0x9ff   :  { %v2230_v52 = vrot.slane %v4096_v5, 4  ;;  %v2202_v10 = vrot.slane %v4096_v5, 1  ;;  %v2216_v45 = vrot.slane %v4096_v5, 2 }
 0xa01   :  { %v2232_v54 = vsel %vm1412_vm1, %v2230_v52, %v2229_v44  ;;  %v2231_v61 = vsel %vm1412_vm1, %v2229_v44, %v2230_v52  ;;  %v2203_v14 = vsel %vm1382_vm2, %v2201_v6, %v2202_v10  ;;  %v2218_v28 = vsel %vm1397_vm3, %v2216_v45, %v2215_v43 }
 0xa02   :  { %2237 = vrot.lane.b32.xlu0 %v2232_v54, %s3267_s6  ;;  %2235 = vrot.lane.b32.xlu2 %v2231_v61, %s3267_s6  ;;  %v2217_v15 = vsel %vm1397_vm3, %v2215_v43, %v2216_v45  ;;  %v2204_v46 = vsel %vm1382_vm2, %v2202_v10, %v2201_v6 }
 0xa0a   :  { %2207 = vrot.lane.b32.xlu0 %v2203_v14, %s3268_s8 }
 0xa12   :  { %2223 = vrot.lane.b32.xlu0 %v2218_v28, %s3269_s28 }
 0xa14   :  { %v2193_v2 = vpop.f32.mrf.mxu1 }
 0xa15   :  { %v4116_v24 = vadd.f32 %v2961_v57, %v2193_v2 }
 0xa17   :  { %v2565_v60 = vrot.slane %v4116_v24, 4  ;;  %v2551_v37 = vrot.slane %v4116_v24, 2  ;;  %v2537_v17 = vrot.slane %v4116_v24, 1 }
 0xa1f   :  { %v2196_v12 = vpop.f32.mrf.mxu1 }
 0xa20   :  { %v4118_v39 = vadd.f32 %v2961_v57, %v2196_v12  ;;  %v2535_v12 = vmul.f32 %v4116_v24, %v3600_v25 }
 0xa22   :  { %v2566_v35 = vrot.slane %v4118_v39, 4  ;;  %v2552_v3 = vrot.slane %v4118_v39, 2  ;;  %v2538_v49 = vrot.slane %v4118_v39, 1 }
 0xa24   :  { %v2568_v40 = vsel %vm1412_vm1, %v2566_v35, %v2565_v60  ;;  %v2567_v11 = vsel %vm1412_vm1, %v2565_v60, %v2566_v35  ;;  %v2553_v19 = vsel %vm1397_vm3, %v2551_v37, %v2552_v3  ;;  %v2540_v58 = vsel %vm1382_vm2, %v2538_v49, %v2537_v17 }
 0xa25   :  { %2573 = vrot.lane.b32.xlu2 %v2568_v40, %s3267_s6  ;;  %2571 = vrot.lane.b32.xlu1 %v2567_v11, %s3267_s6  ;;  %v2539_v0 = vsel %vm1382_vm2, %v2537_v17, %v2538_v49  ;;  %v2554_v53 = vsel %vm1397_vm3, %v2552_v3, %v2551_v37  ;;  %v2243_v17 = vmul.f32 %v4096_v5, %v3612_v20 }
 0xa26   :  { %2557 = vrot.lane.b32.xlu0 %v2553_v19, %s3269_s28 }
 0xa2d   :  { %2221 = vrot.lane.b32.xlu2 %v2217_v15, %s3269_s28  ;;  %2209 = vrot.lane.b32.xlu1 %v2204_v46, %s3268_s8  ;;  %v2199_v15 = vmul.f32 %v4094_v26, %v3591_v7 }
 0xa35   :  { %2545 = vrot.lane.b32.xlu2 %v2540_v58, %s3268_s8  ;;  %2543 = vrot.lane.b32.xlu1 %v2539_v0, %s3268_s8 }
 0xa3d   :  { %2559 = vrot.lane.b32.xlu1 %v2554_v53, %s3269_s28  ;;  %v2200_v53 = vmul.f32 %v4096_v5, %v3596_v50 }
 0xa5c   :  { %v2236_v32 = vpop.permute.xlu2 %2235 }
 0xa5d   :  { %v2241_v4 = vmul.f32 %v2236_v32, %v3591_v7 }
 0xa5f   :  { %2257 = vrot.lane.b32.xlu2 %v2241_v4, %s3267_s6  ;;  %v2244_v4 = vmul.f32 %v4094_v26, %v3616_v59  ;;  %v2536_v26 = vmul.f32 %v4118_v39, %v3604_v31 }
 0xa74   :  { %v2238_v34 = vpop.permute.xlu0 %2237 }
 0xa75   :  { %v2242_v21 = vmul.f32 %v2238_v34, %v3596_v50 }
 0xa77   :  { %2259 = vrot.lane.b32.xlu0 %v2242_v21, %s3267_s6 }
 0xa7c   :  { %v2208_v22 = vpop.permute.xlu0 %2207 }
 0xa7d   :  { %v2213_v29 = vmul.f32 %v2208_v22, %v3591_v7 }
 0xa7f   :  { %v2574_v23 = vpop.permute.xlu2 %2573  ;;  %2247 = vrot.lane.b32.xlu0 %v2213_v29, %s3267_s6 }
 0xa80   :  { %v2578_v16 = vmul.f32 %v2574_v23, %v3604_v31 }
 0xa82   :  { %2595 = vrot.lane.b32.xlu2 %v2578_v16, %s3267_s6 }
 0xa84   :  { %v2224_v61 = vpop.permute.xlu0 %2223 }
 0xa85   :  { %v2228_v43 = vmul.f32 %v2224_v61, %v3596_v50 }
 0xa87   :  { %v2222_v36 = vpop.permute.xlu2 %2221 }
 0xa88   :  { %v2227_v51 = vmul.f32 %v2222_v36, %v3591_v7 }
 0xa8f   :  { %v2546_v63 = vpop.permute.xlu2 %2545 }
 0xa90   :  { %v2550_v18 = vmul.f32 %v2546_v63, %v3604_v31 }
 0xa92   :  { %2585 = vrot.lane.b32.xlu0 %v2550_v18, %s3267_s6 }
 0xa97   :  { %v2572_v47 = vpop.permute.xlu1 %2571 }
 0xa98   :  { %v2577_v38 = vmul.f32 %v2572_v47, %v3600_v25  ;;  %v2558_v45 = vpop.permute.xlu0 %2557 }
 0xa99   :  { %v2563_v37 = vmul.f32 %v2558_v45, %v3600_v25 }
 0xa9a   :  { %2593 = vrot.lane.b32.xlu1 %v2577_v38, %s3267_s6 }
 0xa9f   :  { %v2210_v41 = vpop.permute.xlu1 %2209 }
 0xaa0   :  { %v2214_v62 = vmul.f32 %v2210_v41, %v3596_v50 }
 0xaa2   :  { %2249 = vrot.lane.b32.xlu1 %v2214_v62, %s3267_s6  ;;  %v2580_v62 = vmul.f32 %v4116_v24, %v3626_v55 }
 0xaa7   :  { %v2544_v33 = vpop.permute.xlu1 %2543 }
 0xaa8   :  { %v2549_v57 = vmul.f32 %v2544_v33, %v3600_v25 }
 0xaaa   :  { %2583 = vrot.lane.b32.xlu2 %v2549_v57, %s3267_s6 }
 0xaaf   :  { %v2560_v54 = vpop.permute.xlu1 %2559 }
 0xab0   :  { %v2564_v10 = vmul.f32 %v2560_v54, %v3604_v31 }
 0xab9   :  { %v2258_v44 = vpop.permute.xlu2 %2257 }
 0xaba   :  { %v2263_v52 = vadd.f32 %v2258_v44, %v2227_v51 }
 0xabc   :  { %2267 = vrot.lane.b32.xlu1 %v2263_v52, %s3269_s28  ;;  %v2579_v52 = vmul.f32 %v4118_v39, %v3620_v8 }
 0xadc   :  { %v2596_v6 = vpop.permute.xlu2 %2595 }
 0xadd   :  { %v2600_v14 = vadd.f32 %v2596_v6, %v2564_v10 }
 0xadf   :  { %2605 = vrot.lane.b32.xlu1 %v2600_v14, %s3269_s28 }
 0xae9   :  { %v2260_v28 = vpop.permute.xlu0 %2259 }
 0xaea   :  { %v2264_v2 = vadd.f32 %v2260_v28, %v2228_v43 }
 0xaec   :  { %2269 = vrot.lane.b32.xlu2 %v2264_v2, %s3269_s28 }
 0xaf1   :  { %v2248_v19 = vpop.permute.xlu0 %2247 }
 0xaf2   :  { %v2253_v46 = vadd.f32 %v2248_v19, %v2199_v15 }
 0xb04   :  { %v2584_v60 = vpop.permute.xlu2 %2583  ;;  %v2586_v16 = vpop.permute.xlu0 %2585 }
 0xb05   :  { %v2589_v35 = vadd.f32 %v2584_v60, %v2535_v12  ;;  %v2590_v47 = vadd.f32 %v2586_v16, %v2536_v26 }
 0xb0c   :  { %v2594_v3 = vpop.permute.xlu1 %2593 }
 0xb0d   :  { %v2599_v40 = vadd.f32 %v2594_v3, %v2563_v37 }
 0xb0f   :  { %2603 = vrot.lane.b32.xlu0 %v2599_v40, %s3269_s28 }
 0xb14   :  { %v2250_v11 = vpop.permute.xlu1 %2249 }
 0xb15   :  { %v2254_v25 = vadd.f32 %v2250_v11, %v2200_v53 }
 0xb2e   :  { %v2268_v49 = vpop.permute.xlu1 %2267 }
 0xb2f   :  { %v2273_v58 = vadd.f32 %v2268_v49, %v2253_v46 }
 0xb31   :  { %v2275_v0 = vadd.f32 %v2273_v58, %v2243_v17 }
 0xb33   :  { %v2301_v22 = vrot.slane %v2275_v0, 2  ;;  %v2287_v7 = vrot.slane %v2275_v0, 1  ;;  %v2315_v18 = vrot.slane %v2275_v0, 4 }
 0xb46   :  { %v2270_v32 = vpop.permute.xlu2 %2269 }
 0xb47   :  { %v2274_v34 = vadd.f32 %v2270_v32, %v2254_v25 }
 0xb49   :  { %v2276_v21 = vadd.f32 %v2274_v34, %v2244_v4 }
 0xb4b   :  { %v2302_v29 = vrot.slane %v2276_v21, 2  ;;  %v2288_v23 = vrot.slane %v2276_v21, 1  ;;  %v2316_v5 = vrot.slane %v2276_v21, 4 }
 0xb4d   :  { %v2303_v36 = vsel %vm1397_vm3, %v2301_v22, %v2302_v29  ;;  %v2290_v63 = vsel %vm1382_vm2, %v2288_v23, %v2287_v7  ;;  %v2289_v50 = vsel %vm1382_vm2, %v2287_v7, %v2288_v23  ;;  %v2317_v41 = vsel %vm1412_vm1, %v2315_v18, %v2316_v5 }
 0xb4e   :  { %2307 = vrot.lane.b32.xlu1 %v2303_v36, %s3267_s6  ;;  %2295 = vrot.lane.b32.xlu0 %v2290_v63, %s3269_s28  ;;  %v2319_v51 = vmul.f32 %v2317_v41, %v3609_v1  ;;  %v2304_v31 = vsel %vm1397_vm3, %v2302_v29, %v2301_v22  ;;  %v2318_v37 = vsel %vm1412_vm1, %v2316_v5, %v2315_v18 }
 0xb4f   :  { %2293 = vrot.lane.b32.xlu2 %v2289_v50, %s3269_s28  ;;  %v2320_v3 = vmul.f32 %v2318_v37, %v3614_v13 }
 0xb51   :  { %v2606_v38 = vpop.permute.xlu1 %2605 }
 0xb52   :  { %v2610_v33 = vadd.f32 %v2606_v38, %v2590_v47 }
 0xb54   :  { %v2612_v57 = vadd.f32 %v2610_v33, %v2580_v62 }
 0xb56   :  { %2335 = vrot.lane.b32.xlu1 %v2319_v51, %s3267_s6  ;;  %v2652_v10 = vrot.slane %v2612_v57, 4  ;;  %v2638_v6 = vrot.slane %v2612_v57, 2  ;;  %v2624_v43 = vrot.slane %v2612_v57, 1 }
 0xb57   :  { %2309 = vrot.lane.b32.xlu2 %v2304_v31, %s3267_s6 }
 0xb81   :  { %v2604_v44 = vpop.permute.xlu0 %2603 }
 0xb82   :  { %v2609_v54 = vadd.f32 %v2604_v44, %v2589_v35 }
 0xb84   :  { %v2611_v61 = vadd.f32 %v2609_v54, %v2579_v52 }
 0xb86   :  { %v2651_v24 = vrot.slane %v2611_v61, 4  ;;  %v2637_v14 = vrot.slane %v2611_v61, 2  ;;  %v2623_v45 = vrot.slane %v2611_v61, 1 }
 0xb88   :  { %v2639_v28 = vsel %vm1397_vm3, %v2637_v14, %v2638_v6  ;;  %v2626_v2 = vsel %vm1382_vm2, %v2624_v43, %v2623_v45  ;;  %v2625_v12 = vsel %vm1382_vm2, %v2623_v45, %v2624_v43  ;;  %v2654_v39 = vsel %vm1412_vm1, %v2652_v10, %v2651_v24 }
 0xb89   :  { %2643 = vrot.lane.b32.xlu2 %v2639_v28, %s3267_s6  ;;  %2631 = vrot.lane.b32.xlu1 %v2626_v2, %s3269_s28  ;;  %v2640_v60 = vsel %vm1397_vm3, %v2638_v6, %v2637_v14  ;;  %v2653_v35 = vsel %vm1412_vm1, %v2651_v24, %v2652_v10  ;;  %v2656_v40 = vmul.f32 %v2654_v39, %v3622_v48 }
 0xb8a   :  { %2629 = vrot.lane.b32.xlu0 %v2625_v12, %s3269_s28  ;;  %v2655_v11 = vmul.f32 %v2653_v35, %v3618_v30 }
 0xb91   :  { %2337 = vrot.lane.b32.xlu2 %v2320_v3, %s3267_s6  ;;  %2673 = vrot.lane.b32.xlu1 %v2656_v40, %s3267_s6 }
 0xb92   :  { %2645 = vrot.lane.b32.xlu0 %v2640_v60, %s3267_s6 }
 0xb99   :  { %2279 = vrot.lane.b32.xlu2 %v2275_v0, %s3268_s8  ;;  %2615 = vrot.lane.b32.xlu1 %v2611_v61, %s3268_s8 }
 0xb9a   :  { %2671 = vrot.lane.b32.xlu0 %v2655_v11, %s3267_s6 }
 0xba1   :  { %2617 = vrot.lane.b32.xlu2 %v2612_v57, %s3268_s8 }
 0xba2   :  { %2281 = vrot.lane.b32.xlu0 %v2276_v21, %s3268_s8 }
 0xba9   :  { %v2294_v19 = vpop.permute.xlu2 %2293 }
 0xbaa   :  { %v2299_v15 = vmul.f32 %v2294_v19, %v3612_v20 }
 0xbac   :  { %2325 = vrot.lane.b32.xlu0 %v2299_v15, %s3267_s6 }
 0xbb1   :  { %v2310_v25 = vpop.permute.xlu2 %2309 }
 0xbb2   :  { %v2314_v7 = vmul.f32 %v2310_v25, %v3616_v59 }
 0xbc0   :  { %v2296_v46 = vpop.permute.xlu0 %2295  ;;  %v2308_v49 = vpop.permute.xlu1 %2307 }
 0xbc1   :  { %v2300_v17 = vmul.f32 %v2296_v46, %v3616_v59  ;;  %v2313_v58 = vmul.f32 %v2308_v49, %v3612_v20 }
 0xbc3   :  { %2327 = vrot.lane.b32.xlu1 %v2300_v17, %s3267_s6 }
 0xbc8   :  { %v2336_v0 = vpop.permute.xlu1 %2335 }
 0xbc9   :  { %v2341_v53 = vadd.f32 %v2336_v0, %v2313_v58 }
 0xbcb   :  { %2345 = vrot.lane.b32.xlu1 %v2341_v53, %s3269_s28 }
 0xbe3   :  { %v2644_v32 = vpop.permute.xlu2 %2643 }
 0xbe4   :  { %v2649_v5 = vmul.f32 %v2644_v32, %v3620_v8 }
 0xbeb   :  { %v2338_v29 = vpop.permute.xlu2 %2337 }
 0xbec   :  { %v2342_v16 = vadd.f32 %v2338_v29, %v2314_v7 }
 0xbf3   :  { %v2280_v62 = vpop.permute.xlu2 %2279 }
 0xbf4   :  { %v2285_v57 = vmul.f32 %v2280_v62, %v3612_v20  ;;  %v2322_v45 = vmul.f32 %v2280_v62, %v3614_v13  ;;  %v4497_v62 = vld [vmem:[#allocation31_spill] sm:$0xff] }
 0xbfb   :  { %v2632_v4 = vpop.permute.xlu1 %2631  ;;  %v2618_v61 = vpop.permute.xlu2 %2617 }
 0xbfc   :  { %v2636_v34 = vmul.f32 %v2632_v4, %v3626_v55  ;;  %v2630_v21 = vpop.permute.xlu0 %2629  ;;  %v2622_v2 = vmul.f32 %v2618_v61, %v3626_v55  ;;  %v2657_v11 = vmul.f32 %v2618_v61, %v3618_v30 }
 0xbfd   :  { %v2635_v22 = vmul.f32 %v2630_v21, %v3620_v8 }
 0xbfe   :  { %2663 = vrot.lane.b32.xlu0 %v2636_v34, %s3267_s6 }
 0xbff   :  { %2661 = vrot.lane.b32.xlu2 %v2635_v22, %s3267_s6 }
 0xc03   :  { %v2674_v63 = vpop.permute.xlu1 %2673 }
 0xc04   :  { %v2646_v23 = vpop.permute.xlu0 %2645 }
 0xc05   :  { %v2650_v36 = vmul.f32 %v2646_v23, %v3626_v55 }
 0xc07   :  { %v2678_v50 = vadd.f32 %v2674_v63, %v2650_v36  ;;  %2347 = vrot.lane.b32.xlu2 %v2342_v16, %s3269_s28 }
 0xc09   :  { %2683 = vrot.lane.b32.xlu1 %v2678_v50, %s3269_s28 }
 0xc0b   :  { %v2616_v47 = vpop.permute.xlu1 %2615 }
 0xc0c   :  { %v2672_v26 = vpop.permute.xlu0 %2671  ;;  %v2658_v60 = vmul.f32 %v2616_v47, %v3622_v48  ;;  %v2621_v37 = vmul.f32 %v2616_v47, %v3620_v8  ;;  %v4496_v47 = vld [vmem:[#allocation27_spill] sm:$0xff] }
 0xc0d   :  { %v2677_v18 = vadd.f32 %v2672_v26, %v2649_v5  ;;  %v4495_v5 = vld [vmem:[#allocation29_spill] sm:$0xff] }
 0xc0f   :  { %2681 = vrot.lane.b32.xlu0 %v2677_v18, %s3269_s28 }
 0xc14   :  { %v2282_v38 = vpop.permute.xlu0 %2281 }
 0xc15   :  { %v2321_v44 = vmul.f32 %v2282_v38, %v3609_v1  ;;  %v2286_v6 = vmul.f32 %v2282_v38, %v3616_v59 }
 0xc1e   :  { %v2326_v33 = vpop.permute.xlu0 %2325 }
 0xc1f   :  { %v2331_v51 = vadd.f32 %v2326_v33, %v2285_v57 }
 0xc35   :  { %v2328_v41 = vpop.permute.xlu1 %2327 }
 0xc36   :  { %v2332_v24 = vadd.f32 %v2328_v41, %v2286_v6 }
 0xc3d   :  { %v2346_v31 = vpop.permute.xlu1 %2345 }
 0xc3e   :  { %v2351_v52 = vadd.f32 %v2346_v31, %v2331_v51  ;;  %v4498_v31 = vld [vmem:[#allocation25_spill] sm:$0xff] }
 0xc40   :  { %v2353_v54 = vadd.f32 %v2351_v52, %v2321_v44  ;;  %v4499_v44 = vld [vmem:[#allocation32_spill] sm:$0xff] }
 0xc41   :  { %v1165_v52 = vadd.f32 %v4499_v44, %v4498_v31 }
 0xc42   :  { %2365 = vrot.lane.b32.xlu2 %v2353_v54, %s3267_s6 }
 0xc43   :  { %v4318_v61 = vadd.f32 %v3654_v42, %v1165_v52 }
 0xc59   :  { %v2662_v10 = vpop.permute.xlu2 %2661 }
 0xc5a   :  { %v2667_v59 = vadd.f32 %v2662_v10, %v2621_v37 }
 0xc61   :  { %v2348_v14 = vpop.permute.xlu2 %2347 }
 0xc62   :  { %v2352_v43 = vadd.f32 %v2348_v14, %v2332_v24 }
 0xc64   :  { %v2354_v28 = vadd.f32 %v2352_v43, %v2322_v45 }
 0xc66   :  { %2367 = vrot.lane.b32.xlu0 %v2354_v28, %s3267_s6 }
 0xc70   :  { %v2664_v20 = vpop.permute.xlu0 %2663 }
 0xc71   :  { %v2668_v12 = vadd.f32 %v2664_v20, %v2622_v2 }
 0xc7b   :  { %v2684_v39 = vpop.permute.xlu1 %2683 }
 0xc7c   :  { %v2688_v35 = vadd.f32 %v2684_v39, %v2668_v12 }
 0xc7e   :  { %v2690_v3 = vadd.f32 %v2688_v35, %v2658_v60 }
 0xc80   :  { %2703 = vrot.lane.b32.xlu2 %v2690_v3, %s3267_s6 }
 0xc81   :  { %v2682_v40 = vpop.permute.xlu0 %2681 }
 0xc82   :  { %v2687_v19 = vadd.f32 %v2682_v40, %v2667_v59 }
 0xc84   :  { %v2689_v15 = vadd.f32 %v2687_v19, %v2657_v11 }
 0xc86   :  { %2701 = vrot.lane.b32.xlu1 %v2689_v15, %s3267_s6 }
 0xc9c   :  { %v4262_v46 = vpop.permute.xlu2 %2365 }
 0xc9d   :  { %v2391_v49 = vrot.slane %v4262_v46, 4  ;;  %v2371_v53 = vrot.slane %v4262_v46, 1  ;;  %v2385_v20 = vrot.slane %v4262_v46, 2 }
 0xcd8   :  { %v4264_v55 = vpop.permute.xlu0 %2367 }
 0xcd9   :  { %v2392_v17 = vrot.slane %v4264_v55, 4  ;;  %v2372_v0 = vrot.slane %v4264_v55, 1 }
 0xcda   :  { %v4279_v32 = vpop.permute.xlu2 %2703 }
 0xcdb   :  { %v2394_v8 = vsel %vm1412_vm1, %v2392_v17, %v2391_v49  ;;  %v2393_v58 = vsel %vm1412_vm1, %v2391_v49, %v2392_v17  ;;  %v2373_v25 = vsel %vm1382_vm2, %v2371_v53, %v2372_v0  ;;  %v2708_v34 = vrot.slane %v4279_v32, 1 }
 0xcdc   :  { %2399 = vrot.lane.b32.xlu1 %v2394_v8, %s3268_s8  ;;  %2397 = vrot.lane.b32.xlu0 %v2393_v58, %s3268_s8  ;;  %v2728_v21 = vrot.slane %v4279_v32, 4  ;;  %v2374_v63 = vsel %vm1382_vm2, %v2372_v0, %v2371_v53  ;;  %v2722_v11 = vrot.slane %v4279_v32, 2 }
 0xce4   :  { %2377 = vrot.lane.b32.xlu1 %v2373_v25, %s3267_s6 }
 0xcf8   :  { %v4281_v4 = vpop.permute.xlu1 %2701 }
 0xcf9   :  { %v2707_v22 = vrot.slane %v4281_v4, 1  ;;  %v2727_v29 = vrot.slane %v4281_v4, 4 }
 0xcfb   :  { %v2729_v7 = vsel %vm1412_vm1, %v2727_v29, %v2728_v21  ;;  %v2730_v23 = vsel %vm1412_vm1, %v2728_v21, %v2727_v29  ;;  %v2710_v16 = vsel %vm1382_vm2, %v2708_v34, %v2707_v22  ;;  %v2709_v36 = vsel %vm1382_vm2, %v2707_v22, %v2708_v34 }
 0xcfc   :  { %2733 = vrot.lane.b32.xlu2 %v2729_v7, %s3268_s8  ;;  %2735 = vrot.lane.b32.xlu0 %v2730_v23, %s3268_s8 }
 0xcfd   :  { %2715 = vrot.lane.b32.xlu1 %v2710_v16, %s3267_s6 }
 0xd04   :  { %2713 = vrot.lane.b32.xlu0 %v2709_v36, %s3267_s6  ;;  %2379 = vrot.lane.b32.xlu2 %v2374_v63, %s3267_s6 }
 0xd4e   :  { %v2400_v50 = vpop.permute.xlu1 %2399  ;;  %v2398_v18 = vpop.permute.xlu0 %2397 }
 0xd4f   :  { %v2404_v26 = vmul.f32 %v2400_v50, %v4495_v5  ;;  %v2403_v38 = vmul.f32 %v2398_v18, %v4496_v47 }
 0xd51   :  { %2427 = vrot.lane.b32.xlu0 %v2404_v26, %s3267_s6  ;;  %2425 = vrot.lane.b32.xlu2 %v2403_v38, %s3267_s6 }
 0xd56   :  { %v2734_v41 = vpop.permute.xlu2 %2733  ;;  %v2378_v57 = vpop.permute.xlu1 %2377 }
 0xd57   :  { %v2739_v33 = vmul.f32 %v2734_v41, %v4497_v62  ;;  %v2383_v51 = vmul.f32 %v2378_v57, %v3609_v1 }
 0xd59   :  { %2357 = vrot.lane.b32.xlu0 %v2353_v54, %s3268_s8  ;;  %2761 = vrot.lane.b32.xlu1 %v2739_v33, %s3267_s6 }
 0xd5e   :  { %v2380_v42 = vpop.permute.xlu2 %2379 }
 0xd5f   :  { %v2384_v43 = vmul.f32 %v2380_v42, %v3614_v13 }
 0xd61   :  { %2695 = vrot.lane.b32.xlu0 %v2690_v3, %s3268_s8  ;;  %2359 = vrot.lane.b32.xlu1 %v2354_v28, %s3268_s8  ;;  %v2386_v28 = vrot.slane %v4264_v55, 2  ;;  %v2721_v3 = vrot.slane %v4281_v4, 2 }
 0xd63   :  { %v2387_v2 = vsel %vm1397_vm3, %v2385_v20, %v2386_v28  ;;  %v2388_v35 = vsel %vm1397_vm3, %v2386_v28, %v2385_v20  ;;  %v2724_v19 = vsel %vm1397_vm3, %v2722_v11, %v2721_v3 }
 0xd64   :  { %v2389_v12 = vmul.f32 %v2387_v2, %v4496_v47  ;;  %v2390_v37 = vmul.f32 %v2388_v35, %v4495_v5 }
 0xd69   :  { %2407 = vrot.lane.b32.xlu0 %v4262_v46, %s3269_s28  ;;  %2415 = vrot.lane.b32.xlu1 %v2383_v51, %s3267_s6  ;;  %v2726_v46 = vmul.f32 %v2724_v19, %v4318_v61 }
 0xd6e   :  { %v2736_v54 = vpop.permute.xlu0 %2735 }
 0xd6f   :  { %v2740_v10 = vmul.f32 %v2736_v54, %v4318_v61  ;;  %v2716_v6 = vpop.permute.xlu1 %2715 }
 0xd70   :  { %v2720_v24 = vmul.f32 %v2716_v6, %v3622_v48 }
 0xd71   :  { %2741 = vrot.lane.b32.xlu0 %v4279_v32, %s3269_s28  ;;  %2763 = vrot.lane.b32.xlu2 %v2740_v10, %s3267_s6 }
 0xd72   :  { %2753 = vrot.lane.b32.xlu1 %v2720_v24, %s3267_s6 }
 0xd76   :  { %v2714_v14 = vpop.permute.xlu0 %2713 }
 0xd77   :  { %v2719_v45 = vmul.f32 %v2714_v14, %v3618_v30 }
 0xd79   :  { %2751 = vrot.lane.b32.xlu0 %v2719_v45, %s3267_s6  ;;  %2693 = vrot.lane.b32.xlu2 %v2689_v15, %s3268_s8  ;;  %v2723_v15 = vsel %vm1397_vm3, %v2721_v3, %v2722_v11 }
 0xd7a   :  { %v2725_v49 = vmul.f32 %v2723_v15, %v4497_v62 }
 0xd81   :  { %2417 = vrot.lane.b32.xlu2 %v2384_v43, %s3267_s6 }
 0xd89   :  { %2405 = vrot.lane.b32.xlu2 %v4264_v55, %s3269_s28 }
 0xdab   :  { %v2426_v39 = vpop.permute.xlu2 %2425 }
 0xdac   :  { %v2431_v60 = vadd.f32 %v2426_v39, %v2389_v12 }
 0xdae   :  { %2435 = vrot.lane.b32.xlu1 %v2431_v60, %s3269_s28 }
 0xdb6   :  { %2743 = vrot.lane.b32.xlu1 %v4281_v4, %s3269_s28 }
 0xdc3   :  { %v2428_v59 = vpop.permute.xlu0 %2427 }
 0xdc4   :  { %v2432_v40 = vadd.f32 %v2428_v59, %v2390_v37 }
 0xdc6   :  { %2437 = vrot.lane.b32.xlu2 %v2432_v40, %s3269_s28 }
 0xdcb   :  { %v2764_v55 = vpop.permute.xlu2 %2763  ;;  %v2762_v8 = vpop.permute.xlu1 %2761 }
 0xdcc   :  { %v2768_v17 = vadd.f32 %v2764_v55, %v2726_v46  ;;  %v2767_v58 = vadd.f32 %v2762_v8, %v2725_v49  ;;  %v2358_v0 = vpop.permute.xlu0 %2357 }
 0xdcd   :  { %v2363_v16 = vmul.f32 %v2358_v0, %v3609_v1  ;;  %v4500_v0 = vld [vmem:[#allocation26_spill] sm:$0xff] }
 0xdce   :  { %2773 = vrot.lane.b32.xlu0 %v2768_v17, %s3269_s28  ;;  %2771 = vrot.lane.b32.xlu2 %v2767_v58, %s3269_s28 }
 0xdd3   :  { %v2694_v53 = vpop.permute.xlu2 %2693  ;;  %v2360_v25 = vpop.permute.xlu1 %2359 }
 0xdd4   :  { %v2696_v32 = vpop.permute.xlu0 %2695  ;;  %v2364_v23 = vmul.f32 %v2360_v25, %v3614_v13  ;;  %v2699_v13 = vmul.f32 %v2694_v53, %v3618_v30 }
 0xdd5   :  { %v2700_v6 = vmul.f32 %v2696_v32, %v3622_v48  ;;  %v4501_v32 = vld [vmem:[#allocation28_spill] sm:$0xff] }
 0xddb   :  { %v2418_v4 = vpop.permute.xlu2 %2417  ;;  %v2416_v34 = vpop.permute.xlu1 %2415 }
 0xddc   :  { %v2408_v21 = vpop.permute.xlu0 %2407  ;;  %v2422_v36 = vadd.f32 %v2418_v4, %v2364_v23  ;;  %v2421_v63 = vadd.f32 %v2416_v34, %v2363_v16  ;;  %v4502_v34 = vld [vmem:[#allocation24_spill] sm:$0xff] }
 0xddd   :  { %v2412_v26 = vmul.f32 %v2408_v21, %v4495_v5  ;;  %v1223_v21 = vadd.f32 %v4086_v56, %v4502_v34 }
 0xde3   :  { %v2406_v22 = vpop.permute.xlu2 %2405 }
 0xde4   :  { %v2754_v29 = vpop.permute.xlu1 %2753  ;;  %v2742_v7 = vpop.permute.xlu0 %2741  ;;  %v2411_v41 = vmul.f32 %v2406_v22, %v4496_v47  ;;  %v4405_v22 = vadd.f32 %v4092_v27, %v1223_v21 }
 0xde5   :  { %v2747_v52 = vmul.f32 %v2742_v7, %v4497_v62  ;;  %v2758_v14 = vadd.f32 %v2754_v29, %v2700_v6 }
 0xdec   :  { %v2752_v31 = vpop.permute.xlu0 %2751 }
 0xded   :  { %v2757_v1 = vadd.f32 %v2752_v31, %v2699_v13 }
 0xe20   :  { %v2438_v50 = vpop.permute.xlu2 %2437  ;;  %v2436_v38 = vpop.permute.xlu1 %2435 }
 0xe21   :  { %v2442_v18 = vadd.f32 %v2438_v50, %v2422_v36  ;;  %v2441_v33 = vadd.f32 %v2436_v38, %v2421_v63 }
 0xe23   :  { %v4359_v57 = vadd.f32 %v2442_v18, %v2412_v26  ;;  %v2443_v51 = vadd.f32 %v2441_v33, %v2411_v41  ;;  %v4503_v26 = vld [vmem:[#allocation30_spill] sm:$0xff] }
 0xe25   :  { %2457 = vrot.lane.b32.xlu2 %v4359_v57, %s3269_s28  ;;  %2455 = vrot.lane.b32.xlu1 %v2443_v51, %s3269_s28 }
 0xe28   :  { %v2772_v44 = vpop.permute.xlu2 %2771  ;;  %v2744_v24 = vpop.permute.xlu1 %2743 }
 0xe29   :  { %v2777_v54 = vadd.f32 %v2772_v44, %v2757_v1  ;;  %v2748_v42 = vmul.f32 %v2744_v24, %v4318_v61 }
 0xe2b   :  { %v2779_v10 = vadd.f32 %v2777_v54, %v2747_v52 }
 0xe2d   :  { %2791 = vrot.lane.b32.xlu0 %v2779_v10, %s3269_s28 }
 0xe40   :  { %v2774_v45 = vpop.permute.xlu0 %2773 }
 0xe41   :  { %v2778_v43 = vadd.f32 %v2774_v45, %v2758_v14 }
 0xe43   :  { %v2780_v28 = vadd.f32 %v2778_v43, %v2748_v42 }
 0xe45   :  { %2793 = vrot.lane.b32.xlu1 %v2780_v28, %s3269_s28 }
 0xe7f   :  { %v2458_v30 = vpop.permute.xlu2 %2457 }
 0xe80   :  { %v2482_v2 = vrot.slane %v2458_v30, 4  ;;  %v2468_v35 = vrot.slane %v2458_v30, 2  ;;  %v2462_v36 = vrot.slane %v2458_v30, 1 }
 0xe97   :  { %v2456_v20 = vpop.permute.xlu1 %2455 }
 0xe98   :  { %v2481_v12 = vrot.slane %v2456_v20, 4  ;;  %v2467_v48 = vrot.slane %v2456_v20, 2  ;;  %v2461_v23 = vrot.slane %v2456_v20, 1 }
 0xe9a   :  { %v2484_v39 = vsel %vm1412_vm1, %v2482_v2, %v2481_v12  ;;  %v2483_v60 = vsel %vm1412_vm1, %v2481_v12, %v2482_v2  ;;  %v2469_v37 = vsel %vm1397_vm3, %v2467_v48, %v2468_v35  ;;  %v2470_v17 = vsel %vm1397_vm3, %v2468_v35, %v2467_v48 }
 0xe9b   :  { %2489 = vrot.lane.b32.xlu0 %v2484_v39, %s3269_s28  ;;  %2487 = vrot.lane.b32.xlu2 %v2483_v60, %s3269_s28  ;;  %v2464_v27 = vsel %vm1382_vm2, %v2462_v36, %v2461_v23  ;;  %v2463_v33 = vsel %vm1382_vm2, %v2461_v23, %v2462_v36 }
 0xe9c   :  { %v2466_v50 = vmul.f32 %v2464_v27, %v4501_v32 }
 0xe9f   :  { %v4379_v3 = vpop.permute.xlu0 %2791 }
 0xea0   :  { %v2803_v40 = vrot.slane %v4379_v3, 2  ;;  %v2817_v11 = vrot.slane %v4379_v3, 4  ;;  %v2797_v56 = vrot.slane %v4379_v3, 1 }
 0xea3   :  { %2473 = vrot.lane.b32.xlu0 %v2469_v37, %s3268_s8 }
 0xeb7   :  { %v2794_v59 = vpop.permute.xlu1 %2793 }
 0xeb8   :  { %v2804_v19 = vrot.slane %v2794_v59, 2  ;;  %v2818_v15 = vrot.slane %v2794_v59, 4  ;;  %v2798_v16 = vrot.slane %v2794_v59, 1 }
 0xeba   :  { %v2820_v46 = vsel %vm1412_vm1, %v2818_v15, %v2817_v11  ;;  %v2819_v55 = vsel %vm1412_vm1, %v2817_v11, %v2818_v15  ;;  %v2806_v49 = vsel %vm1397_vm3, %v2804_v19, %v2803_v40  ;;  %v2805_v8 = vsel %vm1397_vm3, %v2803_v40, %v2804_v19 }
 0xebb   :  { %2825 = vrot.lane.b32.xlu2 %v2820_v46, %s3269_s28  ;;  %2823 = vrot.lane.b32.xlu1 %v2819_v55, %s3269_s28  ;;  %v2799_v63 = vsel %vm1382_vm2, %v2797_v56, %v2798_v16  ;;  %v2800_v31 = vsel %vm1382_vm2, %v2798_v16, %v2797_v56 }
 0xebc   :  { %2811 = vrot.lane.b32.xlu0 %v2806_v49, %s3268_s8  ;;  %v2801_v18 = vmul.f32 %v2799_v63, %v4503_v26  ;;  %v2802_v13 = vmul.f32 %v2800_v31, %v4405_v22 }
 0xec3   :  { %2475 = vrot.lane.b32.xlu1 %v2470_v17, %s3268_s8  ;;  %2809 = vrot.lane.b32.xlu2 %v2805_v8, %s3268_s8 }
 0xef5   :  { %v2488_v58 = vpop.permute.xlu2 %2487 }
 0xef6   :  { %v2493_v53 = vmul.f32 %v2488_v58, %v4500_v0 }
 0xef8   :  { %2515 = vrot.lane.b32.xlu1 %v2493_v53, %s3267_s6 }
 0xf0d   :  { %v2490_v25 = vpop.permute.xlu0 %2489 }
 0xf0e   :  { %v2494_v4 = vmul.f32 %v2490_v25, %v4501_v32 }
 0xf10   :  { %2517 = vrot.lane.b32.xlu2 %v2494_v4, %s3267_s6 }
 0xf15   :  { %v2826_v29 = vpop.permute.xlu2 %2825  ;;  %v2474_v52 = vpop.permute.xlu0 %2473 }
 0xf16   :  { %v2830_v7 = vmul.f32 %v2826_v29, %v4405_v22 }
 0xf18   :  { %2853 = vrot.lane.b32.xlu1 %v2830_v7, %s3267_s6  ;;  %2447 = vrot.lane.b32.xlu2 %v2443_v51, %s3268_s8  ;;  %v2465_v51 = vmul.f32 %v2463_v33, %v4500_v0 }
 0xf1d   :  { %v2810_v1 = vpop.permute.xlu2 %2809 }
 0xf1e   :  { %v2815_v60 = vmul.f32 %v2810_v1, %v4503_v26 }
 0xf20   :  { %2783 = vrot.lane.b32.xlu1 %v2779_v10, %s3268_s8  ;;  %2785 = vrot.lane.b32.xlu2 %v2780_v28, %s3268_s8 }
 0xf28   :  { %2507 = vrot.lane.b32.xlu1 %v2466_v50, %s3267_s6  ;;  %2841 = vrot.lane.b32.xlu2 %v2801_v18, %s3267_s6 }
 0xf2d   :  { %v2824_v38 = vpop.permute.xlu1 %2823 }
 0xf2e   :  { %v2829_v41 = vmul.f32 %v2824_v38, %v4503_v26  ;;  %v2812_v45 = vpop.permute.xlu0 %2811 }
 0xf2f   :  { %v2816_v42 = vmul.f32 %v2812_v45, %v4405_v22 }
 0xf30   :  { %2495 = vrot.lane.b32.xlu1 %v2458_v30, %s3267_s6  ;;  %2851 = vrot.lane.b32.xlu0 %v2829_v41, %s3267_s6 }
 0xf31   :  { %2497 = vrot.lane.b32.xlu2 %v2456_v20, %s3267_s6 }
 0xf35   :  { %v2476_v44 = vpop.permute.xlu1 %2475 }
 0xf36   :  { %v2480_v54 = vmul.f32 %v2476_v44, %v4501_v32 }
 0xf38   :  { %2449 = vrot.lane.b32.xlu0 %v4359_v57, %s3268_s8  ;;  %v2479_v57 = vmul.f32 %v2474_v52, %v4500_v0 }
 0xf39   :  { %2831 = vrot.lane.b32.xlu2 %v2794_v59, %s3267_s6 }
 0xf40   :  { %2505 = vrot.lane.b32.xlu0 %v2465_v51, %s3267_s6 }
 0xf48   :  { %2843 = vrot.lane.b32.xlu0 %v2802_v13, %s3267_s6 }
 0xf6a   :  { %v2516_v10 = vpop.permute.xlu1 %2515  ;;  %v2518_v6 = vpop.permute.xlu2 %2517 }
 0xf6b   :  { %v2521_v24 = vadd.f32 %v2516_v10, %v2479_v57  ;;  %v2522_v14 = vadd.f32 %v2518_v6, %v2480_v54 }
 0xf6d   :  { %2527 = vrot.lane.b32.xlu1 %v2522_v14, %s3269_s28  ;;  %2525 = vrot.lane.b32.xlu0 %v2521_v24, %s3269_s28 }
 0xf72   :  { %v2448_v9 = vpop.permute.xlu2 %2447 }
 0xf73   :  { %v2453_v46 = vmul.f32 %v2448_v9, %v4496_v47 }
 0xf75   :  { %2833 = vrot.lane.b32.xlu0 %v4379_v3, %s3267_s6 }
 0xf7a   :  { %v2786_v43 = vpop.permute.xlu2 %2785 }
 0xf7b   :  { %v2790_v29 = vmul.f32 %v2786_v43, %v4318_v61 }
 0xf82   :  { %v2842_v12 = vpop.permute.xlu2 %2841 }
 0xf8a   :  { %v2854_v28 = vpop.permute.xlu1 %2853 }
 0xf8b   :  { %v2858_v30 = vadd.f32 %v2854_v28, %v2816_v42  ;;  %v2498_v40 = vpop.permute.xlu2 %2497 }
 0xf8c   :  { %v2502_v58 = vmul.f32 %v2498_v40, %v4501_v32 }
 0xf8d   :  { %2863 = vrot.lane.b32.xlu2 %v2858_v30, %s3269_s28 }
 0xf92   :  { %v2784_v20 = vpop.permute.xlu1 %2783 }
 0xf93   :  { %v2789_v2 = vmul.f32 %v2784_v20, %v4497_v62  ;;  %v2832_v55 = vpop.permute.xlu2 %2831 }
 0xf94   :  { %v2837_v32 = vmul.f32 %v2832_v55, %v4503_v26 }
 0xf95   :  { %v2847_v39 = vadd.f32 %v2842_v12, %v2789_v2 }
 0xf9a   :  { %v2508_v3 = vpop.permute.xlu1 %2507 }
 0xfa2   :  { %v2852_v48 = vpop.permute.xlu0 %2851  ;;  %v2496_v11 = vpop.permute.xlu1 %2495 }
 0xfa3   :  { %v2857_v35 = vadd.f32 %v2852_v48, %v2815_v60  ;;  %v2501_v53 = vmul.f32 %v2496_v11, %v4500_v0 }
 0xfa5   :  { %2861 = vrot.lane.b32.xlu1 %v2857_v35, %s3269_s28 }
 0xfaa   :  { %v2450_v37 = vpop.permute.xlu0 %2449 }
 0xfab   :  { %v2454_v15 = vmul.f32 %v2450_v37, %v4495_v5 }
 0xfad   :  { %v2512_v49 = vadd.f32 %v2508_v3, %v2454_v15 }
 0xfb2   :  { %v2506_v59 = vpop.permute.xlu0 %2505 }
 0xfb3   :  { %v2511_v62 = vadd.f32 %v2506_v59, %v2453_v46 }
 0xfba   :  { %v2844_v19 = vpop.permute.xlu0 %2843 }
 0xfbb   :  { %v2848_v5 = vadd.f32 %v2844_v19, %v2790_v29 }
 0xfdf   :  { %v2528_v17 = vpop.permute.xlu1 %2527  ;;  %v2526_v8 = vpop.permute.xlu0 %2525 }
 0xfe0   :  { %v2532_v25 = vadd.f32 %v2528_v17, %v2512_v49  ;;  %v2531_v4 = vadd.f32 %v2526_v8, %v2511_v62 }
 0xfe2   :  { %v2534_v34 = vadd.f32 %v2532_v25, %v2502_v58  ;;  %v2533_v21 = vadd.f32 %v2531_v4, %v2501_v53 }
 0xfe4   :  { %2875 = vrot.lane.b32.xlu0 %v2533_v21, %s3268_s8  ;;  %2877 = vrot.lane.b32.xlu1 %v2534_v34, %s3268_s8 }
 0xfe7   :  { %v2864_v47 = vpop.permute.xlu2 %2863  ;;  %v2834_v7 = vpop.permute.xlu0 %2833 }
 0xfe8   :  { %v2868_v23 = vadd.f32 %v2864_v47, %v2848_v5  ;;  %v2838_v16 = vmul.f32 %v2834_v7, %v4405_v22 }
 0xfea   :  { %v2870_v36 = vadd.f32 %v2868_v23, %v2838_v16 }
 0xfec   :  { %2881 = vrot.lane.b32.xlu0 %v2870_v36, %s3268_s8 }
0x1017   :  { %v2862_v0 = vpop.permute.xlu1 %2861 }
0x1018   :  { %v2867_v56 = vadd.f32 %v2862_v0, %v2847_v39 }
0x101a   :  { %v2869_v27 = vadd.f32 %v2867_v56, %v2837_v32 }
0x101c   :  { %2879 = vrot.lane.b32.xlu2 %v2869_v27, %s3268_s8 }
0x1056   :  { %v2876_v61 = vpop.permute.xlu0 %2875  ;;  %v2878_v63 = vpop.permute.xlu1 %2877 }
0x1057   :  { %2887 = vst.msk [vmem:[#allocation17] sm:$0xff] %vm187_vm0, %v2876_v61 }
0x1058   :  { %2888 = vst.msk [vmem:[#allocation17 + $0x8] sm:$0xff] %vm187_vm0, %v2878_v63 }
0x105e   :  { %v2882_v50 = vpop.permute.xlu0 %2881 }
0x105f   :  { %2890 = vst.msk [vmem:[#allocation17 + $0x18] sm:$0xff] %vm187_vm0, %v2882_v50 }
0x1076   :  { %v2880_v22 = vpop.permute.xlu2 %2879 }
0x1077   :  { %2889 = vst.msk [vmem:[#allocation17 + $0x10] sm:$0xff] %vm187_vm0, %v2880_v22 }
0x1078   :  { %2903 = dma.vmem_to_hbm [thread:$0]  %s2896_s13, 512, %s2898_s7, [#allocation4], %s3252_s17, %s3252_s17, %s3253_s18  }
0x1079   :  { %3249 = dma.done.wait [#allocation4], 512  }
0x107a   :  { %3250 = vsyncadd [#allocation4], 4294966784 }
0x107b   :  { %2908 = vsyncpa [#allocation3], 1 }
0x107c   :  { %2909 = vsyncpa [#allocation6], 1 }
0x107d   :  { %2910 = vsyncpa [#allocation9], 1 }
0x107e   :  { %2911 = vsyncpa [#allocation12], 1 }
0x107f   :  { %2912 = vsyncpa [#allocation15], 1 }
0x1080   :  { %2913 = vsyncpa [#allocation4], 1 }

</bundles_post_ra>
